<compile_context>
chip_gen: v6e
topology: v6e:2x2x1
jax: 0.10.0
libtpu: 0.0.40
codegen_flags: <defaults>
</compile_context>

<pallas_src>
import functools

import jax
import jax.numpy as jnp
from jax import lax
from jax.experimental import pallas as pl
from jax.experimental.pallas import tpu as pltpu


# ----------------------------------------------------------------------------
# helpers
# ----------------------------------------------------------------------------
def _round_up(x, m):
    return ((x + m - 1) // m) * m


def _sigmoid(x):
    # manual sigmoid (safe lowering inside Mosaic kernels)
    return 1.0 / (1.0 + jnp.exp(-x))


# ----------------------------------------------------------------------------
# Kernel 1: elementwise fuse  DSMf = DSM*s1 + HSI*s2   (scalars in SMEM)
# ----------------------------------------------------------------------------
def _fuse_kernel(lam_ref, dsm_ref, hsi_ref, out_ref):
    s1 = lam_ref[0]
    s2 = lam_ref[1]
    out_ref[...] = dsm_ref[...] * s1 + hsi_ref[...] * s2


def _fused_dsm(dsm, hsi, lam_sig):
    """DSM * sigmoid(l1) + HSI * sigmoid(l2) via a lane-dense Pallas kernel."""
    shape = dsm.shape
    total = dsm.size
    lanes = 128
    rows = _round_up(total, lanes) // lanes
    block_rows = min(512, _round_up(rows, 8))      # lane-dense, >= (8,128) tile
    rows_pad = _round_up(rows, block_rows)
    pad = rows_pad * lanes - total

    def to2d(x):
        x = x.reshape(-1).astype(jnp.float32)
        x = jnp.pad(x, (0, pad))
        return x.reshape(rows_pad, lanes)

    out2d = pl.pallas_call(
        _fuse_kernel,
        out_shape=jax.ShapeDtypeStruct((rows_pad, lanes), jnp.float32),
        grid_spec=pltpu.PrefetchScalarGridSpec(
            num_scalar_prefetch=0,
            grid=(rows_pad // block_rows,),
            in_specs=[
                pl.BlockSpec(memory_space=pltpu.MemorySpace.SMEM),
                pl.BlockSpec((block_rows, lanes), lambda i: (i, 0)),
                pl.BlockSpec((block_rows, lanes), lambda i: (i, 0)),
            ],
            out_specs=pl.BlockSpec((block_rows, lanes), lambda i: (i, 0)),
        ),
        compiler_params=pltpu.CompilerParams(dimension_semantics=("parallel",)),
    )(lam_sig, to2d(dsm), to2d(hsi))
    return out2d.reshape(-1)[:total].reshape(shape)


# ----------------------------------------------------------------------------
# Kernel 2: offsets + mask 3x3 convs as one im2col matmul (+in-kernel sigmoid
# on the mask columns)
# ----------------------------------------------------------------------------
def _conv_mm_kernel(x_ref, w_ref, b_ref, o_ref, *, n_linear):
    acc = jnp.dot(x_ref[...], w_ref[...], preferred_element_type=jnp.float32)
    acc = acc + b_ref[...]
    col = lax.broadcasted_iota(jnp.int32, acc.shape, 1)
    acc = jnp.where(col < n_linear, acc, _sigmoid(acc))
    o_ref[...] = acc.astype(o_ref.dtype)


def _offsets_mask(cols_dsm, w_om, b_om, n_off):
    m, kdim = cols_dsm.shape
    ncols = w_om.shape[1]
    tm = min(1024, _round_up(m, 8))
    m_pad = _round_up(m, tm)
    x = jnp.pad(cols_dsm, ((0, m_pad - m), (0, 0)))

    out = pl.pallas_call(
        functools.partial(_conv_mm_kernel, n_linear=n_off),
        out_shape=jax.ShapeDtypeStruct((m_pad, ncols), jnp.float32),
        grid_spec=pltpu.PrefetchScalarGridSpec(
            num_scalar_prefetch=0,
            grid=(m_pad // tm,),
            in_specs=[
                pl.BlockSpec((tm, kdim), lambda i: (i, 0)),
                pl.BlockSpec((kdim, ncols), lambda i: (0, 0)),
                pl.BlockSpec((1, ncols), lambda i: (0, 0)),
            ],
            out_specs=pl.BlockSpec((tm, ncols), lambda i: (i, 0)),
        ),
        compiler_params=pltpu.CompilerParams(dimension_semantics=("parallel",)),
        cost_estimate=pl.CostEstimate(
            flops=2 * m_pad * kdim * ncols,
            transcendentals=m_pad * ncols,
            bytes_accessed=4 * (m_pad * kdim + kdim * ncols + m_pad * ncols),
        ),
    )(x, w_om, b_om.reshape(1, ncols))
    return out[:m]


# ----------------------------------------------------------------------------
# Kernel 3: fused tail
#   y = relu( (relu(cols_dcn @ Wr) + DSMf @ Wbb + b_bb) @ Ws1 + shared @ Ws2 + b_sh )
# ----------------------------------------------------------------------------
def _tail_kernel(cols_ref, dsmf_ref, shr_ref, wr_ref, wbb_ref, bbb_ref,
                 ws1_ref, ws2_ref, bsh_ref, o_ref):
    dcn = jnp.dot(cols_ref[...], wr_ref[...], preferred_element_type=jnp.float32)
    dcn = jnp.maximum(dcn, 0.0)                      # relu(deform_conv2d)
    bb = jnp.dot(dsmf_ref[...], wbb_ref[...],
                 preferred_element_type=jnp.float32) + bbb_ref[...]
    x = dcn + bb                                     # DSM_guide_rgb_s_
    y = (jnp.dot(x, ws1_ref[...], preferred_element_type=jnp.float32)
         + jnp.dot(shr_ref[...], ws2_ref[...], preferred_element_type=jnp.float32)
         + bsh_ref[...])                             # conv_share on concat
    o_ref[...] = jnp.maximum(y, 0.0).astype(o_ref.dtype)


# ----------------------------------------------------------------------------
# forward pass
# ----------------------------------------------------------------------------
def fused_height_forward(params, HSI, DSM, shared):
    B, C, H, W = HSI.shape
    K = 9
    M = B * H * W

    HSI = HSI.astype(jnp.float32)
    DSM = DSM.astype(jnp.float32)
    shared = shared.astype(jnp.float32)

    # 1) DSM = DSM*sigmoid(l1) + HSI*sigmoid(l2)   (Pallas elementwise kernel)
    lam_sig = jax.nn.sigmoid(
        jnp.stack([params["lamda1"], params["lamda2"]]).astype(jnp.float32))
    dsmf = _fused_dsm(DSM, HSI, lam_sig)

    # 2) offsets + mask 3x3 convs as ONE im2col matmul (Pallas kernel 2)
    def _im2col3x3(x):
        xp = jnp.pad(x, ((0, 0), (0, 0), (1, 1), (1, 1)))
        patches = [xp[:, :, kh:kh + H, kw:kw + W]
                   for kh in range(3) for kw in range(3)]
        cols = jnp.stack(patches, axis=-1)                 # [B, C, H, W, 9]
        return cols.transpose(0, 2, 3, 1, 4).reshape(M, C * K)

    w_om = jnp.concatenate(
        [params["w_offsets"].reshape(2 * K, C * K).T,
         params["w_mask"].reshape(K, C * K).T], axis=1).astype(jnp.float32)
    b_om = jnp.concatenate(
        [params["b_offsets"], params["b_mask"]]).astype(jnp.float32)

    cols_dsm = _im2col3x3(dsmf)
    om = _offsets_mask(cols_dsm, w_om, b_om, n_off=2 * K)  # [M, 27]
    om = om.reshape(B, H, W, 3 * K)
    off_y = om[..., 0:2 * K:2]                             # [B, H, W, K]
    off_x = om[..., 1:2 * K:2]
    mask = om[..., 2 * K:]                                 # sigmoid'ed in kernel

    # 3) deformable sampling columns (modulated bilinear gather of HSI)
    # TODO(synk): the offset-driven bilinear gather is data-dependent and has no
    # clean single-kernel Pallas/Mosaic equivalent; it stays as XLA glue here.
    hh = jnp.arange(H, dtype=jnp.float32)[None, :, None, None]
    ww = jnp.arange(W, dtype=jnp.float32)[None, None, :, None]
    kh = (jnp.arange(K) // 3).astype(jnp.float32)[None, None, None, :]
    kw = (jnp.arange(K) % 3).astype(jnp.float32)[None, None, None, :]
    py = hh + kh - 1.0 + off_y
    px = ww + kw - 1.0 + off_x

    y0f = jnp.floor(py)
    x0f = jnp.floor(px)
    ly = py - y0f
    lx = px - x0f
    hy = 1.0 - ly
    hx = 1.0 - lx
    y0 = y0f.astype(jnp.int32)
    x0 = x0f.astype(jnp.int32)
    y1 = y0 + 1
    x1 = x0 + 1

    hsi_flat = HSI.reshape(B, C, H * W)

    def corner(iy, ix):
        valid = (iy >= 0) & (iy < H) & (ix >= 0) & (ix < W)
        iyc = jnp.clip(iy, 0, H - 1)
        ixc = jnp.clip(ix, 0, W - 1)
        flat = (iyc * W + ixc).reshape(B, 1, H * W * K)
        flat = jnp.broadcast_to(flat, (B, C, H * W * K))
        g = jnp.take_along_axis(hsi_flat, flat, axis=2).reshape(B, C, H, W, K)
        return g * valid.astype(jnp.float32)[:, None]

    v1 = corner(y0, x0)
    v2 = corner(y0, x1)
    v3 = corner(y1, x0)
    v4 = corner(y1, x1)
    sampled = ((hy * hx)[:, None] * v1 + (hy * lx)[:, None] * v2
               + (ly * hx)[:, None] * v3 + (ly * lx)[:, None] * v4)
    modulated = sampled * mask[:, None]                    # [B, C, H, W, K]
    cols_dcn = modulated.transpose(0, 2, 3, 1, 4).reshape(M, C * K)

    # 4) fused tail kernel (deform matmul + conv_BB + concat + conv_share + relu)
    w_r = params["w_reg"].reshape(C, C * K).T.astype(jnp.float32)     # [C*K, C]
    w_bb = params["w_bb"].reshape(C, C).T.astype(jnp.float32)         # [C, C]
    b_bb = params["b_bb"].reshape(1, C).astype(jnp.float32)
    w_sh = params["w_share"].reshape(C, 2 * C).astype(jnp.float32)
    w_s1 = w_sh[:, :C].T                                              # [C, C]
    w_s2 = w_sh[:, C:].T                                              # [C, C]
    b_sh = params["b_share"].reshape(1, C).astype(jnp.float32)

    dsmf_pix = dsmf.transpose(0, 2, 3, 1).reshape(M, C)
    shr_pix = shared.transpose(0, 2, 3, 1).reshape(M, C)

    tm = min(1024, _round_up(M, 8))
    m_pad = _round_up(M, tm)

    def padrows(x):
        return jnp.pad(x, ((0, m_pad - x.shape[0]), (0, 0)))

    out_pix = pl.pallas_call(
        _tail_kernel,
        out_shape=jax.ShapeDtypeStruct((m_pad, C), jnp.float32),
        grid_spec=pltpu.PrefetchScalarGridSpec(
            num_scalar_prefetch=0,
            grid=(m_pad // tm,),
            in_specs=[
                pl.BlockSpec((tm, C * K), lambda i: (i, 0)),
                pl.BlockSpec((tm, C), lambda i: (i, 0)),
                pl.BlockSpec((tm, C), lambda i: (i, 0)),
                pl.BlockSpec((C * K, C), lambda i: (0, 0)),
                pl.BlockSpec((C, C), lambda i: (0, 0)),
                pl.BlockSpec((1, C), lambda i: (0, 0)),
                pl.BlockSpec((C, C), lambda i: (0, 0)),
                pl.BlockSpec((C, C), lambda i: (0, 0)),
                pl.BlockSpec((1, C), lambda i: (0, 0)),
            ],
            out_specs=pl.BlockSpec((tm, C), lambda i: (i, 0)),
        ),
        compiler_params=pltpu.CompilerParams(dimension_semantics=("parallel",)),
        cost_estimate=pl.CostEstimate(
            flops=2 * m_pad * (C * K * C + 3 * C * C),
            transcendentals=0,
            bytes_accessed=4 * m_pad * (C * K + 4 * C),
        ),
    )(padrows(cols_dcn), padrows(dsmf_pix), padrows(shr_pix),
      w_r, w_bb, b_bb, w_s1, w_s2, b_sh)

    return out_pix[:M].reshape(B, H, W, C).transpose(0, 3, 1, 2)


# ----------------------------------------------------------------------------
# pure-JAX reference (lax.conv + explicit deform loop) for verification
# ----------------------------------------------------------------------------
def _conv3x3_ref(x, w, b):
    y = lax.conv_general_dilated(
        x, w, window_strides=(1, 1), padding="SAME",
        dimension_numbers=("NCHW", "OIHW", "NCHW"),
        precision=lax.Precision.HIGHEST)
    return y + b[None, :, None, None]


def _conv1x1_ref(x, w, b):
    y = jnp.einsum("oc,bchw->bohw", w.reshape(w.shape[0], w.shape[1]), x,
                   precision=lax.Precision.HIGHEST)
    return y + b[None, :, None, None]


def _deform_conv2d_ref(inp, offsets, mask, weight):
    B, C, H, W = inp.shape
    Cout = weight.shape[0]
    out = jnp.zeros((B, Cout, H, W), jnp.float32)
    hh = jnp.arange(H, dtype=jnp.float32)[None, :, None]
    ww = jnp.arange(W, dtype=jnp.float32)[None, None, :]
    inp_flat = inp.reshape(B, C, H * W)
    for k in range(9):
        kh, kw = k // 3, k % 3
        py = hh + kh - 1.0 + offsets[:, 2 * k]
        px = ww + kw - 1.0 + offsets[:, 2 * k + 1]
        y0 = jnp.floor(py)
        x0 = jnp.floor(px)
        ly, lx = py - y0, px - x0
        hy, hx = 1.0 - ly, 1.0 - lx

        def corner(iyf, ixf):
            iy = iyf.astype(jnp.int32)
            ix = ixf.astype(jnp.int32)
            valid = (iy >= 0) & (iy < H) & (ix >= 0) & (ix < W)
            iyc = jnp.clip(iy, 0, H - 1)
            ixc = jnp.clip(ix, 0, W - 1)
            flat = (iyc * W + ixc).reshape(B, 1, H * W)
            flat = jnp.broadcast_to(flat, (B, C, H * W))
            g = jnp.take_along_axis(inp_flat, flat, axis=2).reshape(B, C, H, W)
            return g * valid[:, None].astype(jnp.float32)

        val = ((hy * hx)[:, None] * corner(y0, x0)
               + (hy * lx)[:, None] * corner(y0, x0 + 1)
               + (ly * hx)[:, None] * corner(y0 + 1, x0)
               + (ly * lx)[:, None] * corner(y0 + 1, x0 + 1))
        val = val * mask[:, k][:, None]
        out = out + jnp.einsum("oc,bchw->bohw", weight[:, :, kh, kw], val,
                               precision=lax.Precision.HIGHEST)
    return out


def reference_forward(params, HSI, DSM, shared):
    s1 = jax.nn.sigmoid(params["lamda1"])
    s2 = jax.nn.sigmoid(params["lamda2"])
    dsmf = DSM * s1 + HSI * s2
    offs = _conv3x3_ref(dsmf, params["w_offsets"], params["b_offsets"])
    mask = jax.nn.sigmoid(_conv3x3_ref(dsmf, params["w_mask"], params["b_mask"]))
    dcn = jax.nn.relu(_deform_conv2d_ref(HSI, offs, mask, params["w_reg"]))
    x = dcn + _conv1x1_ref(dsmf, params["w_bb"], params["b_bb"])
    cat = jnp.concatenate([x, shared], axis=1)
    return jax.nn.relu(_conv1x1_ref(cat, params["w_share"], params["b_share"]))


# ----------------------------------------------------------------------------
def init_params(key, channels):
    C = channels
    keys = jax.random.split(key, 9)

    def w(k, shape, scale=0.1):
        return scale * jax.random.normal(k, shape, dtype=jnp.float32)

    return {
        "lamda1": jnp.array(0.5, jnp.float32),
        "lamda2": jnp.array(0.5, jnp.float32),
        "w_offsets": w(keys[0], (18, C, 3, 3)),
        "b_offsets": w(keys[1], (18,)),
        "w_mask": w(keys[2], (9, C, 3, 3)),
        "b_mask": w(keys[3], (9,)),
        "w_reg": w(keys[4], (C, C, 3, 3)),
        "w_bb": w(keys[5], (C, C, 1, 1)),
        "b_bb": w(keys[6], (C,)),
        "w_share": w(keys[7], (C, 2 * C, 1, 1)),
        "b_share": w(keys[8], (C,)),
    }


if __name__ == "__main__":
    key = jax.random.PRNGKey(0)
    kp, k1, k2, k3 = jax.random.split(key, 4)
    B, C, H, W = 2, 4, 16, 16

    params = init_params(kp, C)
    HSI = jax.random.normal(k1, (B, C, H, W), dtype=jnp.float32)
    DSM = jax.random.normal(k2, (B, C, H, W), dtype=jnp.float32)
    shared = jax.random.normal(k3, (B, C, H, W), dtype=jnp.float32)

    out = jax.jit(fused_height_forward)(params, HSI, DSM, shared)
    out = jax.block_until_ready(out)

    ref = reference_forward(params, HSI, DSM, shared)
    assert out.shape == (B, C, H, W)
    max_err = float(jnp.max(jnp.abs(out - ref)))
    assert jnp.allclose(out, ref, rtol=1e-4, atol=1e-4), max_err

    print("KERNEL_OK")
</pallas_src>

<mosaic_0001>
module attributes {stable_mosaic.version = 11 : i64} {
  func.func @_fuse_kernel(%arg0: i32, %arg1: memref<2xf32, #tpu.memory_space<smem>>, %arg2: memref<16x128xf32, #tpu.memory_space<vmem>>, %arg3: memref<16x128xf32, #tpu.memory_space<vmem>>, %arg4: memref<16x128xf32, #tpu.memory_space<vmem>>) attributes {dimension_semantics = [#tpu.dimension_semantics<parallel>], iteration_bounds = array<i64: 1>, scalar_prefetch = 0 : i64, scratch_operands = 0 : i64, tpu.core_type = #tpu.core_type<tc>, window_params = [{transform_indices = @transform_0, window_bounds = array<i64: 2>}, {transform_indices = @transform_1, window_bounds = array<i64: 16, 128>}, {transform_indices = @transform_2, window_bounds = array<i64: 16, 128>}, {transform_indices = @transform_3, window_bounds = array<i64: 16, 128>}]} {
    %c0 = arith.constant 0 : index
    %0 = memref.load %arg1[%c0] : memref<2xf32, #tpu.memory_space<smem>>
    %c1 = arith.constant 1 : index
    %1 = memref.load %arg1[%c1] : memref<2xf32, #tpu.memory_space<smem>>
    %c0_0 = arith.constant 0 : index
    %c0_1 = arith.constant 0 : index
    %2 = vector.load %arg2[%c0_0, %c0_1] : memref<16x128xf32, #tpu.memory_space<vmem>>, vector<16x128xf32>
    %3 = vector.broadcast %0 : f32 to vector<16x128xf32>
    %4 = arith.mulf %2, %3 : vector<16x128xf32>
    %c0_2 = arith.constant 0 : index
    %c0_3 = arith.constant 0 : index
    %5 = vector.load %arg3[%c0_2, %c0_3] : memref<16x128xf32, #tpu.memory_space<vmem>>, vector<16x128xf32>
    %6 = vector.broadcast %1 : f32 to vector<16x128xf32>
    %7 = arith.mulf %5, %6 : vector<16x128xf32>
    %8 = arith.addf %4, %7 : vector<16x128xf32>
    %c0_4 = arith.constant 0 : index
    %c0_5 = arith.constant 0 : index
    %9 = vector.load %arg4[%c0_4, %c0_5] : memref<16x128xf32, #tpu.memory_space<vmem>>, vector<16x128xf32>
    tpu.vector_store %arg4[%c0_4, %c0_5], %8 {strides = array<i32>} : memref<16x128xf32, #tpu.memory_space<vmem>>, vector<16x128xf32>,
    return
  }
  func.func @transform_0(%arg0: i32) -> i32 {
    %c0_i32 = arith.constant 0 : i32
    %c0_i32_0 = arith.constant 0 : i32
    return %c0_i32 : i32
  }
  func.func @transform_1(%arg0: i32) -> (i32, i32) {
    %c0_i32 = arith.constant 0 : i32
    %c0_i32_0 = arith.constant 0 : i32
    return %arg0, %c0_i32 : i32, i32
  }
  func.func @transform_2(%arg0: i32) -> (i32, i32) {
    %c0_i32 = arith.constant 0 : i32
    %c0_i32_0 = arith.constant 0 : i32
    return %arg0, %c0_i32 : i32, i32
  }
  func.func @transform_3(%arg0: i32) -> (i32, i32) {
    %c0_i32 = arith.constant 0 : i32
    %c0_i32_0 = arith.constant 0 : i32
    return %arg0, %c0_i32 : i32, i32
  }
}

module attributes {stable_mosaic.version = 11 : i64} {
  func.func @_conv_mm_kernel(%arg0: i32, %arg1: memref<512x36xf32, #tpu.memory_space<vmem>>, %arg2: memref<36x27xf32, #tpu.memory_space<vmem>>, %arg3: memref<1x27xf32, #tpu.memory_space<vmem>>, %arg4: memref<512x27xf32, #tpu.memory_space<vmem>>) attributes {dimension_semantics = [#tpu.dimension_semantics<parallel>], iteration_bounds = array<i64: 1>, scalar_prefetch = 0 : i64, scratch_operands = 0 : i64, tpu.core_type = #tpu.core_type<tc>, window_params = [{transform_indices = @transform_0, window_bounds = array<i64: 512, 36>}, {pipeline_mode = #tpu.pipeline_mode<synchronous>, transform_indices = @transform_1, window_bounds = array<i64: 36, 27>}, {pipeline_mode = #tpu.pipeline_mode<synchronous>, transform_indices = @transform_2, window_bounds = array<i64: 1, 27>}, {transform_indices = @transform_3, window_bounds = array<i64: 512, 27>}]} {
    %c0 = arith.constant 0 : index
    %c0_0 = arith.constant 0 : index
    %0 = vector.load %arg1[%c0, %c0_0] : memref<512x36xf32, #tpu.memory_space<vmem>>, vector<512x36xf32>
    %c0_1 = arith.constant 0 : index
    %c0_2 = arith.constant 0 : index
    %1 = vector.load %arg2[%c0_1, %c0_2] : memref<36x27xf32, #tpu.memory_space<vmem>>, vector<36x27xf32>
    %cst = arith.constant dense<0.000000e+00> : vector<512x27xf32>
    %2 = tpu.matmul %0, %1, %cst {dimension_numbers = #tpu.dot_dimension_numbers<[1], [0], [0], [1], [0, 0, 1, 1], [], []>} : vector<512x36xf32>, vector<36x27xf32>, vector<512x27xf32> -> vector<512x27xf32>
    %c0_3 = arith.constant 0 : index
    %c0_4 = arith.constant 0 : index
    %3 = vector.load %arg3[%c0_3, %c0_4] : memref<1x27xf32, #tpu.memory_space<vmem>>, vector<1x27xf32>
    %4 = vector.broadcast %3 : vector<1x27xf32> to vector<512x27xf32>
    %5 = arith.addf %2, %4 : vector<512x27xf32>
    %6 = tpu.iota {dimensions = array<i32: 1>} : vector<512x27xi32>
    %c18_i32 = arith.constant 18 : i32
    %7 = vector.broadcast %c18_i32 : i32 to vector<512x27xi32>
    %8 = arith.cmpi slt, %6, %7 : vector<512x27xi32>
    %cst_5 = arith.constant 0.000000e+00 : f32
    %9 = vector.broadcast %cst_5 : f32 to vector<512x27xf32>
    %10 = arith.subf %9, %5 : vector<512x27xf32>
    %11 = math.exp %10 : vector<512x27xf32>
    %cst_6 = arith.constant 1.000000e+00 : f32
    %12 = vector.broadcast %cst_6 : f32 to vector<512x27xf32>
    %13 = arith.addf %12, %11 : vector<512x27xf32>
    %cst_7 = arith.constant 1.000000e+00 : f32
    %14 = vector.broadcast %cst_7 : f32 to vector<512x27xf32>
    %15 = arith.divf %14, %13 : vector<512x27xf32>
    %16 = arith.select %8, %5, %15 : vector<512x27xi1>, vector<512x27xf32>
    %c0_8 = arith.constant 0 : index
    %c0_9 = arith.constant 0 : index
    %17 = vector.load %arg4[%c0_8, %c0_9] : memref<512x27xf32, #tpu.memory_space<vmem>>, vector<512x27xf32>
    tpu.vector_store %arg4[%c0_8, %c0_9], %16 {strides = array<i32>} : memref<512x27xf32, #tpu.memory_space<vmem>>, vector<512x27xf32>,
    return
  }
  func.func @transform_0(%arg0: i32) -> (i32, i32) {
    %c0_i32 = arith.constant 0 : i32
    %c0_i32_0 = arith.constant 0 : i32
    return %arg0, %c0_i32 : i32, i32
  }
  func.func @transform_1(%arg0: i32) -> (i32, i32) {
    %c0_i32 = arith.constant 0 : i32
    %c0_i32_0 = arith.constant 0 : i32
    %c0_i32_1 = arith.constant 0 : i32
    return %c0_i32, %c0_i32_0 : i32, i32
  }
  func.func @transform_2(%arg0: i32) -> (i32, i32) {
    %c0_i32 = arith.constant 0 : i32
    %c0_i32_0 = arith.constant 0 : i32
    %c0_i32_1 = arith.constant 0 : i32
    return %c0_i32, %c0_i32_0 : i32, i32
  }
  func.func @transform_3(%arg0: i32) -> (i32, i32) {
    %c0_i32 = arith.constant 0 : i32
    %c0_i32_0 = arith.constant 0 : i32
    return %arg0, %c0_i32 : i32, i32
  }
}

module attributes {stable_mosaic.version = 11 : i64} {
  func.func @_tail_kernel(%arg0: i32, %arg1: memref<512x36xf32, #tpu.memory_space<vmem>>, %arg2: memref<512x4xf32, #tpu.memory_space<vmem>>, %arg3: memref<512x4xf32, #tpu.memory_space<vmem>>, %arg4: memref<36x4xf32, #tpu.memory_space<vmem>>, %arg5: memref<4x4xf32, #tpu.memory_space<vmem>>, %arg6: memref<1x4xf32, #tpu.memory_space<vmem>>, %arg7: memref<4x4xf32, #tpu.memory_space<vmem>>, %arg8: memref<4x4xf32, #tpu.memory_space<vmem>>, %arg9: memref<1x4xf32, #tpu.memory_space<vmem>>, %arg10: memref<512x4xf32, #tpu.memory_space<vmem>>) attributes {dimension_semantics = [#tpu.dimension_semantics<parallel>], iteration_bounds = array<i64: 1>, scalar_prefetch = 0 : i64, scratch_operands = 0 : i64, tpu.core_type = #tpu.core_type<tc>, window_params = [{transform_indices = @transform_0, window_bounds = array<i64: 512, 36>}, {transform_indices = @transform_1, window_bounds = array<i64: 512, 4>}, {transform_indices = @transform_2, window_bounds = array<i64: 512, 4>}, {pipeline_mode = #tpu.pipeline_mode<synchronous>, transform_indices = @transform_3, window_bounds = array<i64: 36, 4>}, {pipeline_mode = #tpu.pipeline_mode<synchronous>, transform_indices = @transform_4, window_bounds = array<i64: 4, 4>}, {pipeline_mode = #tpu.pipeline_mode<synchronous>, transform_indices = @transform_5, window_bounds = array<i64: 1, 4>}, {pipeline_mode = #tpu.pipeline_mode<synchronous>, transform_indices = @transform_6, window_bounds = array<i64: 4, 4>}, {pipeline_mode = #tpu.pipeline_mode<synchronous>, transform_indices = @transform_7, window_bounds = array<i64: 4, 4>}, {pipeline_mode = #tpu.pipeline_mode<synchronous>, transform_indices = @transform_8, window_bounds = array<i64: 1, 4>}, {transform_indices = @transform_9, window_bounds = array<i64: 512, 4>}]} {
    %c0 = arith.constant 0 : index
    %c0_0 = arith.constant 0 : index
    %0 = vector.load %arg1[%c0, %c0_0] : memref<512x36xf32, #tpu.memory_space<vmem>>, vector<512x36xf32>
    %c0_1 = arith.constant 0 : index
    %c0_2 = arith.constant 0 : index
    %1 = vector.load %arg4[%c0_1, %c0_2] : memref<36x4xf32, #tpu.memory_space<vmem>>, vector<36x4xf32>
    %cst = arith.constant dense<0.000000e+00> : vector<512x4xf32>
    %2 = tpu.matmul %0, %1, %cst {dimension_numbers = #tpu.dot_dimension_numbers<[1], [0], [0], [1], [0, 0, 1, 1], [], []>} : vector<512x36xf32>, vector<36x4xf32>, vector<512x4xf32> -> vector<512x4xf32>
    %cst_3 = arith.constant 0.000000e+00 : f32
    %3 = vector.broadcast %cst_3 : f32 to vector<512x4xf32>
    %4 = arith.maximumf %2, %3 : vector<512x4xf32>
    %c0_4 = arith.constant 0 : index
    %c0_5 = arith.constant 0 : index
    %5 = vector.load %arg2[%c0_4, %c0_5] : memref<512x4xf32, #tpu.memory_space<vmem>>, vector<512x4xf32>
    %c0_6 = arith.constant 0 : index
    %c0_7 = arith.constant 0 : index
    %6 = vector.load %arg5[%c0_6, %c0_7] : memref<4x4xf32, #tpu.memory_space<vmem>>, vector<4x4xf32>
    %cst_8 = arith.constant dense<0.000000e+00> : vector<512x4xf32>
    %7 = tpu.matmul %5, %6, %cst_8 {dimension_numbers = #tpu.dot_dimension_numbers<[1], [0], [0], [1], [0, 0, 1, 1], [], []>} : vector<512x4xf32>, vector<4x4xf32>, vector<512x4xf32> -> vector<512x4xf32>
    %c0_9 = arith.constant 0 : index
    %c0_10 = arith.constant 0 : index
    %8 = vector.load %arg6[%c0_9, %c0_10] : memref<1x4xf32, #tpu.memory_space<vmem>>, vector<1x4xf32>
    %9 = vector.broadcast %8 : vector<1x4xf32> to vector<512x4xf32>
    %10 = arith.addf %7, %9 : vector<512x4xf32>
    %11 = arith.addf %4, %10 : vector<512x4xf32>
    %c0_11 = arith.constant 0 : index
    %c0_12 = arith.constant 0 : index
    %12 = vector.load %arg7[%c0_11, %c0_12] : memref<4x4xf32, #tpu.memory_space<vmem>>, vector<4x4xf32>
    %cst_13 = arith.constant dense<0.000000e+00> : vector<512x4xf32>
    %13 = tpu.matmul %11, %12, %cst_13 {dimension_numbers = #tpu.dot_dimension_numbers<[1], [0], [0], [1], [0, 0, 1, 1], [], []>} : vector<512x4xf32>, vector<4x4xf32>, vector<512x4xf32> -> vector<512x4xf32>
    %c0_14 = arith.constant 0 : index
    %c0_15 = arith.constant 0 : index
    %14 = vector.load %arg3[%c0_14, %c0_15] : memref<512x4xf32, #tpu.memory_space<vmem>>, vector<512x4xf32>
    %c0_16 = arith.constant 0 : index
    %c0_17 = arith.constant 0 : index
    %15 = vector.load %arg8[%c0_16, %c0_17] : memref<4x4xf32, #tpu.memory_space<vmem>>, vector<4x4xf32>
    %cst_18 = arith.constant dense<0.000000e+00> : vector<512x4xf32>
    %16 = tpu.matmul %14, %15, %cst_18 {dimension_numbers = #tpu.dot_dimension_numbers<[1], [0], [0], [1], [0, 0, 1, 1], [], []>} : vector<512x4xf32>, vector<4x4xf32>, vector<512x4xf32> -> vector<512x4xf32>
    %17 = arith.addf %13, %16 : vector<512x4xf32>
    %c0_19 = arith.constant 0 : index
    %c0_20 = arith.constant 0 : index
    %18 = vector.load %arg9[%c0_19, %c0_20] : memref<1x4xf32, #tpu.memory_space<vmem>>, vector<1x4xf32>
    %19 = vector.broadcast %18 : vector<1x4xf32> to vector<512x4xf32>
    %20 = arith.addf %17, %19 : vector<512x4xf32>
    %cst_21 = arith.constant 0.000000e+00 : f32
    %21 = vector.broadcast %cst_21 : f32 to vector<512x4xf32>
    %22 = arith.maximumf %20, %21 : vector<512x4xf32>
    %c0_22 = arith.constant 0 : index
    %c0_23 = arith.constant 0 : index
    %23 = vector.load %arg10[%c0_22, %c0_23] : memref<512x4xf32, #tpu.memory_space<vmem>>, vector<512x4xf32>
    tpu.vector_store %arg10[%c0_22, %c0_23], %22 {strides = array<i32>} : memref<512x4xf32, #tpu.memory_space<vmem>>, vector<512x4xf32>,
    return
  }
  func.func @transform_0(%arg0: i32) -> (i32, i32) {
    %c0_i32 = arith.constant 0 : i32
    %c0_i32_0 = arith.constant 0 : i32
    return %arg0, %c0_i32 : i32, i32
  }
  func.func @transform_1(%arg0: i32) -> (i32, i32) {
    %c0_i32 = arith.constant 0 : i32
    %c0_i32_0 = arith.constant 0 : i32
    return %arg0, %c0_i32 : i32, i32
  }
  func.func @transform_2(%arg0: i32) -> (i32, i32) {
    %c0_i32 = arith.constant 0 : i32
    %c0_i32_0 = arith.constant 0 : i32
    return %arg0, %c0_i32 : i32, i32
  }
  func.func @transform_3(%arg0: i32) -> (i32, i32) {
    %c0_i32 = arith.constant 0 : i32
    %c0_i32_0 = arith.constant 0 : i32
    %c0_i32_1 = arith.constant 0 : i32
    return %c0_i32, %c0_i32_0 : i32, i32
  }
  func.func @transform_4(%arg0: i32) -> (i32, i32) {
    %c0_i32 = arith.constant 0 : i32
    %c0_i32_0 = arith.constant 0 : i32
    %c0_i32_1 = arith.constant 0 : i32
    return %c0_i32, %c0_i32_0 : i32, i32
  }
  func.func @transform_5(%arg0: i32) -> (i32, i32) {
    %c0_i32 = arith.constant 0 : i32
    %c0_i32_0 = arith.constant 0 : i32
    %c0_i32_1 = arith.constant 0 : i32
    return %c0_i32, %c0_i32_0 : i32, i32
  }
  func.func @transform_6(%arg0: i32) -> (i32, i32) {
    %c0_i32 = arith.constant 0 : i32
    %c0_i32_0 = arith.constant 0 : i32
    %c0_i32_1 = arith.constant 0 : i32
    return %c0_i32, %c0_i32_0 : i32, i32
  }
  func.func @transform_7(%arg0: i32) -> (i32, i32) {
    %c0_i32 = arith.constant 0 : i32
    %c0_i32_0 = arith.constant 0 : i32
    %c0_i32_1 = arith.constant 0 : i32
    return %c0_i32, %c0_i32_0 : i32, i32
  }
  func.func @transform_8(%arg0: i32) -> (i32, i32) {
    %c0_i32 = arith.constant 0 : i32
    %c0_i32_0 = arith.constant 0 : i32
    %c0_i32_1 = arith.constant 0 : i32
    return %c0_i32, %c0_i32_0 : i32, i32
  }
  func.func @transform_9(%arg0: i32) -> (i32, i32) {
    %c0_i32 = arith.constant 0 : i32
    %c0_i32_0 = arith.constant 0 : i32
    return %arg0, %c0_i32 : i32, i32
  }
}

</mosaic_0001>

<bundles_post_ra>
// kernel: fused_height_forward.3
= control target key start
LH: loop header
LB: loop body
LE: loop exit
PB: predicated region body
PF: predicated region fallthrough
CT: control target
= control target key end

     0   :  { %8 = vsyncpa [#allocation3], 0  ;;  %s106_s0 = inlined_call_operand.vmem [shape: f32[2], index: 0, kind: input, shape index: {}]   ;;  %s107_s1 = inlined_call_operand.vmem [shape: f32[16,128], index: 1, kind: input, shape index: {}]   ;;  %s108_s2 = inlined_call_operand.vmem [shape: f32[16,128], index: 2, kind: input, shape index: {}]   ;;  %s109_s3 = inlined_call_operand.vmem [shape: f32[16,128], index: 3, kind: output, shape index: {}]  }
   0x1   :  { %s15_s14 = sshll.u32 %s106_s0, 4  ;;  %s16_s14 = int_to_ptr.vmem [resolvable:$true] %s15_s14 }
   0x2   :  { %s50_s15 = scalar_lea.vmem %s16_s14, 16  ;;  %p55_p1 = scmp.lt.s32.totalorder %s16_s14, %s16_s14 }
   0x3   :  { %p51_p0 = scmp.ne.s32.totalorder %s16_s14, %s50_s15  ;;  %p56_p2 = scmp.lt.s32.totalorder %s50_s15, %s50_s15 }
   0x5   :  { %p57_p3 = por %p56_p2, %p55_p1 }
   0x7   :  { %p58_p4 = pnand %p57_p3, %p51_p0 }
   0x9   :  { %61 = shalt.err (!%p58_p4)
}
   0xa   :  { %s64_s16 = smov [#allocation2]  }
   0xb   :  { %18 = dma.vmem_to_smem %s16_s14, 16, %s64_s16, [#allocation3]  }
   0xc   :  { %62 = dma.done.wait [#allocation3], 16  }
   0xd   :  { %63 = vsyncadd [#allocation3], 4294967280 }
   0xe   :  { %26 = sfence }
   0xf   :  { %s27_s17 = sld [smem:[#allocation2]]  ;;  %v29_v0 = vld [vmem:[%s107_s1] sm:$0xff]  ;;  %v30_v1 = vld [vmem:[%s107_s1 + $0x8] sm:$0xff] }
  0x10   :  { %s48_s18 = sld [smem:[#allocation2 + $0x1]]  ;;  %v34_v2 = vld [vmem:[%s108_s2] sm:$0xff]  ;;  %v35_v3 = vld [vmem:[%s108_s2 + $0x8] sm:$0xff] }
  0x15   :  { %v31_v4 = vstv %s27_s17 }
  0x16   :  { %v32_v5 = vmul.f32 %v31_v4, %v29_v0  ;;  %v36_v6 = vstv %s48_s18  ;;  %v33_v7 = vmul.f32 %v31_v4, %v30_v1 }
  0x17   :  { %v37_v8 = vmul.f32 %v36_v6, %v34_v2  ;;  %v38_v9 = vmul.f32 %v36_v6, %v35_v3 }
  0x19   :  { %v39_v10 = vadd.f32 %v37_v8, %v32_v5  ;;  %v40_v11 = vadd.f32 %v38_v9, %v33_v7 }
  0x1b   :  { %41 = vst [vmem:[%s109_s3] sm:$0xff] %v39_v10  ;;  %42 = vst [vmem:[%s109_s3 + $0x8] sm:$0xff] %v40_v11 }
  0x1c   :  { %47 = vsyncpa [#allocation3], 1 }

// kernel: fused_height_forward.4
= control target key start
LH: loop header
LB: loop body
LE: loop exit
PB: predicated region body
PF: predicated region fallthrough
CT: control target
= control target key end

     0   :  { %vm283_vm0 = vcmask 1043456   ;;  %vm90_vm1 = vcmask 293888   ;;  %vm1123_vm3 = vcmask 220160   ;;  %s2714_s1 = inlined_call_operand.vmem [shape: f32[36,27], index: 1, kind: input, shape index: {}]   ;;  %s2715_s0 = inlined_call_operand.vmem [shape: f32[512,36], index: 0, kind: input, shape index: {}]   ;;  %s2716_s2 = inlined_call_operand.vmem [shape: f32[1,27], index: 2, kind: input, shape index: {}]   ;;  %s2717_s3 = inlined_call_operand.vmem [shape: f32[512,27], index: 3, kind: output, shape index: {}]  }
   0x1   :  { %v82_v0 = vld [vmem:[%s2714_s1 + $0x20] sm:$0xf]  ;;  %v81_v1 = vld [vmem:[%s2714_s1 + $0x18] sm:$0xff]  ;;  %v80_v2 = vld [vmem:[%s2714_s1 + $0x10] sm:$0xff] }
   0x2   :  { %1327 = vmatprep.subr.msk.mxu0 %vm283_vm0, %v82_v0  ;;  %1433 = vmatprep.subr.msk.mxu1 %vm283_vm0, %v82_v0  ;;  %v79_v3 = vld [vmem:[%s2714_s1 + $0x8] sm:$0xff]  ;;  %v78_v4 = vld [vmem:[%s2714_s1] sm:$0xff]  ;;  %v16_v9 = vld [vmem:[%s2715_s0 + $0x10] sm:$0xff] }
   0x3   :  { %1328 = vmatpush3.msk.msra.mxu0 %vm283_vm0, %v82_v0  ;;  %1438 = vmatpush3.msk.msra.mxu1 %vm283_vm0, %v82_v0  ;;  %v14_v5 = vld [vmem:[%s2715_s0] sm:$0xff]  ;;  %v15_v7 = vld [vmem:[%s2715_s0 + $0x8] sm:$0xff]  ;;  %v48_v10 = vld [vmem:[%s2715_s0 + $0x110] sm:$0xff] }
   0x4   :  { %1329 = vmatprep.subr.mxu0 %v81_v1  ;;  %1434 = vmatprep.subr.mxu1 %v81_v1  ;;  %v46_v6 = vld [vmem:[%s2715_s0 + $0x100] sm:$0xff]  ;;  %v47_v8 = vld [vmem:[%s2715_s0 + $0x108] sm:$0xff]  ;;  %v17_v11 = vld [vmem:[%s2715_s0 + $0x18] sm:$0xff] }
   0x5   :  { %1330 = vmatpush3.msra.mxu0 %v81_v1  ;;  %1439 = vmatpush3.msra.mxu1 %v81_v1  ;;  %v49_v12 = vld [vmem:[%s2715_s0 + $0x118] sm:$0xff]  ;;  %v18_v13 = vld [vmem:[%s2715_s0 + $0x20] sm:$0xff]  ;;  %v19_v15 = vld [vmem:[%s2715_s0 + $0x28] sm:$0xff] }
   0x6   :  { %1331 = vmatprep.subr.mxu0 %v80_v2  ;;  %1435 = vmatprep.subr.mxu1 %v80_v2  ;;  %v50_v14 = vld [vmem:[%s2715_s0 + $0x120] sm:$0xff]  ;;  %v51_v16 = vld [vmem:[%s2715_s0 + $0x128] sm:$0xff]  ;;  %v20_v17 = vld [vmem:[%s2715_s0 + $0x30] sm:$0xff] }
   0x7   :  { %1332 = vmatpush3.msra.mxu0 %v80_v2  ;;  %1440 = vmatpush3.msra.mxu1 %v80_v2  ;;  %v52_v18 = vld [vmem:[%s2715_s0 + $0x130] sm:$0xff]  ;;  %v21_v19 = vld [vmem:[%s2715_s0 + $0x38] sm:$0xff]  ;;  %v22_v21 = vld [vmem:[%s2715_s0 + $0x40] sm:$0xff] }
   0x8   :  { %1333 = vmatprep.subr.mxu0 %v79_v3  ;;  %1436 = vmatprep.subr.mxu1 %v79_v3  ;;  %v53_v20 = vld [vmem:[%s2715_s0 + $0x138] sm:$0xff]  ;;  %v54_v22 = vld [vmem:[%s2715_s0 + $0x140] sm:$0xff]  ;;  %v23_v23 = vld [vmem:[%s2715_s0 + $0x48] sm:$0xff] }
   0x9   :  { %1334 = vmatpush3.msra.mxu0 %v79_v3  ;;  %1441 = vmatpush3.msra.mxu1 %v79_v3  ;;  %v55_v24 = vld [vmem:[%s2715_s0 + $0x148] sm:$0xff]  ;;  %v24_v25 = vld [vmem:[%s2715_s0 + $0x50] sm:$0xff]  ;;  %v25_v27 = vld [vmem:[%s2715_s0 + $0x58] sm:$0xff] }
   0xa   :  { %1335 = vmatprep.subr.mxu0 %v78_v4  ;;  %1437 = vmatprep.subr.mxu1 %v78_v4  ;;  %v56_v26 = vld [vmem:[%s2715_s0 + $0x150] sm:$0xff]  ;;  %v57_v28 = vld [vmem:[%s2715_s0 + $0x158] sm:$0xff]  ;;  %v26_v29 = vld [vmem:[%s2715_s0 + $0x60] sm:$0xff] }
   0xb   :  { %1336 = vmatpush3.msra.mxu0 %v78_v4  ;;  %1442 = vmatpush3.msra.mxu1 %v78_v4  ;;  %v58_v30 = vld [vmem:[%s2715_s0 + $0x160] sm:$0xff]  ;;  %v27_v31 = vld [vmem:[%s2715_s0 + $0x68] sm:$0xff]  ;;  %v28_v33 = vld [vmem:[%s2715_s0 + $0x70] sm:$0xff] }
   0xc   :  { %1337 = vmatprep.mubr.msk.f32.mxu0 %vm90_vm1, %v14_v5  ;;  %1385 = vmatprep.mubr.msk.f32.mxu1 %vm90_vm1, %v46_v6  ;;  %v59_v32 = vld [vmem:[%s2715_s0 + $0x168] sm:$0xff]  ;;  %v60_v34 = vld [vmem:[%s2715_s0 + $0x170] sm:$0xff]  ;;  %v29_v35 = vld [vmem:[%s2715_s0 + $0x78] sm:$0xff] }
   0xd   :  { %1338 = vmatmul.mubr.msk.f32.vlgmr.msra.gmra.mxu0 %vm90_vm1, %v15_v7  ;;  %1386 = vmatmul.mubr.msk.f32.vlgmr.msra.gmra.mxu1 %vm90_vm1, %v47_v8  ;;  %v61_v36 = vld [vmem:[%s2715_s0 + $0x178] sm:$0xff]  ;;  %v30_v37 = vld [vmem:[%s2715_s0 + $0x80] sm:$0xff]  ;;  %v31_v39 = vld [vmem:[%s2715_s0 + $0x88] sm:$0xff] }
   0xe   :  { %1340 = vmatprep.mubr.msk.f32.mxu0 %vm90_vm1, %v16_v9  ;;  %1388 = vmatprep.mubr.msk.f32.mxu1 %vm90_vm1, %v48_v10  ;;  %v62_v38 = vld [vmem:[%s2715_s0 + $0x180] sm:$0xff]  ;;  %v63_v40 = vld [vmem:[%s2715_s0 + $0x188] sm:$0xff]  ;;  %v32_v41 = vld [vmem:[%s2715_s0 + $0x90] sm:$0xff] }
   0xf   :  { %v64_v42 = vld [vmem:[%s2715_s0 + $0x190] sm:$0xff]  ;;  %v33_v43 = vld [vmem:[%s2715_s0 + $0x98] sm:$0xff]  ;;  %v34_v45 = vld [vmem:[%s2715_s0 + $0xa0] sm:$0xff] }
  0x10   :  { %v65_v44 = vld [vmem:[%s2715_s0 + $0x198] sm:$0xff]  ;;  %v66_v46 = vld [vmem:[%s2715_s0 + $0x1a0] sm:$0xff]  ;;  %v35_v47 = vld [vmem:[%s2715_s0 + $0xa8] sm:$0xff] }
  0x11   :  { %1341 = vmatmul.mubr.msk.f32.gmra.mxu0 %vm90_vm1, %v17_v11  ;;  %1389 = vmatmul.mubr.msk.f32.gmra.mxu1 %vm90_vm1, %v49_v12  ;;  %v67_v48 = vld [vmem:[%s2715_s0 + $0x1a8] sm:$0xff]  ;;  %v36_v49 = vld [vmem:[%s2715_s0 + $0xb0] sm:$0xff]  ;;  %v37_v51 = vld [vmem:[%s2715_s0 + $0xb8] sm:$0xff] }
  0x12   :  { %1343 = vmatprep.mubr.msk.f32.mxu0 %vm90_vm1, %v18_v13  ;;  %1391 = vmatprep.mubr.msk.f32.mxu1 %vm90_vm1, %v50_v14  ;;  %v68_v50 = vld [vmem:[%s2715_s0 + $0x1b0] sm:$0xff]  ;;  %v69_v52 = vld [vmem:[%s2715_s0 + $0x1b8] sm:$0xff]  ;;  %v38_v53 = vld [vmem:[%s2715_s0 + $0xc0] sm:$0xff] }
  0x13   :  { %v70_v54 = vld [vmem:[%s2715_s0 + $0x1c0] sm:$0xff]  ;;  %v39_v55 = vld [vmem:[%s2715_s0 + $0xc8] sm:$0xff]  ;;  %v40_v57 = vld [vmem:[%s2715_s0 + $0xd0] sm:$0xff] }
  0x14   :  { %v71_v56 = vld [vmem:[%s2715_s0 + $0x1c8] sm:$0xff]  ;;  %v72_v58 = vld [vmem:[%s2715_s0 + $0x1d0] sm:$0xff]  ;;  %v41_v59 = vld [vmem:[%s2715_s0 + $0xd8] sm:$0xff] }
  0x15   :  { %1344 = vmatmul.mubr.msk.f32.gmra.mxu0 %vm90_vm1, %v19_v15  ;;  %1392 = vmatmul.mubr.msk.f32.gmra.mxu1 %vm90_vm1, %v51_v16  ;;  %v73_v60 = vld [vmem:[%s2715_s0 + $0x1d8] sm:$0xff]  ;;  %v42_v61 = vld [vmem:[%s2715_s0 + $0xe0] sm:$0xff]  ;;  %v43_v63 = vld [vmem:[%s2715_s0 + $0xe8] sm:$0xff] }
  0x16   :  { %1346 = vmatprep.mubr.msk.f32.mxu0 %vm90_vm1, %v20_v17  ;;  %1394 = vmatprep.mubr.msk.f32.mxu1 %vm90_vm1, %v52_v18  ;;  %v74_v62 = vld [vmem:[%s2715_s0 + $0x1e0] sm:$0xff]  ;;  %v75_v0 = vld [vmem:[%s2715_s0 + $0x1e8] sm:$0xff]  ;;  %v44_v1 = vld [vmem:[%s2715_s0 + $0xf0] sm:$0xff] }
  0x17   :  { %v76_v2 = vld [vmem:[%s2715_s0 + $0x1f0] sm:$0xff]  ;;  %v45_v3 = vld [vmem:[%s2715_s0 + $0xf8] sm:$0xff]  ;;  %v1994_v5 = vld [vmem:[%s2716_s2] ss:$0 sm:$0xff] }
  0x18   :  { %v77_v4 = vld [vmem:[%s2715_s0 + $0x1f8] sm:$0xff] }
  0x19   :  { %1347 = vmatmul.mubr.msk.f32.gmra.mxu0 %vm90_vm1, %v21_v19  ;;  %1395 = vmatmul.mubr.msk.f32.gmra.mxu1 %vm90_vm1, %v53_v20 }
  0x1a   :  { %1349 = vmatprep.mubr.msk.f32.mxu0 %vm90_vm1, %v22_v21  ;;  %1397 = vmatprep.mubr.msk.f32.mxu1 %vm90_vm1, %v54_v22 }
  0x1d   :  { %1350 = vmatmul.mubr.msk.f32.gmra.mxu0 %vm90_vm1, %v23_v23  ;;  %1398 = vmatmul.mubr.msk.f32.gmra.mxu1 %vm90_vm1, %v55_v24 }
  0x1e   :  { %1352 = vmatprep.mubr.msk.f32.mxu0 %vm90_vm1, %v24_v25  ;;  %1400 = vmatprep.mubr.msk.f32.mxu1 %vm90_vm1, %v56_v26 }
  0x21   :  { %1353 = vmatmul.mubr.msk.f32.gmra.mxu0 %vm90_vm1, %v25_v27  ;;  %1401 = vmatmul.mubr.msk.f32.gmra.mxu1 %vm90_vm1, %v57_v28 }
  0x22   :  { %1355 = vmatprep.mubr.msk.f32.mxu0 %vm90_vm1, %v26_v29  ;;  %1403 = vmatprep.mubr.msk.f32.mxu1 %vm90_vm1, %v58_v30 }
  0x25   :  { %1356 = vmatmul.mubr.msk.f32.gmra.mxu0 %vm90_vm1, %v27_v31  ;;  %1404 = vmatmul.mubr.msk.f32.gmra.mxu1 %vm90_vm1, %v59_v32 }
  0x26   :  { %1358 = vmatprep.mubr.msk.f32.mxu0 %vm90_vm1, %v28_v33  ;;  %1406 = vmatprep.mubr.msk.f32.mxu1 %vm90_vm1, %v60_v34 }
  0x29   :  { %1359 = vmatmul.mubr.msk.f32.gmra.mxu0 %vm90_vm1, %v29_v35  ;;  %1407 = vmatmul.mubr.msk.f32.gmra.mxu1 %vm90_vm1, %v61_v36 }
  0x2a   :  { %1361 = vmatprep.mubr.msk.f32.mxu0 %vm90_vm1, %v30_v37  ;;  %1409 = vmatprep.mubr.msk.f32.mxu1 %vm90_vm1, %v62_v38 }
  0x2d   :  { %1362 = vmatmul.mubr.msk.f32.gmra.mxu0 %vm90_vm1, %v31_v39  ;;  %1410 = vmatmul.mubr.msk.f32.gmra.mxu1 %vm90_vm1, %v63_v40 }
  0x2e   :  { %1364 = vmatprep.mubr.msk.f32.mxu0 %vm90_vm1, %v32_v41  ;;  %1412 = vmatprep.mubr.msk.f32.mxu1 %vm90_vm1, %v64_v42 }
  0x31   :  { %1365 = vmatmul.mubr.msk.f32.gmra.mxu0 %vm90_vm1, %v33_v43  ;;  %1413 = vmatmul.mubr.msk.f32.gmra.mxu1 %vm90_vm1, %v65_v44 }
  0x32   :  { %1367 = vmatprep.mubr.msk.f32.mxu0 %vm90_vm1, %v34_v45  ;;  %1415 = vmatprep.mubr.msk.f32.mxu1 %vm90_vm1, %v66_v46 }
  0x35   :  { %1368 = vmatmul.mubr.msk.f32.gmra.mxu0 %vm90_vm1, %v35_v47  ;;  %1416 = vmatmul.mubr.msk.f32.gmra.mxu1 %vm90_vm1, %v67_v48 }
  0x36   :  { %1370 = vmatprep.mubr.msk.f32.mxu0 %vm90_vm1, %v36_v49  ;;  %1418 = vmatprep.mubr.msk.f32.mxu1 %vm90_vm1, %v68_v50 }
  0x39   :  { %1371 = vmatmul.mubr.msk.f32.gmra.mxu0 %vm90_vm1, %v37_v51  ;;  %1419 = vmatmul.mubr.msk.f32.gmra.mxu1 %vm90_vm1, %v69_v52 }
  0x3a   :  { %1373 = vmatprep.mubr.msk.f32.mxu0 %vm90_vm1, %v38_v53  ;;  %1421 = vmatprep.mubr.msk.f32.mxu1 %vm90_vm1, %v70_v54 }
  0x3d   :  { %1374 = vmatmul.mubr.msk.f32.gmra.mxu0 %vm90_vm1, %v39_v55  ;;  %1422 = vmatmul.mubr.msk.f32.gmra.mxu1 %vm90_vm1, %v71_v56 }
  0x3e   :  { %1376 = vmatprep.mubr.msk.f32.mxu0 %vm90_vm1, %v40_v57  ;;  %1424 = vmatprep.mubr.msk.f32.mxu1 %vm90_vm1, %v72_v58 }
  0x41   :  { %1377 = vmatmul.mubr.msk.f32.gmra.mxu0 %vm90_vm1, %v41_v59  ;;  %1425 = vmatmul.mubr.msk.f32.gmra.mxu1 %vm90_vm1, %v73_v60 }
  0x42   :  { %1379 = vmatprep.mubr.msk.f32.mxu0 %vm90_vm1, %v42_v61  ;;  %1427 = vmatprep.mubr.msk.f32.mxu1 %vm90_vm1, %v74_v62 }
  0x45   :  { %1380 = vmatmul.mubr.msk.f32.gmra.mxu0 %vm90_vm1, %v43_v63  ;;  %1428 = vmatmul.mubr.msk.f32.gmra.mxu1 %vm90_vm1, %v75_v0 }
  0x46   :  { %1382 = vmatprep.mubr.msk.f32.mxu0 %vm90_vm1, %v44_v1  ;;  %1430 = vmatprep.mubr.msk.f32.mxu1 %vm90_vm1, %v76_v2 }
  0x49   :  { %1383 = vmatmul.mubr.msk.f32.gmra.mxu0 %vm90_vm1, %v45_v3  ;;  %1431 = vmatmul.mubr.msk.f32.gmra.mxu1 %vm90_vm1, %v77_v4 }
  0xcd   :  { %v1339_v6 = vpop.f32.mrf.mxu0  ;;  %v1387_v7 = vpop.f32.mrf.mxu1 }
  0xce   :  { %v1997_v8 = vadd.f32 %v1339_v6, %v1994_v5  ;;  %v2000_v9 = vadd.f32 %v1387_v7, %v1994_v5 }
  0xcf   :  { %v353_v10 = vpop.f32.mrf.mxu0  ;;  %v513_v11 = vpop.f32.mrf.mxu1 }
  0xd0   :  { %v676_v12 = vsub.f32 0.0, %v1997_v8  ;;  %v708_v13 = vsub.f32 0.0, %v2000_v9  ;;  %v2005_v14 = vadd.f32 %v1994_v5, %v353_v10  ;;  %v2008_v15 = vadd.f32 %v1994_v5, %v513_v11 }
  0xd1   :  { %v1342_v16 = vpop.f32.mrf.mxu0  ;;  %v1390_v17 = vpop.f32.mrf.mxu1  ;;  %v672_v10 = vlaneseq }
  0xd2   :  { %v741_v18 = vmul.f32 1.442695, %v676_v12  ;;  %v805_v19 = vmul.f32 1.442695, %v708_v13  ;;  %v675_v20 = vsub.f32 0.0, %v2005_v14  ;;  %v707_v21 = vsub.f32 0.0, %v2008_v15 }
  0xd3   :  { %v2013_v22 = vadd.f32 %v1342_v16, %v1994_v5  ;;  %v2016_v23 = vadd.f32 %v1390_v17, %v1994_v5  ;;  %v363_v24 = vpop.f32.mrf.mxu0  ;;  %v523_v25 = vpop.f32.mrf.mxu1 }
  0xd4   :  { %1443 = vpow2.f32 %v741_v18  ;;  %v739_v26 = vmul.f32 1.442695, %v675_v20  ;;  %v803_v27 = vmul.f32 1.442695, %v707_v21  ;;  %v2019_v28 = vadd.f32 %v1994_v5, %v363_v24 }
  0xd5   :  { %1445 = vpow2.f32 %v805_v19  ;;  %v678_v29 = vsub.f32 0.0, %v2013_v22  ;;  %v710_v30 = vsub.f32 0.0, %v2016_v23  ;;  %v2024_v31 = vadd.f32 %v1994_v5, %v523_v25  ;;  %v1345_v32 = vpop.f32.mrf.mxu0  ;;  %v1393_v33 = vpop.f32.mrf.mxu1 }
  0xd6   :  { %1447 = vpow2.f32 %v739_v26  ;;  %v677_v34 = vsub.f32 0.0, %v2019_v28  ;;  %v2028_v35 = vadd.f32 %v1345_v32, %v1994_v5  ;;  %v2031_v36 = vadd.f32 %v1393_v33, %v1994_v5 }
  0xd7   :  { %1449 = vpow2.f32 %v803_v27  ;;  %v745_v37 = vmul.f32 1.442695, %v678_v29  ;;  %v809_v38 = vmul.f32 1.442695, %v710_v30  ;;  %v709_v39 = vsub.f32 0.0, %v2024_v31  ;;  %v373_v40 = vpop.f32.mrf.mxu0  ;;  %v533_v41 = vpop.f32.mrf.mxu1 }
  0xd8   :  { %v743_v42 = vmul.f32 1.442695, %v677_v34  ;;  %v680_v43 = vsub.f32 0.0, %v2028_v35  ;;  %v712_v44 = vsub.f32 0.0, %v2031_v36  ;;  %v2037_v45 = vadd.f32 %v1994_v5, %v373_v40 }
  0xd9   :  { %1451 = vpow2.f32 %v745_v37  ;;  %v807_v46 = vmul.f32 1.442695, %v709_v39  ;;  %v2040_v47 = vadd.f32 %v1994_v5, %v533_v41  ;;  %v1348_v48 = vpop.f32.mrf.mxu0  ;;  %v1396_v49 = vpop.f32.mrf.mxu1  ;;  %v2060_v25 = vand.u32 127, %v672_v10 }
  0xda   :  { %1453 = vpow2.f32 %v809_v38  ;;  %v749_v50 = vmul.f32 1.442695, %v680_v43  ;;  %v813_v51 = vmul.f32 1.442695, %v712_v44  ;;  %v679_v52 = vsub.f32 0.0, %v2037_v45 }
  0xdb   :  { %1455 = vpow2.f32 %v743_v42  ;;  %v711_v53 = vsub.f32 0.0, %v2040_v47  ;;  %v2045_v54 = vadd.f32 %v1348_v48, %v1994_v5  ;;  %v2048_v55 = vadd.f32 %v1396_v49, %v1994_v5  ;;  %v383_v56 = vpop.f32.mrf.mxu0  ;;  %v543_v57 = vpop.f32.mrf.mxu1 }
  0xdc   :  { %1457 = vpow2.f32 %v807_v46  ;;  %v747_v58 = vmul.f32 1.442695, %v679_v52  ;;  %v2051_v59 = vadd.f32 %v1994_v5, %v383_v56  ;;  %v2054_v60 = vadd.f32 %v1994_v5, %v543_v57 }
  0xdd   :  { %1459 = vpow2.f32 %v749_v50  ;;  %v811_v61 = vmul.f32 1.442695, %v711_v53  ;;  %v682_v62 = vsub.f32 0.0, %v2045_v54  ;;  %v714_v63 = vsub.f32 0.0, %v2048_v55  ;;  %v1351_v0 = vpop.f32.mrf.mxu0  ;;  %v1399_v1 = vpop.f32.mrf.mxu1 }
  0xde   :  { %1461 = vpow2.f32 %v813_v51  ;;  %v681_v2 = vsub.f32 0.0, %v2051_v59  ;;  %v713_v12 = vsub.f32 0.0, %v2054_v60  ;;  %v2063_v32 = vadd.f32 %v1351_v0, %v1994_v5 }
  0xdf   :  { %1463 = vpow2.f32 %v747_v58  ;;  %v753_v3 = vmul.f32 1.442695, %v682_v62  ;;  %v817_v4 = vmul.f32 1.442695, %v714_v63  ;;  %v393_v6 = vpop.f32.mrf.mxu0  ;;  %v553_v7 = vpop.f32.mrf.mxu1  ;;  %v2066_v34 = vadd.f32 %v1399_v1, %v1994_v5 }
  0xe0   :  { %1465 = vpow2.f32 %v811_v61  ;;  %v751_v11 = vmul.f32 1.442695, %v681_v2  ;;  %v815_v27 = vmul.f32 1.442695, %v713_v12  ;;  %v2069_v39 = vadd.f32 %v1994_v5, %v393_v6 }
  0xe1   :  { %v1444_v13 = vpop.eup %1443  ;;  %1467 = vpow2.f32 %v753_v3  ;;  %v1354_v16 = vpop.f32.mrf.mxu0  ;;  %vm674_vm2 = vcmp.lt.s32.totalorder %v2060_v25, 18  ;;  %v2073_v43 = vadd.f32 %v1994_v5, %v553_v7  ;;  %v684_v49 = vsub.f32 0.0, %v2063_v32 }
  0xe2   :  { %v1446_v17 = vpop.eup %1445  ;;  %v868_v18 = vadd.f32 1.0, %v1444_v13  ;;  %1469 = vpow2.f32 %v817_v4  ;;  %v1402_v21 = vpop.f32.mrf.mxu1  ;;  %v2077_v50 = vadd.f32 %v1354_v16, %v1994_v5  ;;  %v716_v53 = vsub.f32 0.0, %v2066_v34 }
  0xe3   :  { %v1448_v19 = vpop.eup %1447  ;;  %v900_v20 = vadd.f32 1.0, %v1446_v17  ;;  %1471 = vpow2.f32 %v751_v11  ;;  %v403_v29 = vpop.f32.mrf.mxu0  ;;  %v2081_v56 = vadd.f32 %v1402_v21, %v1994_v5  ;;  %v683_v61 = vsub.f32 0.0, %v2069_v39 }
  0xe4   :  { %v1450_v24 = vpop.eup %1449  ;;  %1473 = vrcp.f32 %v868_v18  ;;  %v867_v26 = vadd.f32 1.0, %v1448_v19  ;;  %v563_v40 = vpop.f32.mrf.mxu1  ;;  %v715_v1 = vsub.f32 0.0, %v2073_v43  ;;  %v2086_v2 = vadd.f32 %v1994_v5, %v403_v29 }
  0xe5   :  { %1475 = vrcp.f32 %v900_v20  ;;  %v899_v30 = vadd.f32 1.0, %v1450_v24  ;;  %v1357_v44 = vpop.f32.mrf.mxu0  ;;  %v757_v7 = vmul.f32 1.442695, %v684_v49  ;;  %v686_v10 = vsub.f32 0.0, %v2077_v50 }
  0xe6   :  { %v1452_v33 = vpop.eup %1451  ;;  %1477 = vrcp.f32 %v867_v26  ;;  %v1405_v62 = vpop.f32.mrf.mxu1  ;;  %v821_v13 = vmul.f32 1.442695, %v716_v53  ;;  %v718_v16 = vsub.f32 0.0, %v2081_v56  ;;  %v755_v19 = vmul.f32 1.442695, %v683_v61 }
  0xe7   :  { %v1454_v37 = vpop.eup %1453  ;;  %1479 = vrcp.f32 %v899_v30  ;;  %v870_v38 = vadd.f32 1.0, %v1452_v33  ;;  %v413_v3 = vpop.f32.mrf.mxu0  ;;  %v2091_v20 = vadd.f32 %v1994_v5, %v563_v40  ;;  %v685_v29 = vsub.f32 0.0, %v2086_v2 }
  0xe8   :  { %v1456_v41 = vpop.eup %1455  ;;  %v902_v42 = vadd.f32 1.0, %v1454_v37  ;;  %1481 = vpow2.f32 %v815_v27  ;;  %v573_v21 = vpop.f32.mrf.mxu1  ;;  %v819_v27 = vmul.f32 1.442695, %v715_v1 }
  0xe9   :  { %v1458_v46 = vpop.eup %1457  ;;  %1483 = vrcp.f32 %v870_v38  ;;  %v869_v48 = vadd.f32 1.0, %v1456_v41  ;;  %v1360_v30 = vpop.f32.mrf.mxu0  ;;  %v761_v38 = vmul.f32 1.442695, %v686_v10  ;;  %v2095_v41 = vadd.f32 %v1357_v44, %v1994_v5 }
  0xea   :  { %v1460_v51 = vpop.eup %1459  ;;  %1485 = vrcp.f32 %v902_v42  ;;  %v901_v52 = vadd.f32 1.0, %v1458_v46  ;;  %v825_v46 = vmul.f32 1.442695, %v718_v16 }
  0xeb   :  { %v1462_v57 = vpop.eup %1461  ;;  %1487 = vrcp.f32 %v869_v48  ;;  %v872_v58 = vadd.f32 1.0, %v1460_v51  ;;  %v2101_v48 = vadd.f32 %v1405_v62, %v1994_v5  ;;  %v717_v51 = vsub.f32 0.0, %v2091_v20  ;;  %v423_v61 = vpop.f32.mrf.mxu0 }
  0xec   :  { %v1464_v63 = vpop.eup %1463  ;;  %1489 = vrcp.f32 %v901_v52  ;;  %v904_v0 = vadd.f32 1.0, %v1462_v57  ;;  %v1408_v52 = vpop.f32.mrf.mxu1 }
  0xed   :  { %v1466_v4 = vpop.eup %1465  ;;  %1491 = vrcp.f32 %v872_v58  ;;  %v871_v6 = vadd.f32 1.0, %v1464_v63  ;;  %v759_v58 = vmul.f32 1.442695, %v685_v29 }
  0xee   :  { %v1468_v11 = vpop.eup %1467  ;;  %1493 = vrcp.f32 %v904_v0  ;;  %v903_v12 = vadd.f32 1.0, %v1466_v4  ;;  %v688_v0 = vsub.f32 0.0, %v2095_v41  ;;  %v720_v4 = vsub.f32 0.0, %v2101_v48 }
  0xef   :  { %v1470_v17 = vpop.eup %1469  ;;  %1495 = vrcp.f32 %v871_v6  ;;  %v874_v18 = vadd.f32 1.0, %v1468_v11  ;;  %v2141_v6 = vadd.f32 %v1408_v52, %v1994_v5  ;;  %v2148_v11 = vadd.f32 %v1994_v5, %v423_v61 }
  0xf0   :  { %v1472_v24 = vpop.eup %1471  ;;  %1497 = vrcp.f32 %v903_v12  ;;  %v906_v26 = vadd.f32 1.0, %v1470_v17  ;;  %v583_v12 = vpop.f32.mrf.mxu1  ;;  %v823_v17 = vmul.f32 1.442695, %v717_v51  ;;  %v829_v29 = vmul.f32 1.442695, %v720_v4 }
  0xf1   :  { %v1474_v33 = vpop.eup %1473  ;;  %1499 = vrcp.f32 %v874_v18  ;;  %v873_v37 = vadd.f32 1.0, %v1472_v24  ;;  %v2158_v18 = vpop.f32.mrf.mxu0  ;;  %v765_v24 = vmul.f32 1.442695, %v688_v0 }
  0xf2   :  { %v1476_v42 = vpop.eup %1475  ;;  %v1060_v40 = vsel %vm674_vm2, %v1997_v8, %v1474_v33  ;;  %1501 = vrcp.f32 %v906_v26  ;;  %v2112_v8 = vadd.f32 %v1994_v5, %v413_v3 }
  0xf3   :  { %v1478_v49 = vpop.eup %1477  ;;  %1125 = vst.msk [vmem:[%s2717_s3 + $0x8] sm:$0xff] %vm1123_vm3, %v1060_v40  ;;  %v1092_v44 = vsel %vm674_vm2, %v2000_v9, %v1476_v42  ;;  %1503 = vrcp.f32 %v873_v37  ;;  %v2122_v9 = vadd.f32 %v1994_v5, %v573_v21  ;;  %v1411_v42 = vpop.f32.mrf.mxu1 }
  0xf4   :  { %v1480_v53 = vpop.eup %1479  ;;  %1157 = vst.msk [vmem:[%s2717_s3 + $0x108] sm:$0xff] %vm1123_vm3, %v1092_v44  ;;  %v1059_v57 = vsel %vm674_vm2, %v2005_v14, %v1478_v49  ;;  %1505 = vpow2.f32 %v757_v7  ;;  %v2133_v14 = vadd.f32 %v1360_v30, %v1994_v5  ;;  %v687_v10 = vsub.f32 0.0, %v2112_v8 }
  0xf5   :  { %v1482_v62 = vpop.eup %1481  ;;  %1124 = vst.msk [vmem:[%s2717_s3] sm:$0xff] %vm1123_vm3, %v1059_v57  ;;  %v1091_v63 = vsel %vm674_vm2, %v2008_v15, %v1480_v53  ;;  %1507 = vpow2.f32 %v821_v13  ;;  %v722_v30 = vsub.f32 0.0, %v2141_v6  ;;  %v2192_v49 = vadd.f32 %v1994_v5, %v583_v12 }
  0xf6   :  { %v1484_v1 = vpop.eup %1483  ;;  %1156 = vst.msk [vmem:[%s2717_s3 + $0x100] sm:$0xff] %vm1123_vm3, %v1091_v63  ;;  %v905_v3 = vadd.f32 1.0, %v1482_v62  ;;  %1509 = vpow2.f32 %v755_v19  ;;  %v763_v37 = vmul.f32 1.442695, %v687_v10  ;;  %v593_v62 = vpop.f32.mrf.mxu1 }
  0xf7   :  { %v1486_v15 = vpop.eup %1485  ;;  %v1062_v7 = vsel %vm674_vm2, %v2013_v22, %v1484_v1  ;;  %1511 = vpow2.f32 %v819_v27  ;;  %v719_v22 = vsub.f32 0.0, %v2122_v9  ;;  %v833_v57 = vmul.f32 1.442695, %v722_v30 }
  0xf8   :  { %v1488_v13 = vpop.eup %1487  ;;  %1127 = vst.msk [vmem:[%s2717_s3 + $0x18] sm:$0xff] %vm1123_vm3, %v1062_v7  ;;  %v1094_v16 = vsel %vm674_vm2, %v2016_v23, %v1486_v15  ;;  %1513 = vrcp.f32 %v905_v3  ;;  %v690_v23 = vsub.f32 0.0, %v2133_v14  ;;  %v721_v0 = vsub.f32 0.0, %v2192_v49  ;;  %v1414_v10 = vpop.f32.mrf.mxu1 }
  0xf9   :  { %v1490_v19 = vpop.eup %1489  ;;  %1159 = vst.msk [vmem:[%s2717_s3 + $0x118] sm:$0xff] %vm1123_vm3, %v1094_v16  ;;  %v1061_v21 = vsel %vm674_vm2, %v2019_v28, %v1488_v13  ;;  %1515 = vpow2.f32 %v761_v38  ;;  %v689_v38 = vsub.f32 0.0, %v2148_v11 }
  0xfa   :  { %v1492_v26 = vpop.eup %1491  ;;  %1126 = vst.msk [vmem:[%s2717_s3 + $0x10] sm:$0xff] %vm1123_vm3, %v1061_v21  ;;  %v1093_v27 = vsel %vm674_vm2, %v2024_v31, %v1490_v19  ;;  %1517 = vpow2.f32 %v825_v46  ;;  %v827_v46 = vmul.f32 1.442695, %v719_v22  ;;  %v769_v52 = vmul.f32 1.442695, %v690_v23 }
  0xfb   :  { %v1494_v33 = vpop.eup %1493  ;;  %1158 = vst.msk [vmem:[%s2717_s3 + $0x110] sm:$0xff] %vm1123_vm3, %v1093_v27  ;;  %v1064_v28 = vsel %vm674_vm2, %v2028_v35, %v1492_v26  ;;  %1519 = vpow2.f32 %v759_v58  ;;  %v433_v35 = vpop.f32.mrf.mxu0  ;;  %v767_v61 = vmul.f32 1.442695, %v689_v38  ;;  %v831_v16 = vmul.f32 1.442695, %v721_v0 }
  0xfc   :  { %v1496_v31 = vpop.eup %1495  ;;  %1129 = vst.msk [vmem:[%s2717_s3 + $0x28] sm:$0xff] %vm1123_vm3, %v1064_v28  ;;  %v1096_v40 = vsel %vm674_vm2, %v2031_v36, %v1494_v33  ;;  %1521 = vpow2.f32 %v823_v17  ;;  %v2236_v19 = vadd.f32 %v2158_v18, %v1994_v5  ;;  %v2242_v23 = vadd.f32 %v1411_v42, %v1994_v5 }
  0xfd   :  { %v1498_v44 = vpop.eup %1497  ;;  %1161 = vst.msk [vmem:[%s2717_s3 + $0x128] sm:$0xff] %vm1123_vm3, %v1096_v40  ;;  %v1063_v51 = vsel %vm674_vm2, %v2037_v45, %v1496_v31  ;;  %1523 = vpow2.f32 %v765_v24  ;;  %v1366_v1 = vpop.f32.mrf.mxu0  ;;  %v2249_v18 = vadd.f32 %v1994_v5, %v433_v35 }
  0xfe   :  { %v1500_v53 = vpop.eup %1499  ;;  %1128 = vst.msk [vmem:[%s2717_s3 + $0x20] sm:$0xff] %vm1123_vm3, %v1063_v51  ;;  %v1095_v36 = vsel %vm674_vm2, %v2040_v47, %v1498_v44  ;;  %1525 = vpow2.f32 %v829_v29  ;;  %v603_v29 = vpop.f32.mrf.mxu1  ;;  %v692_v42 = vsub.f32 0.0, %v2236_v19  ;;  %v2256_v31 = vadd.f32 %v1366_v1, %v1994_v5 }
  0xff   :  { %v1502_v58 = vpop.eup %1501  ;;  %1160 = vst.msk [vmem:[%s2717_s3 + $0x120] sm:$0xff] %vm1123_vm3, %v1095_v36  ;;  %v1066_v45 = vsel %vm674_vm2, %v2045_v54, %v1500_v53  ;;  %1527 = vpow2.f32 %v763_v37  ;;  %v443_v17 = vpop.f32.mrf.mxu0  ;;  %v724_v35 = vsub.f32 0.0, %v2242_v23  ;;  %v2260_v44 = vadd.f32 %v1414_v10, %v1994_v5 }
 0x100   :  { %v1504_v63 = vpop.eup %1503  ;;  %1131 = vst.msk [vmem:[%s2717_s3 + $0x38] sm:$0xff] %vm1123_vm3, %v1066_v45  ;;  %v1098_v47 = vsel %vm674_vm2, %v2048_v55, %v1502_v58  ;;  %1529 = vpow2.f32 %v827_v46  ;;  %v691_v53 = vsub.f32 0.0, %v2249_v18  ;;  %v1417_v36 = vpop.f32.mrf.mxu1  ;;  %v773_v0 = vmul.f32 1.442695, %v692_v42 }
 0x101   :  { %v1506_v3 = vpop.eup %1505  ;;  %1163 = vst.msk [vmem:[%s2717_s3 + $0x138] sm:$0xff] %vm1123_vm3, %v1098_v47  ;;  %v1065_v54 = vsel %vm674_vm2, %v2051_v59, %v1504_v63  ;;  %1531 = vpow2.f32 %v769_v52  ;;  %v1369_v28 = vpop.f32.mrf.mxu0  ;;  %v694_v1 = vsub.f32 0.0, %v2256_v31 }
 0x102   :  { %v1508_v4 = vpop.eup %1507  ;;  %1130 = vst.msk [vmem:[%s2717_s3 + $0x30] sm:$0xff] %vm1123_vm3, %v1065_v54  ;;  %v876_v55 = vadd.f32 1.0, %v1506_v3  ;;  %1533 = vpow2.f32 %v833_v57  ;;  %v771_v10 = vmul.f32 1.442695, %v691_v53 }
 0x103   :  { %v1510_v15 = vpop.eup %1509  ;;  %v908_v7 = vadd.f32 1.0, %v1508_v4  ;;  %1535 = vpow2.f32 %v767_v61  ;;  %v2265_v61 = vadd.f32 %v1994_v5, %v443_v17  ;;  %v837_v4 = vmul.f32 1.442695, %v724_v35 }
 0x104   :  { %v1512_v12 = vpop.eup %1511  ;;  %1537 = vrcp.f32 %v876_v55  ;;  %v875_v13 = vadd.f32 1.0, %v1510_v15  ;;  %v726_v55 = vsub.f32 0.0, %v2260_v44 }
 0x105   :  { %v1514_v22 = vpop.eup %1513  ;;  %1539 = vrcp.f32 %v908_v7  ;;  %v907_v59 = vadd.f32 1.0, %v1512_v12  ;;  %v2270_v12 = vadd.f32 %v1994_v5, %v603_v29 }
 0x106   :  { %v1516_v21 = vpop.eup %1515  ;;  %v1097_v24 = vsel %vm674_vm2, %v2054_v60, %v1514_v22  ;;  %1541 = vrcp.f32 %v875_v13  ;;  %v2252_v60 = vadd.f32 %v1994_v5, %v593_v62  ;;  %v453_v62 = vpop.f32.mrf.mxu0 }
 0x107   :  { %v1518_v26 = vpop.eup %1517  ;;  %1162 = vst.msk [vmem:[%s2717_s3 + $0x130] sm:$0xff] %vm1123_vm3, %v1097_v24  ;;  %1543 = vrcp.f32 %v907_v59  ;;  %v878_v27 = vadd.f32 1.0, %v1516_v21  ;;  %v613_v13 = vpop.f32.mrf.mxu1  ;;  %v693_v59 = vsub.f32 0.0, %v2265_v61 }
 0x108   :  { %v1520_v30 = vpop.eup %1519  ;;  %v910_v33 = vadd.f32 1.0, %v1518_v26  ;;  %1545 = vpow2.f32 %v831_v16  ;;  %v723_v45 = vsub.f32 0.0, %v2252_v60  ;;  %v1372_v21 = vpop.f32.mrf.mxu0 }
 0x109   :  { %v1522_v37 = vpop.eup %1521  ;;  %1547 = vrcp.f32 %v878_v27  ;;  %v877_v38 = vadd.f32 1.0, %v1520_v30  ;;  %v777_v27 = vmul.f32 1.442695, %v694_v1  ;;  %v2274_v30 = vadd.f32 %v1369_v28, %v1994_v5 }
 0x10a   :  { %v1524_v40 = vpop.eup %1523  ;;  %1549 = vrcp.f32 %v910_v33  ;;  %v909_v46 = vadd.f32 1.0, %v1522_v37  ;;  %v835_v22 = vmul.f32 1.442695, %v723_v45  ;;  %v841_v37 = vmul.f32 1.442695, %v726_v55  ;;  %v463_v53 = vpop.f32.mrf.mxu0 }
 0x10b   :  { %v1526_v51 = vpop.eup %1525  ;;  %1551 = vrcp.f32 %v877_v38  ;;  %v880_v52 = vadd.f32 1.0, %v1524_v40  ;;  %v2280_v38 = vadd.f32 %v1417_v36, %v1994_v5  ;;  %v725_v40 = vsub.f32 0.0, %v2270_v12 }
 0x10c   :  { %v1528_v57 = vpop.eup %1527  ;;  %1553 = vrcp.f32 %v909_v46  ;;  %v912_v58 = vadd.f32 1.0, %v1526_v51  ;;  %v1420_v46 = vpop.f32.mrf.mxu1 }
 0x10d   :  { %v1530_v63 = vpop.eup %1529  ;;  %1555 = vrcp.f32 %v880_v52  ;;  %v879_v47 = vadd.f32 1.0, %v1528_v57  ;;  %v775_v52 = vmul.f32 1.442695, %v693_v59 }
 0x10e   :  { %v1532_v3 = vpop.eup %1531  ;;  %1557 = vrcp.f32 %v912_v58  ;;  %v911_v54 = vadd.f32 1.0, %v1530_v63  ;;  %v696_v58 = vsub.f32 0.0, %v2274_v30  ;;  %v728_v63 = vsub.f32 0.0, %v2280_v38 }
 0x10f   :  { %v1534_v15 = vpop.eup %1533  ;;  %1559 = vrcp.f32 %v879_v47  ;;  %v882_v7 = vadd.f32 1.0, %v1532_v3  ;;  %v2320_v47 = vadd.f32 %v1420_v46, %v1994_v5  ;;  %v2327_v3 = vadd.f32 %v1994_v5, %v463_v53 }
 0x110   :  { %v1536_v16 = vpop.eup %1535  ;;  %1561 = vrcp.f32 %v911_v54  ;;  %v914_v17 = vadd.f32 1.0, %v1534_v15  ;;  %v623_v54 = vpop.f32.mrf.mxu1  ;;  %v839_v15 = vmul.f32 1.442695, %v725_v40  ;;  %v845_v59 = vmul.f32 1.442695, %v728_v63 }
 0x111   :  { %v1538_v24 = vpop.eup %1537  ;;  %1563 = vrcp.f32 %v882_v7  ;;  %v881_v26 = vadd.f32 1.0, %v1536_v16  ;;  %v2337_v7 = vpop.f32.mrf.mxu0  ;;  %v781_v16 = vmul.f32 1.442695, %v696_v58 }
 0x112   :  { %v1540_v33 = vpop.eup %1539  ;;  %v1068_v29 = vsel %vm674_vm2, %v2063_v32, %v1538_v24  ;;  %1565 = vrcp.f32 %v914_v17  ;;  %v2291_v32 = vadd.f32 %v1994_v5, %v453_v62 }
 0x113   :  { %v1542_v42 = vpop.eup %1541  ;;  %1133 = vst.msk [vmem:[%s2717_s3 + $0x48] sm:$0xff] %vm1123_vm3, %v1068_v29  ;;  %v1100_v28 = vsel %vm674_vm2, %v2066_v34, %v1540_v33  ;;  %1567 = vrcp.f32 %v881_v26  ;;  %v2301_v34 = vadd.f32 %v1994_v5, %v613_v13  ;;  %v1423_v33 = vpop.f32.mrf.mxu1 }
 0x114   :  { %v1544_v35 = vpop.eup %1543  ;;  %1165 = vst.msk [vmem:[%s2717_s3 + $0x148] sm:$0xff] %vm1123_vm3, %v1100_v28  ;;  %v1067_v51 = vsel %vm674_vm2, %v2069_v39, %v1542_v42  ;;  %1569 = vpow2.f32 %v773_v0  ;;  %v2312_v39 = vadd.f32 %v1372_v21, %v1994_v5  ;;  %v695_v1 = vsub.f32 0.0, %v2291_v32 }
 0x115   :  { %v1546_v36 = vpop.eup %1545  ;;  %1132 = vst.msk [vmem:[%s2717_s3 + $0x40] sm:$0xff] %vm1123_vm3, %v1067_v51  ;;  %v1099_v57 = vsel %vm674_vm2, %v2073_v43, %v1544_v35  ;;  %1571 = vpow2.f32 %v837_v4  ;;  %v730_v21 = vsub.f32 0.0, %v2320_v47  ;;  %v2371_v42 = vadd.f32 %v1994_v5, %v623_v54 }
 0x116   :  { %v1548_v45 = vpop.eup %1547  ;;  %1164 = vst.msk [vmem:[%s2717_s3 + $0x140] sm:$0xff] %vm1123_vm3, %v1099_v57  ;;  %v913_v62 = vadd.f32 1.0, %v1546_v36  ;;  %1573 = vpow2.f32 %v771_v10  ;;  %v779_v26 = vmul.f32 1.442695, %v695_v1  ;;  %v633_v36 = vpop.f32.mrf.mxu1 }
 0x117   :  { %v1550_v43 = vpop.eup %1549  ;;  %v1070_v0 = vsel %vm674_vm2, %v2077_v50, %v1548_v45  ;;  %1575 = vpow2.f32 %v835_v22  ;;  %v727_v50 = vsub.f32 0.0, %v2301_v34  ;;  %v849_v51 = vmul.f32 1.442695, %v730_v21 }
 0x118   :  { %v1552_v4 = vpop.eup %1551  ;;  %1135 = vst.msk [vmem:[%s2717_s3 + $0x58] sm:$0xff] %vm1123_vm3, %v1070_v0  ;;  %v1102_v55 = vsel %vm674_vm2, %v2081_v56, %v1550_v43  ;;  %1577 = vrcp.f32 %v913_v62  ;;  %v698_v56 = vsub.f32 0.0, %v2312_v39  ;;  %v729_v58 = vsub.f32 0.0, %v2371_v42  ;;  %v1426_v1 = vpop.f32.mrf.mxu1 }
 0x119   :  { %v1554_v10 = vpop.eup %1553  ;;  %1167 = vst.msk [vmem:[%s2717_s3 + $0x158] sm:$0xff] %vm1123_vm3, %v1102_v55  ;;  %v1069_v13 = vsel %vm674_vm2, %v2086_v2, %v1552_v4  ;;  %1579 = vpow2.f32 %v777_v27  ;;  %v697_v27 = vsub.f32 0.0, %v2327_v3 }
 0x11a   :  { %v1556_v17 = vpop.eup %1555  ;;  %1134 = vst.msk [vmem:[%s2717_s3 + $0x50] sm:$0xff] %vm1123_vm3, %v1069_v13  ;;  %v1101_v22 = vsel %vm674_vm2, %v2091_v20, %v1554_v10  ;;  %1581 = vpow2.f32 %v841_v37  ;;  %v843_v37 = vmul.f32 1.442695, %v727_v50  ;;  %v785_v46 = vmul.f32 1.442695, %v698_v56 }
 0x11b   :  { %v1558_v24 = vpop.eup %1557  ;;  %1166 = vst.msk [vmem:[%s2717_s3 + $0x150] sm:$0xff] %vm1123_vm3, %v1101_v22  ;;  %v1072_v2 = vsel %vm674_vm2, %v2095_v41, %v1556_v17  ;;  %1583 = vpow2.f32 %v775_v52  ;;  %v473_v41 = vpop.f32.mrf.mxu0  ;;  %v783_v53 = vmul.f32 1.442695, %v697_v27  ;;  %v847_v55 = vmul.f32 1.442695, %v729_v58 }
 0x11c   :  { %v1560_v20 = vpop.eup %1559  ;;  %1137 = vst.msk [vmem:[%s2717_s3 + $0x68] sm:$0xff] %vm1123_vm3, %v1072_v2  ;;  %v1104_v29 = vsel %vm674_vm2, %v2101_v48, %v1558_v24  ;;  %1585 = vpow2.f32 %v839_v15  ;;  %v2415_v10 = vadd.f32 %v2337_v7, %v1994_v5  ;;  %v2421_v56 = vadd.f32 %v1423_v33, %v1994_v5 }
 0x11d   :  { %v1562_v28 = vpop.eup %1561  ;;  %1169 = vst.msk [vmem:[%s2717_s3 + $0x168] sm:$0xff] %vm1123_vm3, %v1104_v29  ;;  %v1071_v40 = vsel %vm674_vm2, %v2112_v8, %v1560_v20  ;;  %1587 = vpow2.f32 %v781_v16  ;;  %v1378_v45 = vpop.f32.mrf.mxu0  ;;  %v2428_v7 = vadd.f32 %v1994_v5, %v473_v41 }
 0x11e   :  { %v1564_v35 = vpop.eup %1563  ;;  %1136 = vst.msk [vmem:[%s2717_s3 + $0x60] sm:$0xff] %vm1123_vm3, %v1071_v40  ;;  %v1103_v48 = vsel %vm674_vm2, %v2122_v9, %v1562_v28  ;;  %1589 = vpow2.f32 %v845_v59  ;;  %v643_v59 = vpop.f32.mrf.mxu1  ;;  %v700_v33 = vsub.f32 0.0, %v2415_v10  ;;  %v2435_v20 = vadd.f32 %v1378_v45, %v1994_v5 }
 0x11f   :  { %v1566_v52 = vpop.eup %1565  ;;  %1168 = vst.msk [vmem:[%s2717_s3 + $0x160] sm:$0xff] %vm1123_vm3, %v1103_v48  ;;  %v1074_v8 = vsel %vm674_vm2, %v2133_v14, %v1564_v35  ;;  %1591 = vpow2.f32 %v779_v26  ;;  %v483_v15 = vpop.f32.mrf.mxu0  ;;  %v732_v41 = vsub.f32 0.0, %v2421_v56  ;;  %v2439_v28 = vadd.f32 %v1426_v1, %v1994_v5 }
 0x120   :  { %v1568_v57 = vpop.eup %1567  ;;  %1139 = vst.msk [vmem:[%s2717_s3 + $0x78] sm:$0xff] %vm1123_vm3, %v1074_v8  ;;  %v1106_v9 = vsel %vm674_vm2, %v2141_v6, %v1566_v52  ;;  %1593 = vpow2.f32 %v843_v37  ;;  %v699_v35 = vsub.f32 0.0, %v2428_v7  ;;  %v1429_v48 = vpop.f32.mrf.mxu1  ;;  %v789_v58 = vmul.f32 1.442695, %v700_v33 }
 0x121   :  { %v1570_v62 = vpop.eup %1569  ;;  %1171 = vst.msk [vmem:[%s2717_s3 + $0x178] sm:$0xff] %vm1123_vm3, %v1106_v9  ;;  %v1073_v14 = vsel %vm674_vm2, %v2148_v11, %v1568_v57  ;;  %1595 = vpow2.f32 %v785_v46  ;;  %v1381_v2 = vpop.f32.mrf.mxu0  ;;  %v702_v45 = vsub.f32 0.0, %v2435_v20 }
 0x122   :  { %v1572_v63 = vpop.eup %1571  ;;  %1138 = vst.msk [vmem:[%s2717_s3 + $0x70] sm:$0xff] %vm1123_vm3, %v1073_v14  ;;  %v884_v6 = vadd.f32 1.0, %v1570_v62  ;;  %1597 = vpow2.f32 %v849_v51  ;;  %v787_v1 = vmul.f32 1.442695, %v699_v35 }
 0x123   :  { %v1574_v43 = vpop.eup %1573  ;;  %v916_v0 = vadd.f32 1.0, %v1572_v63  ;;  %1599 = vpow2.f32 %v783_v53  ;;  %v2444_v53 = vadd.f32 %v1994_v5, %v483_v15  ;;  %v853_v63 = vmul.f32 1.442695, %v732_v41 }
 0x124   :  { %v1576_v54 = vpop.eup %1575  ;;  %1601 = vrcp.f32 %v884_v6  ;;  %v883_v4 = vadd.f32 1.0, %v1574_v43  ;;  %v734_v6 = vsub.f32 0.0, %v2439_v28 }
 0x125   :  { %v1578_v50 = vpop.eup %1577  ;;  %1603 = vrcp.f32 %v916_v0  ;;  %v915_v11 = vadd.f32 1.0, %v1576_v54  ;;  %v2449_v54 = vadd.f32 %v1994_v5, %v643_v59 }
 0x126   :  { %v1580_v13 = vpop.eup %1579  ;;  %v1105_v16 = vsel %vm674_vm2, %v2192_v49, %v1578_v50  ;;  %1605 = vrcp.f32 %v883_v4  ;;  %v2431_v49 = vadd.f32 %v1994_v5, %v633_v36  ;;  %v493_v36 = vpop.f32.mrf.mxu0 }
 0x127   :  { %v1582_v17 = vpop.eup %1581  ;;  %1170 = vst.msk [vmem:[%s2717_s3 + $0x170] sm:$0xff] %vm1123_vm3, %v1105_v16  ;;  %1607 = vrcp.f32 %v915_v11  ;;  %v886_v22 = vadd.f32 1.0, %v1580_v13  ;;  %v653_v4 = vpop.f32.mrf.mxu1  ;;  %v701_v11 = vsub.f32 0.0, %v2444_v53 }
 0x128   :  { %v1584_v21 = vpop.eup %1583  ;;  %v918_v24 = vadd.f32 1.0, %v1582_v17  ;;  %1609 = vpow2.f32 %v847_v55  ;;  %v731_v8 = vsub.f32 0.0, %v2431_v49  ;;  %v1384_v13 = vpop.f32.mrf.mxu0 }
 0x129   :  { %v1586_v26 = vpop.eup %1585  ;;  %1611 = vrcp.f32 %v886_v22  ;;  %v885_v27 = vadd.f32 1.0, %v1584_v21  ;;  %v793_v22 = vmul.f32 1.442695, %v702_v45  ;;  %v2455_v21 = vld [vmem:[%s2716_s2] ss:$0 sm:$0xff] }
 0x12a   :  { %v1588_v29 = vpop.eup %1587  ;;  %1613 = vrcp.f32 %v918_v24  ;;  %v917_v37 = vadd.f32 1.0, %v1586_v26  ;;  %v851_v50 = vmul.f32 1.442695, %v731_v8  ;;  %v2458_v5 = vadd.f32 %v2455_v21, %v1381_v2  ;;  %v503_v35 = vpop.f32.mrf.mxu0 }
 0x12b   :  { %v1590_v40 = vpop.eup %1589  ;;  %1615 = vrcp.f32 %v885_v27  ;;  %v888_v46 = vadd.f32 1.0, %v1588_v29  ;;  %v857_v26 = vmul.f32 1.442695, %v734_v6  ;;  %v2464_v27 = vadd.f32 %v2455_v21, %v1429_v48 }
 0x12c   :  { %v1592_v51 = vpop.eup %1591  ;;  %1617 = vrcp.f32 %v917_v37  ;;  %v920_v52 = vadd.f32 1.0, %v1590_v40  ;;  %v733_v29 = vsub.f32 0.0, %v2449_v54  ;;  %v1432_v37 = vpop.f32.mrf.mxu1 }
 0x12d   :  { %v1594_v57 = vpop.eup %1593  ;;  %1619 = vrcp.f32 %v888_v46  ;;  %v887_v9 = vadd.f32 1.0, %v1592_v51  ;;  %v791_v46 = vmul.f32 1.442695, %v701_v11 }
 0x12e   :  { %v1596_v62 = vpop.eup %1595  ;;  %1621 = vrcp.f32 %v920_v52  ;;  %v919_v14 = vadd.f32 1.0, %v1594_v57  ;;  %v704_v52 = vsub.f32 0.0, %v2458_v5  ;;  %v736_v57 = vsub.f32 0.0, %v2464_v27 }
 0x12f   :  { %v1598_v43 = vpop.eup %1597  ;;  %1623 = vrcp.f32 %v887_v9  ;;  %v890_v0 = vadd.f32 1.0, %v1596_v62  ;;  %v2504_v9 = vadd.f32 %v2455_v21, %v1432_v37  ;;  %v2511_v62 = vadd.f32 %v2455_v21, %v503_v35 }
 0x130   :  { %v1600_v55 = vpop.eup %1599  ;;  %1625 = vrcp.f32 %v919_v14  ;;  %v922_v15 = vadd.f32 1.0, %v1598_v43  ;;  %v855_v6 = vmul.f32 1.442695, %v733_v29 }
 0x131   :  { %v1602_v16 = vpop.eup %1601  ;;  %1627 = vrcp.f32 %v890_v0  ;;  %v889_v17 = vadd.f32 1.0, %v1600_v55  ;;  %v663_v55 = vpop.f32.mrf.mxu1  ;;  %v738_v11 = vsub.f32 0.0, %v2504_v9 }
 0x132   :  { %v1604_v59 = vpop.eup %1603  ;;  %v1076_v24 = vsel %vm674_vm2, %v2236_v19, %v1602_v16  ;;  %1629 = vrcp.f32 %v922_v15  ;;  %v2475_v19 = vadd.f32 %v2455_v21, %v493_v36 }
 0x133   :  { %v1606_v33 = vpop.eup %1605  ;;  %1141 = vst.msk [vmem:[%s2717_s3 + $0x88] sm:$0xff] %vm1123_vm3, %v1076_v24  ;;  %v1108_v2 = vsel %vm674_vm2, %v2242_v23, %v1604_v59  ;;  %1631 = vrcp.f32 %v889_v17  ;;  %v2485_v23 = vadd.f32 %v2455_v21, %v653_v4  ;;  %v705_v17 = vsub.f32 0.0, %v2511_v62 }
 0x134   :  { %v1608_v41 = vpop.eup %1607  ;;  %1173 = vst.msk [vmem:[%s2717_s3 + $0x188] sm:$0xff] %vm1123_vm3, %v1108_v2  ;;  %v1075_v40 = vsel %vm674_vm2, %v2249_v18, %v1606_v33  ;;  %1633 = vpow2.f32 %v789_v58  ;;  %v2496_v18 = vadd.f32 %v2455_v21, %v1384_v13  ;;  %v703_v45 = vsub.f32 0.0, %v2475_v19 }
 0x135   :  { %v1610_v48 = vpop.eup %1609  ;;  %1140 = vst.msk [vmem:[%s2717_s3 + $0x80] sm:$0xff] %vm1123_vm3, %v1075_v40  ;;  %v1107_v51 = vsel %vm674_vm2, %v2252_v60, %v1608_v41  ;;  %1635 = vpow2.f32 %v853_v63  ;;  %v2553_v24 = vadd.f32 %v2455_v21, %v663_v55  ;;  %v865_v21 = vmul.f32 1.442695, %v738_v11 }
 0x136   :  { %v1612_v8 = vpop.eup %1611  ;;  %1172 = vst.msk [vmem:[%s2717_s3 + $0x180] sm:$0xff] %vm1123_vm3, %v1107_v51  ;;  %v921_v36 = vadd.f32 1.0, %v1610_v48  ;;  %1637 = vpow2.f32 %v787_v1  ;;  %v797_v1 = vmul.f32 1.442695, %v704_v52  ;;  %v706_v4 = vsub.f32 0.0, %v2496_v18 }
 0x137   :  { %v1614_v60 = vpop.eup %1613  ;;  %v1078_v58 = vsel %vm674_vm2, %v2256_v31, %v1612_v8  ;;  %1639 = vpow2.f32 %v851_v50  ;;  %v735_v31 = vsub.f32 0.0, %v2485_v23  ;;  %v861_v50 = vmul.f32 1.442695, %v736_v57 }
 0x138   :  { %v1616_v14 = vpop.eup %1615  ;;  %1143 = vst.msk [vmem:[%s2717_s3 + $0x98] sm:$0xff] %vm1123_vm3, %v1078_v58  ;;  %v1110_v63 = vsel %vm674_vm2, %v2260_v44, %v1614_v60  ;;  %1641 = vrcp.f32 %v921_v36  ;;  %v795_v16 = vmul.f32 1.442695, %v703_v45  ;;  %v801_v33 = vmul.f32 1.442695, %v706_v4 }
 0x139   :  { %v1618_v43 = vpop.eup %1617  ;;  %1175 = vst.msk [vmem:[%s2717_s3 + $0x198] sm:$0xff] %vm1123_vm3, %v1110_v63  ;;  %v1077_v0 = vsel %vm674_vm2, %v2265_v61, %v1616_v14  ;;  %1643 = vpow2.f32 %v793_v22  ;;  %v859_v59 = vmul.f32 1.442695, %v735_v31  ;;  %v799_v37 = vmul.f32 1.442695, %v705_v17 }
 0x13a   :  { %v1620_v44 = vpop.eup %1619  ;;  %1142 = vst.msk [vmem:[%s2717_s3 + $0x90] sm:$0xff] %vm1123_vm3, %v1077_v0  ;;  %v1109_v15 = vsel %vm674_vm2, %v2270_v12, %v1618_v43  ;;  %1645 = vpow2.f32 %v857_v26  ;;  %v737_v40 = vsub.f32 0.0, %v2553_v24 }
 0x13b   :  { %v1622_v61 = vpop.eup %1621  ;;  %1174 = vst.msk [vmem:[%s2717_s3 + $0x190] sm:$0xff] %vm1123_vm3, %v1109_v15  ;;  %v1080_v13 = vsel %vm674_vm2, %v2274_v30, %v1620_v44  ;;  %1647 = vpow2.f32 %v791_v46 }
 0x13c   :  { %v1624_v22 = vpop.eup %1623  ;;  %1145 = vst.msk [vmem:[%s2717_s3 + $0xa8] sm:$0xff] %vm1123_vm3, %v1080_v13  ;;  %v1112_v12 = vsel %vm674_vm2, %v2280_v38, %v1622_v61  ;;  %1649 = vpow2.f32 %v855_v6  ;;  %v863_v36 = vmul.f32 1.442695, %v737_v40 }
 0x13d   :  { %v1626_v30 = vpop.eup %1625  ;;  %1177 = vst.msk [vmem:[%s2717_s3 + $0x1a8] sm:$0xff] %vm1123_vm3, %v1112_v12  ;;  %v1079_v26 = vsel %vm674_vm2, %v2291_v32, %v1624_v22  ;;  %1651 = vpow2.f32 %v797_v1 }
 0x13e   :  { %v1628_v2 = vpop.eup %1627  ;;  %1144 = vst.msk [vmem:[%s2717_s3 + $0xa0] sm:$0xff] %vm1123_vm3, %v1079_v26  ;;  %v1111_v38 = vsel %vm674_vm2, %v2301_v34, %v1626_v30  ;;  %1653 = vpow2.f32 %v861_v50 }
 0x13f   :  { %v1630_v29 = vpop.eup %1629  ;;  %1176 = vst.msk [vmem:[%s2717_s3 + $0x1a0] sm:$0xff] %vm1123_vm3, %v1111_v38  ;;  %v1082_v32 = vsel %vm674_vm2, %v2312_v39, %v1628_v2  ;;  %1655 = vpow2.f32 %v795_v16 }
 0x140   :  { %v1632_v41 = vpop.eup %1631  ;;  %1147 = vst.msk [vmem:[%s2717_s3 + $0xb8] sm:$0xff] %vm1123_vm3, %v1082_v32  ;;  %v1114_v34 = vsel %vm674_vm2, %v2320_v47, %v1630_v29  ;;  %1657 = vpow2.f32 %v859_v59 }
 0x141   :  { %v1634_v46 = vpop.eup %1633  ;;  %1179 = vst.msk [vmem:[%s2717_s3 + $0x1b8] sm:$0xff] %vm1123_vm3, %v1114_v34  ;;  %v1081_v39 = vsel %vm674_vm2, %v2327_v3, %v1632_v41  ;;  %1659 = vpow2.f32 %v801_v33 }
 0x142   :  { %v1636_v35 = vpop.eup %1635  ;;  %1146 = vst.msk [vmem:[%s2717_s3 + $0xb0] sm:$0xff] %vm1123_vm3, %v1081_v39  ;;  %v892_v47 = vadd.f32 1.0, %v1634_v46  ;;  %1661 = vpow2.f32 %v865_v21 }
 0x143   :  { %v1638_v48 = vpop.eup %1637  ;;  %v924_v51 = vadd.f32 1.0, %v1636_v35  ;;  %1663 = vpow2.f32 %v799_v37 }
 0x144   :  { %v1640_v52 = vpop.eup %1639  ;;  %1665 = vrcp.f32 %v892_v47  ;;  %v891_v8 = vadd.f32 1.0, %v1638_v48 }
 0x145   :  { %v1642_v57 = vpop.eup %1641  ;;  %1667 = vrcp.f32 %v924_v51  ;;  %v923_v60 = vadd.f32 1.0, %v1640_v52 }
 0x146   :  { %v1644_v3 = vpop.eup %1643  ;;  %v1113_v58 = vsel %vm674_vm2, %v2371_v42, %v1642_v57  ;;  %1669 = vrcp.f32 %v891_v8 }
 0x147   :  { %v1646_v45 = vpop.eup %1645  ;;  %1178 = vst.msk [vmem:[%s2717_s3 + $0x1b0] sm:$0xff] %vm1123_vm3, %v1113_v58  ;;  %1671 = vrcp.f32 %v923_v60  ;;  %v894_v14 = vadd.f32 1.0, %v1644_v3 }
 0x148   :  { %v1648_v63 = vpop.eup %1647  ;;  %v926_v6 = vadd.f32 1.0, %v1646_v45  ;;  %1673 = vpow2.f32 %v863_v36 }
 0x149   :  { %v1650_v31 = vpop.eup %1649  ;;  %1675 = vrcp.f32 %v894_v14  ;;  %v893_v43 = vadd.f32 1.0, %v1648_v63 }
 0x14a   :  { %v1652_v0 = vpop.eup %1651  ;;  %1677 = vrcp.f32 %v926_v6  ;;  %v925_v1 = vadd.f32 1.0, %v1650_v31 }
 0x14b   :  { %v1654_v4 = vpop.eup %1653  ;;  %1679 = vrcp.f32 %v893_v43  ;;  %v896_v42 = vadd.f32 1.0, %v1652_v0 }
 0x14c   :  { %v1656_v55 = vpop.eup %1655  ;;  %1681 = vrcp.f32 %v925_v1  ;;  %v928_v44 = vadd.f32 1.0, %v1654_v4 }
 0x14d   :  { %v1658_v15 = vpop.eup %1657  ;;  %1683 = vrcp.f32 %v896_v42  ;;  %v895_v50 = vadd.f32 1.0, %v1656_v55 }
 0x14e   :  { %v1660_v11 = vpop.eup %1659  ;;  %1685 = vrcp.f32 %v928_v44  ;;  %v927_v61 = vadd.f32 1.0, %v1658_v15 }
 0x14f   :  { %v1662_v13 = vpop.eup %1661  ;;  %1687 = vrcp.f32 %v895_v50  ;;  %v898_v16 = vadd.f32 1.0, %v1660_v11 }
 0x150   :  { %v1664_v17 = vpop.eup %1663  ;;  %1689 = vrcp.f32 %v927_v61  ;;  %v930_v22 = vadd.f32 1.0, %v1662_v13 }
 0x151   :  { %v1666_v12 = vpop.eup %1665  ;;  %1691 = vrcp.f32 %v898_v16  ;;  %v897_v59 = vadd.f32 1.0, %v1664_v17 }
 0x152   :  { %v1668_v30 = vpop.eup %1667  ;;  %v1084_v26 = vsel %vm674_vm2, %v2415_v10, %v1666_v12  ;;  %1693 = vrcp.f32 %v930_v22 }
 0x153   :  { %v1670_v33 = vpop.eup %1669  ;;  %1149 = vst.msk [vmem:[%s2717_s3 + $0xc8] sm:$0xff] %vm1123_vm3, %v1084_v26  ;;  %v1116_v2 = vsel %vm674_vm2, %v2421_v56, %v1668_v30  ;;  %1695 = vrcp.f32 %v897_v59 }
 0x154   :  { %v1672_v38 = vpop.eup %1671  ;;  %1181 = vst.msk [vmem:[%s2717_s3 + $0x1c8] sm:$0xff] %vm1123_vm3, %v1116_v2  ;;  %v1083_v10 = vsel %vm674_vm2, %v2428_v7, %v1670_v33 }
 0x155   :  { %v1674_v21 = vpop.eup %1673  ;;  %1148 = vst.msk [vmem:[%s2717_s3 + $0xc0] sm:$0xff] %vm1123_vm3, %v1083_v10  ;;  %v1115_v56 = vsel %vm674_vm2, %v2431_v49, %v1672_v38 }
 0x156   :  { %v1676_v29 = vpop.eup %1675  ;;  %1180 = vst.msk [vmem:[%s2717_s3 + $0x1c0] sm:$0xff] %vm1123_vm3, %v1115_v56  ;;  %v929_v32 = vadd.f32 1.0, %v1674_v21 }
 0x157   :  { %v1678_v37 = vpop.eup %1677  ;;  %v1086_v7 = vsel %vm674_vm2, %v2435_v20, %v1676_v29 }
 0x158   :  { %v1680_v41 = vpop.eup %1679  ;;  %1151 = vst.msk [vmem:[%s2717_s3 + $0xd8] sm:$0xff] %vm1123_vm3, %v1086_v7  ;;  %v1118_v49 = vsel %vm674_vm2, %v2439_v28, %v1678_v37  ;;  %1697 = vrcp.f32 %v929_v32 }
 0x159   :  { %v1682_v34 = vpop.eup %1681  ;;  %1183 = vst.msk [vmem:[%s2717_s3 + $0x1d8] sm:$0xff] %vm1123_vm3, %v1118_v49  ;;  %v1085_v20 = vsel %vm674_vm2, %v2444_v53, %v1680_v41 }
 0x15a   :  { %v1684_v40 = vpop.eup %1683  ;;  %1150 = vst.msk [vmem:[%s2717_s3 + $0xd0] sm:$0xff] %vm1123_vm3, %v1085_v20  ;;  %v1117_v28 = vsel %vm674_vm2, %v2449_v54, %v1682_v34 }
 0x15b   :  { %v1686_v46 = vpop.eup %1685  ;;  %1182 = vst.msk [vmem:[%s2717_s3 + $0x1d0] sm:$0xff] %vm1123_vm3, %v1117_v28  ;;  %v1088_v53 = vsel %vm674_vm2, %v2458_v5, %v1684_v40 }
 0x15c   :  { %v1688_v39 = vpop.eup %1687  ;;  %1153 = vst.msk [vmem:[%s2717_s3 + $0xe8] sm:$0xff] %vm1123_vm3, %v1088_v53  ;;  %v1120_v54 = vsel %vm674_vm2, %v2464_v27, %v1686_v46 }
 0x15d   :  { %v1690_v35 = vpop.eup %1689  ;;  %1185 = vst.msk [vmem:[%s2717_s3 + $0x1e8] sm:$0xff] %vm1123_vm3, %v1120_v54  ;;  %v1087_v5 = vsel %vm674_vm2, %v2475_v19, %v1688_v39 }
 0x15e   :  { %v1692_v47 = vpop.eup %1691  ;;  %1152 = vst.msk [vmem:[%s2717_s3 + $0xe0] sm:$0xff] %vm1123_vm3, %v1087_v5  ;;  %v1119_v27 = vsel %vm674_vm2, %v2485_v23, %v1690_v35 }
 0x15f   :  { %v1694_v48 = vpop.eup %1693  ;;  %1184 = vst.msk [vmem:[%s2717_s3 + $0x1e0] sm:$0xff] %vm1123_vm3, %v1119_v27  ;;  %v1090_v19 = vsel %vm674_vm2, %v2496_v18, %v1692_v47 }
 0x160   :  { %v1696_v51 = vpop.eup %1695  ;;  %1155 = vst.msk [vmem:[%s2717_s3 + $0xf8] sm:$0xff] %vm1123_vm3, %v1090_v19  ;;  %v1122_v23 = vsel %vm674_vm2, %v2504_v9, %v1694_v48 }
 0x161   :  { %1187 = vst.msk [vmem:[%s2717_s3 + $0x1f8] sm:$0xff] %vm1123_vm3, %v1122_v23  ;;  %v1089_v52 = vsel %vm674_vm2, %v2511_v62, %v1696_v51 }
 0x162   :  { %1154 = vst.msk [vmem:[%s2717_s3 + $0xf0] sm:$0xff] %vm1123_vm3, %v1089_v52 }
 0x165   :  { %v1698_v18 = vpop.eup %1697 }
 0x166   :  { %v1121_v8 = vsel %vm674_vm2, %v2553_v24, %v1698_v18 }
 0x167   :  { %1186 = vst.msk [vmem:[%s2717_s3 + $0x1f0] sm:$0xff] %vm1123_vm3, %v1121_v8 }

// kernel: fused_height_forward.5
= control target key start
LH: loop header
LB: loop body
LE: loop exit
PB: predicated region body
PF: predicated region fallthrough
CT: control target
= control target key end

     0   :  { %vm294_vm0 = vcmask 1043456   ;;  %vm819_vm1 = vcmask 31744   ;;  %vm101_vm2 = vcmask 293888   ;;  %s5281_s3 = inlined_call_operand.vmem [shape: f32[36,4], index: 3, kind: input, shape index: {}]   ;;  %s5282_s4 = inlined_call_operand.vmem [shape: f32[4,4], index: 4, kind: input, shape index: {}]   ;;  %s5283_s1 = inlined_call_operand.vmem [shape: f32[512,4], index: 1, kind: input, shape index: {}]   ;;  %s5284_s0 = inlined_call_operand.vmem [shape: f32[512,36], index: 0, kind: input, shape index: {}]   ;;  %s5285_s7 = inlined_call_operand.vmem [shape: f32[4,4], index: 7, kind: input, shape index: {}]   ;;  %s5286_s6 = inlined_call_operand.vmem [shape: f32[4,4], index: 6, kind: input, shape index: {}]   ;;  %s5287_s2 = inlined_call_operand.vmem [shape: f32[512,4], index: 2, kind: input, shape index: {}]   ;;  %s5288_s5 = inlined_call_operand.vmem [shape: f32[1,4], index: 5, kind: input, shape index: {}]   ;;  %s5289_s8 = inlined_call_operand.vmem [shape: f32[1,4], index: 8, kind: input, shape index: {}]   ;;  %s5290_s9 = inlined_call_operand.vmem [shape: f32[512,4], index: 9, kind: output, shape index: {}]  }
   0x1   :  { %v100_v0 = vld [vmem:[%s5281_s3 + $0x20] sm:$0xf]  ;;  %v99_v1 = vld [vmem:[%s5281_s3 + $0x18] sm:$0xff]  ;;  %v98_v4 = vld [vmem:[%s5281_s3 + $0x10] sm:$0xff] }
   0x2   :  { %3419 = vmatprep.subr.msk.mxu0 %vm294_vm0, %v100_v0  ;;  %v811_v2 = vld [vmem:[%s5282_s4] sm:$0xf]  ;;  %v748_v5 = vld [vmem:[%s5283_s1 + $0x8] sm:$0xff]  ;;  %v749_v8 = vld [vmem:[%s5283_s1 + $0x10] sm:$0xff] }
   0x3   :  { %v747_v3 = vld [vmem:[%s5283_s1] sm:$0xff]  ;;  %3420 = vmatpush3.msk.msra.mxu0 %vm294_vm0, %v100_v0  ;;  %3525 = vmatprep.subr.msk.mxu1 %vm294_vm0, %v811_v2  ;;  %v97_v7 = vld [vmem:[%s5281_s3 + $0x8] sm:$0xff]  ;;  %v750_v10 = vld [vmem:[%s5283_s1 + $0x18] sm:$0xff] }
   0x4   :  { %3421 = vmatprep.subr.mxu0 %v99_v1  ;;  %3526 = vmatpush3.msk.msra.mxu1 %vm294_vm0, %v811_v2  ;;  %v32_v6 = vld [vmem:[%s5284_s0] sm:$0xff]  ;;  %v33_v12 = vld [vmem:[%s5284_s0 + $0x8] sm:$0xff]  ;;  %v34_v13 = vld [vmem:[%s5284_s0 + $0x10] sm:$0xff] }
   0x5   :  { %3422 = vmatpush3.msra.mxu0 %v99_v1  ;;  %3527 = vmatprep.mubr.msk.f32.mxu1 %vm819_vm1, %v747_v3  ;;  %v96_v9 = vld [vmem:[%s5281_s3] sm:$0xff]  ;;  %v752_v14 = vld [vmem:[%s5283_s1 + $0x28] sm:$0xff]  ;;  %v753_v15 = vld [vmem:[%s5283_s1 + $0x30] sm:$0xff] }
   0x6   :  { %3423 = vmatprep.subr.mxu0 %v98_v4  ;;  %3528 = vmatmul.mubr.msk.f32.vlgmr.msra.gmra.mxu1 %vm819_vm1, %v748_v5  ;;  %v751_v11 = vld [vmem:[%s5283_s1 + $0x20] sm:$0xff]  ;;  %v35_v16 = vld [vmem:[%s5284_s0 + $0x18] sm:$0xff]  ;;  %v37_v20 = vld [vmem:[%s5284_s0 + $0x28] sm:$0xff] }
   0x7   :  { %3424 = vmatpush3.msra.mxu0 %v98_v4  ;;  %3429 = vmatprep.mubr.msk.f32.mxu0 %vm101_vm2, %v32_v6  ;;  %v36_v17 = vld [vmem:[%s5284_s0 + $0x20] sm:$0xff]  ;;  %v754_v18 = vld [vmem:[%s5283_s1 + $0x38] sm:$0xff]  ;;  %v38_v21 = vld [vmem:[%s5284_s0 + $0x30] sm:$0xff] }
   0x8   :  { %3425 = vmatprep.subr.mxu0 %v97_v7  ;;  %3530 = vmatprep.mubr.msk.f32.mxu1 %vm819_vm1, %v749_v8  ;;  %v755_v19 = vld [vmem:[%s5283_s1 + $0x40] sm:$0xff]  ;;  %v756_v22 = vld [vmem:[%s5283_s1 + $0x48] sm:$0xff]  ;;  %v757_v23 = vld [vmem:[%s5283_s1 + $0x50] sm:$0xff] }
   0x9   :  { %3426 = vmatpush3.msra.mxu0 %v97_v7  ;;  %v39_v24 = vld [vmem:[%s5284_s0 + $0x38] sm:$0xff]  ;;  %v40_v25 = vld [vmem:[%s5284_s0 + $0x40] sm:$0xff]  ;;  %v41_v28 = vld [vmem:[%s5284_s0 + $0x48] sm:$0xff] }
   0xa   :  { %3427 = vmatprep.subr.mxu0 %v96_v9  ;;  %3531 = vmatmul.mubr.msk.f32.gmra.mxu1 %vm819_vm1, %v750_v10  ;;  %v758_v26 = vld [vmem:[%s5283_s1 + $0x58] sm:$0xff]  ;;  %v759_v27 = vld [vmem:[%s5283_s1 + $0x60] sm:$0xff]  ;;  %v42_v29 = vld [vmem:[%s5284_s0 + $0x50] sm:$0xff] }
   0xb   :  { %3428 = vmatpush3.msra.mxu0 %v96_v9  ;;  %3533 = vmatprep.mubr.msk.f32.mxu1 %vm819_vm1, %v751_v11  ;;  %v1529_v30 = vld [vmem:[%s5285_s7] sm:$0xf]  ;;  %v760_v31 = vld [vmem:[%s5283_s1 + $0x68] sm:$0xff]  ;;  %v761_v32 = vld [vmem:[%s5283_s1 + $0x70] sm:$0xff] }
   0xc   :  { %3430 = vmatmul.mubr.msk.f32.vlgmr.msra.gmra.mxu0 %vm101_vm2, %v33_v12  ;;  %3623 = vmatprep.subr.msk.mxu1 %vm294_vm0, %v1529_v30  ;;  %v43_v33 = vld [vmem:[%s5284_s0 + $0x58] sm:$0xff]  ;;  %v4006_v34 = vld [vmem:[%s5286_s6] sm:$0xf]  ;;  %v45_v38 = vld [vmem:[%s5284_s0 + $0x68] sm:$0xff] }
   0xd   :  { %3432 = vmatprep.mubr.msk.f32.mxu0 %vm101_vm2, %v34_v13  ;;  %3624 = vmatpush3.msk.msra.mxu1 %vm294_vm0, %v1529_v30  ;;  %v44_v35 = vld [vmem:[%s5284_s0 + $0x60] sm:$0xff]  ;;  %v762_v36 = vld [vmem:[%s5283_s1 + $0x78] sm:$0xff]  ;;  %v46_v39 = vld [vmem:[%s5284_s0 + $0x70] sm:$0xff] }
   0xe   :  { %3534 = vmatmul.mubr.msk.f32.gmra.mxu1 %vm819_vm1, %v752_v14  ;;  %3721 = vmatprep.subr.msk.mxu0 %vm294_vm0, %v4006_v34  ;;  %v763_v37 = vld [vmem:[%s5283_s1 + $0x80] sm:$0xff]  ;;  %v764_v40 = vld [vmem:[%s5283_s1 + $0x88] sm:$0xff]  ;;  %v765_v41 = vld [vmem:[%s5283_s1 + $0x90] sm:$0xff] }
   0xf   :  { %3536 = vmatprep.mubr.msk.f32.mxu1 %vm819_vm1, %v753_v15  ;;  %3722 = vmatpush3.msk.msra.mxu0 %vm294_vm0, %v4006_v34  ;;  %v47_v42 = vld [vmem:[%s5284_s0 + $0x78] sm:$0xff]  ;;  %v48_v43 = vld [vmem:[%s5284_s0 + $0x80] sm:$0xff]  ;;  %v49_v46 = vld [vmem:[%s5284_s0 + $0x88] sm:$0xff] }
  0x10   :  { %3433 = vmatmul.mubr.msk.f32.gmra.mxu0 %vm101_vm2, %v35_v16  ;;  %3819 = vmatprep.subr.msk.mxu1 %vm294_vm0, %v4006_v34  ;;  %v766_v44 = vld [vmem:[%s5283_s1 + $0x98] sm:$0xff]  ;;  %v767_v45 = vld [vmem:[%s5283_s1 + $0xa0] sm:$0xff]  ;;  %v50_v47 = vld [vmem:[%s5284_s0 + $0x90] sm:$0xff] }
  0x11   :  { %3435 = vmatprep.mubr.msk.f32.mxu0 %vm101_vm2, %v36_v17  ;;  %v768_v48 = vld [vmem:[%s5283_s1 + $0xa8] sm:$0xff]  ;;  %v769_v49 = vld [vmem:[%s5283_s1 + $0xb0] sm:$0xff]  ;;  %v51_v50 = vld [vmem:[%s5284_s0 + $0x98] sm:$0xff] }
  0x12   :  { %3537 = vmatmul.mubr.msk.f32.gmra.mxu1 %vm819_vm1, %v754_v18  ;;  %v52_v51 = vld [vmem:[%s5284_s0 + $0xa0] sm:$0xff]  ;;  %v770_v52 = vld [vmem:[%s5283_s1 + $0xb8] sm:$0xff]  ;;  %v53_v54 = vld [vmem:[%s5284_s0 + $0xa8] sm:$0xff] }
  0x13   :  { %3539 = vmatprep.mubr.msk.f32.mxu1 %vm819_vm1, %v755_v19  ;;  %v771_v53 = vld [vmem:[%s5283_s1 + $0xc0] sm:$0xff]  ;;  %v54_v55 = vld [vmem:[%s5284_s0 + $0xb0] sm:$0xff]  ;;  %v772_v56 = vld [vmem:[%s5283_s1 + $0xc8] sm:$0xff] }
  0x14   :  { %3436 = vmatmul.mubr.msk.f32.gmra.mxu0 %vm101_vm2, %v37_v20  ;;  %v773_v57 = vld [vmem:[%s5283_s1 + $0xd0] sm:$0xff]  ;;  %v55_v58 = vld [vmem:[%s5284_s0 + $0xb8] sm:$0xff]  ;;  %v56_v59 = vld [vmem:[%s5284_s0 + $0xc0] sm:$0xff] }
  0x15   :  { %3438 = vmatprep.mubr.msk.f32.mxu0 %vm101_vm2, %v38_v21  ;;  %v774_v60 = vld [vmem:[%s5283_s1 + $0xd8] sm:$0xff]  ;;  %v775_v61 = vld [vmem:[%s5283_s1 + $0xe0] sm:$0xff]  ;;  %v57_v62 = vld [vmem:[%s5284_s0 + $0xc8] sm:$0xff] }
  0x16   :  { %3540 = vmatmul.mubr.msk.f32.gmra.mxu1 %vm819_vm1, %v756_v22  ;;  %v58_v63 = vld [vmem:[%s5284_s0 + $0xd0] sm:$0xff]  ;;  %v776_v0 = vld [vmem:[%s5283_s1 + $0xe8] sm:$0xff]  ;;  %v59_v2 = vld [vmem:[%s5284_s0 + $0xd8] sm:$0xff] }
  0x17   :  { %3542 = vmatprep.mubr.msk.f32.mxu1 %vm819_vm1, %v757_v23  ;;  %v777_v1 = vld [vmem:[%s5283_s1 + $0xf0] sm:$0xff]  ;;  %v60_v3 = vld [vmem:[%s5284_s0 + $0xe0] sm:$0xff]  ;;  %v778_v4 = vld [vmem:[%s5283_s1 + $0xf8] sm:$0xff] }
  0x18   :  { %3439 = vmatmul.mubr.msk.f32.gmra.mxu0 %vm101_vm2, %v39_v24  ;;  %v779_v5 = vld [vmem:[%s5283_s1 + $0x100] sm:$0xff]  ;;  %v61_v6 = vld [vmem:[%s5284_s0 + $0xe8] sm:$0xff]  ;;  %v62_v7 = vld [vmem:[%s5284_s0 + $0xf0] sm:$0xff] }
  0x19   :  { %3441 = vmatprep.mubr.msk.f32.mxu0 %vm101_vm2, %v40_v25  ;;  %v780_v8 = vld [vmem:[%s5283_s1 + $0x108] sm:$0xff]  ;;  %v781_v9 = vld [vmem:[%s5283_s1 + $0x110] sm:$0xff]  ;;  %v63_v10 = vld [vmem:[%s5284_s0 + $0xf8] sm:$0xff] }
  0x1a   :  { %3543 = vmatmul.mubr.msk.f32.gmra.mxu1 %vm819_vm1, %v758_v26  ;;  %v64_v11 = vld [vmem:[%s5284_s0 + $0x100] sm:$0xff]  ;;  %v782_v12 = vld [vmem:[%s5283_s1 + $0x118] sm:$0xff]  ;;  %v65_v14 = vld [vmem:[%s5284_s0 + $0x108] sm:$0xff] }
  0x1b   :  { %3545 = vmatprep.mubr.msk.f32.mxu1 %vm819_vm1, %v759_v27  ;;  %v783_v13 = vld [vmem:[%s5283_s1 + $0x120] sm:$0xff]  ;;  %v66_v15 = vld [vmem:[%s5284_s0 + $0x110] sm:$0xff]  ;;  %v784_v16 = vld [vmem:[%s5283_s1 + $0x128] sm:$0xff] }
  0x1c   :  { %3442 = vmatmul.mubr.msk.f32.gmra.mxu0 %vm101_vm2, %v41_v28  ;;  %v785_v17 = vld [vmem:[%s5283_s1 + $0x130] sm:$0xff]  ;;  %v67_v18 = vld [vmem:[%s5284_s0 + $0x118] sm:$0xff]  ;;  %v68_v19 = vld [vmem:[%s5284_s0 + $0x120] sm:$0xff] }
  0x1d   :  { %3444 = vmatprep.mubr.msk.f32.mxu0 %vm101_vm2, %v42_v29  ;;  %v786_v20 = vld [vmem:[%s5283_s1 + $0x138] sm:$0xff]  ;;  %v787_v21 = vld [vmem:[%s5283_s1 + $0x140] sm:$0xff]  ;;  %v69_v22 = vld [vmem:[%s5284_s0 + $0x128] sm:$0xff] }
  0x1e   :  { %3546 = vmatmul.mubr.msk.f32.gmra.mxu1 %vm819_vm1, %v760_v31  ;;  %v70_v23 = vld [vmem:[%s5284_s0 + $0x130] sm:$0xff]  ;;  %v788_v24 = vld [vmem:[%s5283_s1 + $0x148] sm:$0xff]  ;;  %v71_v26 = vld [vmem:[%s5284_s0 + $0x138] sm:$0xff] }
  0x1f   :  { %3548 = vmatprep.mubr.msk.f32.mxu1 %vm819_vm1, %v761_v32  ;;  %v789_v25 = vld [vmem:[%s5283_s1 + $0x150] sm:$0xff]  ;;  %v72_v27 = vld [vmem:[%s5284_s0 + $0x140] sm:$0xff]  ;;  %v790_v28 = vld [vmem:[%s5283_s1 + $0x158] sm:$0xff] }
  0x20   :  { %3445 = vmatmul.mubr.msk.f32.gmra.mxu0 %vm101_vm2, %v43_v33  ;;  %v791_v29 = vld [vmem:[%s5283_s1 + $0x160] sm:$0xff]  ;;  %v73_v30 = vld [vmem:[%s5284_s0 + $0x148] sm:$0xff]  ;;  %v74_v31 = vld [vmem:[%s5284_s0 + $0x150] sm:$0xff] }
  0x21   :  { %3447 = vmatprep.mubr.msk.f32.mxu0 %vm101_vm2, %v44_v35  ;;  %v792_v32 = vld [vmem:[%s5283_s1 + $0x168] sm:$0xff]  ;;  %v793_v33 = vld [vmem:[%s5283_s1 + $0x170] sm:$0xff]  ;;  %v75_v35 = vld [vmem:[%s5284_s0 + $0x158] sm:$0xff] }
  0x22   :  { %3549 = vmatmul.mubr.msk.f32.gmra.mxu1 %vm819_vm1, %v762_v36  ;;  %v76_v36 = vld [vmem:[%s5284_s0 + $0x160] sm:$0xff] }
  0x23   :  { %3551 = vmatprep.mubr.msk.f32.mxu1 %vm819_vm1, %v763_v37  ;;  %v794_v37 = vld [vmem:[%s5283_s1 + $0x178] sm:$0xff] }
  0x24   :  { %3448 = vmatmul.mubr.msk.f32.gmra.mxu0 %vm101_vm2, %v45_v38  ;;  %v795_v38 = vld [vmem:[%s5283_s1 + $0x180] sm:$0xff] }
  0x25   :  { %3450 = vmatprep.mubr.msk.f32.mxu0 %vm101_vm2, %v46_v39  ;;  %v77_v39 = vld [vmem:[%s5284_s0 + $0x168] sm:$0xff] }
  0x26   :  { %3552 = vmatmul.mubr.msk.f32.gmra.mxu1 %vm819_vm1, %v764_v40  ;;  %v78_v40 = vld [vmem:[%s5284_s0 + $0x170] sm:$0xff] }
  0x27   :  { %3554 = vmatprep.mubr.msk.f32.mxu1 %vm819_vm1, %v765_v41  ;;  %v796_v41 = vld [vmem:[%s5283_s1 + $0x188] sm:$0xff] }
  0x28   :  { %3451 = vmatmul.mubr.msk.f32.gmra.mxu0 %vm101_vm2, %v47_v42  ;;  %v797_v42 = vld [vmem:[%s5283_s1 + $0x190] sm:$0xff] }
  0x29   :  { %3453 = vmatprep.mubr.msk.f32.mxu0 %vm101_vm2, %v48_v43  ;;  %v79_v43 = vld [vmem:[%s5284_s0 + $0x178] sm:$0xff] }
  0x2a   :  { %3555 = vmatmul.mubr.msk.f32.gmra.mxu1 %vm819_vm1, %v766_v44  ;;  %v80_v44 = vld [vmem:[%s5284_s0 + $0x180] sm:$0xff] }
  0x2b   :  { %3557 = vmatprep.mubr.msk.f32.mxu1 %vm819_vm1, %v767_v45  ;;  %v798_v45 = vld [vmem:[%s5283_s1 + $0x198] sm:$0xff] }
  0x2c   :  { %3454 = vmatmul.mubr.msk.f32.gmra.mxu0 %vm101_vm2, %v49_v46  ;;  %v799_v46 = vld [vmem:[%s5283_s1 + $0x1a0] sm:$0xff] }
  0x2d   :  { %3456 = vmatprep.mubr.msk.f32.mxu0 %vm101_vm2, %v50_v47  ;;  %v81_v47 = vld [vmem:[%s5284_s0 + $0x188] sm:$0xff] }
  0x2e   :  { %3558 = vmatmul.mubr.msk.f32.gmra.mxu1 %vm819_vm1, %v768_v48  ;;  %v82_v48 = vld [vmem:[%s5284_s0 + $0x190] sm:$0xff] }
  0x2f   :  { %3560 = vmatprep.mubr.msk.f32.mxu1 %vm819_vm1, %v769_v49  ;;  %v800_v49 = vld [vmem:[%s5283_s1 + $0x1a8] sm:$0xff] }
  0x30   :  { %3457 = vmatmul.mubr.msk.f32.gmra.mxu0 %vm101_vm2, %v51_v50  ;;  %v801_v50 = vld [vmem:[%s5283_s1 + $0x1b0] sm:$0xff] }
  0x31   :  { %3459 = vmatprep.mubr.msk.f32.mxu0 %vm101_vm2, %v52_v51  ;;  %v83_v51 = vld [vmem:[%s5284_s0 + $0x198] sm:$0xff] }
  0x32   :  { %3561 = vmatmul.mubr.msk.f32.gmra.mxu1 %vm819_vm1, %v770_v52  ;;  %v84_v52 = vld [vmem:[%s5284_s0 + $0x1a0] sm:$0xff] }
  0x33   :  { %3563 = vmatprep.mubr.msk.f32.mxu1 %vm819_vm1, %v771_v53  ;;  %v802_v53 = vld [vmem:[%s5283_s1 + $0x1b8] sm:$0xff] }
  0x34   :  { %3460 = vmatmul.mubr.msk.f32.gmra.mxu0 %vm101_vm2, %v53_v54  ;;  %v803_v54 = vld [vmem:[%s5283_s1 + $0x1c0] sm:$0xff] }
  0x35   :  { %3462 = vmatprep.mubr.msk.f32.mxu0 %vm101_vm2, %v54_v55  ;;  %v85_v55 = vld [vmem:[%s5284_s0 + $0x1a8] sm:$0xff] }
  0x36   :  { %3564 = vmatmul.mubr.msk.f32.gmra.mxu1 %vm819_vm1, %v772_v56  ;;  %v86_v56 = vld [vmem:[%s5284_s0 + $0x1b0] sm:$0xff] }
  0x37   :  { %3566 = vmatprep.mubr.msk.f32.mxu1 %vm819_vm1, %v773_v57  ;;  %v804_v57 = vld [vmem:[%s5283_s1 + $0x1c8] sm:$0xff] }
  0x38   :  { %3463 = vmatmul.mubr.msk.f32.gmra.mxu0 %vm101_vm2, %v55_v58  ;;  %v805_v58 = vld [vmem:[%s5283_s1 + $0x1d0] sm:$0xff] }
  0x39   :  { %3465 = vmatprep.mubr.msk.f32.mxu0 %vm101_vm2, %v56_v59  ;;  %v87_v59 = vld [vmem:[%s5284_s0 + $0x1b8] sm:$0xff] }
  0x3a   :  { %3567 = vmatmul.mubr.msk.f32.gmra.mxu1 %vm819_vm1, %v774_v60  ;;  %v88_v60 = vld [vmem:[%s5284_s0 + $0x1c0] sm:$0xff] }
  0x3b   :  { %3569 = vmatprep.mubr.msk.f32.mxu1 %vm819_vm1, %v775_v61  ;;  %v806_v61 = vld [vmem:[%s5283_s1 + $0x1d8] sm:$0xff] }
  0x3c   :  { %3466 = vmatmul.mubr.msk.f32.gmra.mxu0 %vm101_vm2, %v57_v62  ;;  %v807_v62 = vld [vmem:[%s5283_s1 + $0x1e0] sm:$0xff] }
  0x3d   :  { %3468 = vmatprep.mubr.msk.f32.mxu0 %vm101_vm2, %v58_v63  ;;  %v89_v63 = vld [vmem:[%s5284_s0 + $0x1c8] sm:$0xff] }
  0x3e   :  { %3570 = vmatmul.mubr.msk.f32.gmra.mxu1 %vm819_vm1, %v776_v0  ;;  %v90_v0 = vld [vmem:[%s5284_s0 + $0x1d0] sm:$0xff] }
  0x3f   :  { %3572 = vmatprep.mubr.msk.f32.mxu1 %vm819_vm1, %v777_v1  ;;  %v808_v1 = vld [vmem:[%s5283_s1 + $0x1e8] sm:$0xff] }
  0x40   :  { %3469 = vmatmul.mubr.msk.f32.gmra.mxu0 %vm101_vm2, %v59_v2  ;;  %v809_v2 = vld [vmem:[%s5283_s1 + $0x1f0] sm:$0xff] }
  0x41   :  { %3471 = vmatprep.mubr.msk.f32.mxu0 %vm101_vm2, %v60_v3  ;;  %v91_v3 = vld [vmem:[%s5284_s0 + $0x1d8] sm:$0xff] }
  0x42   :  { %3573 = vmatmul.mubr.msk.f32.gmra.mxu1 %vm819_vm1, %v778_v4  ;;  %v92_v4 = vld [vmem:[%s5284_s0 + $0x1e0] sm:$0xff] }
  0x43   :  { %3575 = vmatprep.mubr.msk.f32.mxu1 %vm819_vm1, %v779_v5  ;;  %v810_v5 = vld [vmem:[%s5283_s1 + $0x1f8] sm:$0xff] }
  0x44   :  { %3472 = vmatmul.mubr.msk.f32.gmra.mxu0 %vm101_vm2, %v61_v6  ;;  %v1465_v6 = vld [vmem:[%s5287_s2] sm:$0xff] }
  0x45   :  { %3474 = vmatprep.mubr.msk.f32.mxu0 %vm101_vm2, %v62_v7  ;;  %v93_v7 = vld [vmem:[%s5284_s0 + $0x1e8] sm:$0xff] }
  0x46   :  { %3576 = vmatmul.mubr.msk.f32.gmra.mxu1 %vm819_vm1, %v780_v8  ;;  %v94_v8 = vld [vmem:[%s5284_s0 + $0x1f0] sm:$0xff] }
  0x47   :  { %3578 = vmatprep.mubr.msk.f32.mxu1 %vm819_vm1, %v781_v9  ;;  %v1466_v9 = vld [vmem:[%s5287_s2 + $0x8] sm:$0xff] }
  0x48   :  { %3475 = vmatmul.mubr.msk.f32.gmra.mxu0 %vm101_vm2, %v63_v10  ;;  %v1467_v10 = vld [vmem:[%s5287_s2 + $0x10] sm:$0xff] }
  0x49   :  { %3477 = vmatprep.mubr.msk.f32.mxu0 %vm101_vm2, %v64_v11  ;;  %v95_v11 = vld [vmem:[%s5284_s0 + $0x1f8] sm:$0xff] }
  0x4a   :  { %3579 = vmatmul.mubr.msk.f32.gmra.mxu1 %vm819_vm1, %v782_v12  ;;  %v1468_v12 = vld [vmem:[%s5287_s2 + $0x18] sm:$0xff] }
  0x4b   :  { %3581 = vmatprep.mubr.msk.f32.mxu1 %vm819_vm1, %v783_v13  ;;  %v1469_v13 = vld [vmem:[%s5287_s2 + $0x20] sm:$0xff] }
  0x4c   :  { %3478 = vmatmul.mubr.msk.f32.gmra.mxu0 %vm101_vm2, %v65_v14  ;;  %v1471_v14 = vld [vmem:[%s5287_s2 + $0x30] sm:$0xff] }
  0x4d   :  { %3480 = vmatprep.mubr.msk.f32.mxu0 %vm101_vm2, %v66_v15  ;;  %v1472_v15 = vld [vmem:[%s5287_s2 + $0x38] sm:$0xff] }
  0x4e   :  { %3582 = vmatmul.mubr.msk.f32.gmra.mxu1 %vm819_vm1, %v784_v16  ;;  %v1473_v16 = vld [vmem:[%s5287_s2 + $0x40] sm:$0xff] }
  0x4f   :  { %3584 = vmatprep.mubr.msk.f32.mxu1 %vm819_vm1, %v785_v17  ;;  %v1474_v17 = vld [vmem:[%s5287_s2 + $0x48] sm:$0xff] }
  0x50   :  { %3481 = vmatmul.mubr.msk.f32.gmra.mxu0 %vm101_vm2, %v67_v18  ;;  %v1475_v18 = vld [vmem:[%s5287_s2 + $0x50] sm:$0xff] }
  0x51   :  { %3483 = vmatprep.mubr.msk.f32.mxu0 %vm101_vm2, %v68_v19  ;;  %v1476_v19 = vld [vmem:[%s5287_s2 + $0x58] sm:$0xff] }
  0x52   :  { %3585 = vmatmul.mubr.msk.f32.gmra.mxu1 %vm819_vm1, %v786_v20  ;;  %v1477_v20 = vld [vmem:[%s5287_s2 + $0x60] sm:$0xff] }
  0x53   :  { %3587 = vmatprep.mubr.msk.f32.mxu1 %vm819_vm1, %v787_v21  ;;  %v1478_v21 = vld [vmem:[%s5287_s2 + $0x68] sm:$0xff] }
  0x54   :  { %3484 = vmatmul.mubr.msk.f32.gmra.mxu0 %vm101_vm2, %v69_v22  ;;  %v1479_v22 = vld [vmem:[%s5287_s2 + $0x70] sm:$0xff] }
  0x55   :  { %3486 = vmatprep.mubr.msk.f32.mxu0 %vm101_vm2, %v70_v23  ;;  %v1480_v23 = vld [vmem:[%s5287_s2 + $0x78] sm:$0xff] }
  0x56   :  { %3588 = vmatmul.mubr.msk.f32.gmra.mxu1 %vm819_vm1, %v788_v24  ;;  %v1481_v24 = vld [vmem:[%s5287_s2 + $0x80] sm:$0xff] }
  0x57   :  { %3590 = vmatprep.mubr.msk.f32.mxu1 %vm819_vm1, %v789_v25  ;;  %v1482_v25 = vld [vmem:[%s5287_s2 + $0x88] sm:$0xff] }
  0x58   :  { %3487 = vmatmul.mubr.msk.f32.gmra.mxu0 %vm101_vm2, %v71_v26  ;;  %v1483_v26 = vld [vmem:[%s5287_s2 + $0x90] sm:$0xff] }
  0x59   :  { %3489 = vmatprep.mubr.msk.f32.mxu0 %vm101_vm2, %v72_v27  ;;  %v1484_v27 = vld [vmem:[%s5287_s2 + $0x98] sm:$0xff] }
  0x5a   :  { %3591 = vmatmul.mubr.msk.f32.gmra.mxu1 %vm819_vm1, %v790_v28  ;;  %v1485_v28 = vld [vmem:[%s5287_s2 + $0xa0] sm:$0xff] }
  0x5b   :  { %3593 = vmatprep.mubr.msk.f32.mxu1 %vm819_vm1, %v791_v29  ;;  %v1486_v29 = vld [vmem:[%s5287_s2 + $0xa8] sm:$0xff] }
  0x5c   :  { %3490 = vmatmul.mubr.msk.f32.gmra.mxu0 %vm101_vm2, %v73_v30  ;;  %v1487_v30 = vld [vmem:[%s5287_s2 + $0xb0] sm:$0xff] }
  0x5d   :  { %3492 = vmatprep.mubr.msk.f32.mxu0 %vm101_vm2, %v74_v31  ;;  %v1488_v31 = vld [vmem:[%s5287_s2 + $0xb8] sm:$0xff] }
  0x5e   :  { %3594 = vmatmul.mubr.msk.f32.gmra.mxu1 %vm819_vm1, %v792_v32  ;;  %v1489_v32 = vld [vmem:[%s5287_s2 + $0xc0] sm:$0xff] }
  0x5f   :  { %3596 = vmatprep.mubr.msk.f32.mxu1 %vm819_vm1, %v793_v33  ;;  %v1490_v33 = vld [vmem:[%s5287_s2 + $0xc8] sm:$0xff] }
  0x60   :  { %3493 = vmatmul.mubr.msk.f32.gmra.mxu0 %vm101_vm2, %v75_v35  ;;  %v1491_v35 = vld [vmem:[%s5287_s2 + $0xd0] sm:$0xff] }
  0x61   :  { %3495 = vmatprep.mubr.msk.f32.mxu0 %vm101_vm2, %v76_v36  ;;  %v1492_v36 = vld [vmem:[%s5287_s2 + $0xd8] sm:$0xff] }
  0x62   :  { %3597 = vmatmul.mubr.msk.f32.gmra.mxu1 %vm819_vm1, %v794_v37  ;;  %v1493_v37 = vld [vmem:[%s5287_s2 + $0xe0] sm:$0xff] }
  0x63   :  { %3599 = vmatprep.mubr.msk.f32.mxu1 %vm819_vm1, %v795_v38  ;;  %v1494_v38 = vld [vmem:[%s5287_s2 + $0xe8] sm:$0xff] }
  0x64   :  { %3496 = vmatmul.mubr.msk.f32.gmra.mxu0 %vm101_vm2, %v77_v39  ;;  %v1495_v39 = vld [vmem:[%s5287_s2 + $0xf0] sm:$0xff] }
  0x65   :  { %3498 = vmatprep.mubr.msk.f32.mxu0 %vm101_vm2, %v78_v40  ;;  %v1496_v40 = vld [vmem:[%s5287_s2 + $0xf8] sm:$0xff] }
  0x66   :  { %3600 = vmatmul.mubr.msk.f32.gmra.mxu1 %vm819_vm1, %v796_v41  ;;  %v1497_v41 = vld [vmem:[%s5287_s2 + $0x100] sm:$0xff] }
  0x67   :  { %3602 = vmatprep.mubr.msk.f32.mxu1 %vm819_vm1, %v797_v42  ;;  %v1498_v42 = vld [vmem:[%s5287_s2 + $0x108] sm:$0xff] }
  0x68   :  { %3499 = vmatmul.mubr.msk.f32.gmra.mxu0 %vm101_vm2, %v79_v43  ;;  %v1499_v43 = vld [vmem:[%s5287_s2 + $0x110] sm:$0xff] }
  0x69   :  { %3501 = vmatprep.mubr.msk.f32.mxu0 %vm101_vm2, %v80_v44 }
  0x6a   :  { %3603 = vmatmul.mubr.msk.f32.gmra.mxu1 %vm819_vm1, %v798_v45  ;;  %v1500_v45 = vld [vmem:[%s5287_s2 + $0x118] sm:$0xff] }
  0x6b   :  { %3605 = vmatprep.mubr.msk.f32.mxu1 %vm819_vm1, %v799_v46 }
  0x6c   :  { %3502 = vmatmul.mubr.msk.f32.gmra.mxu0 %vm101_vm2, %v81_v47  ;;  %v1501_v47 = vld [vmem:[%s5287_s2 + $0x120] sm:$0xff] }
  0x6d   :  { %3504 = vmatprep.mubr.msk.f32.mxu0 %vm101_vm2, %v82_v48 }
  0x6e   :  { %3606 = vmatmul.mubr.msk.f32.gmra.mxu1 %vm819_vm1, %v800_v49  ;;  %v4573_v49 = vld [vmem:[%s5288_s5] ss:$0 sm:$0xff] }
  0x6f   :  { %3608 = vmatprep.mubr.msk.f32.mxu1 %vm819_vm1, %v801_v50  ;;  %v1502_v50 = vld [vmem:[%s5287_s2 + $0x128] sm:$0xff] }
  0x70   :  { %3505 = vmatmul.mubr.msk.f32.gmra.mxu0 %vm101_vm2, %v83_v51 }
  0x71   :  { %3507 = vmatprep.mubr.msk.f32.mxu0 %vm101_vm2, %v84_v52 }
  0x72   :  { %3609 = vmatmul.mubr.msk.f32.gmra.mxu1 %vm819_vm1, %v802_v53  ;;  %v1503_v53 = vld [vmem:[%s5287_s2 + $0x130] sm:$0xff] }
  0x73   :  { %3611 = vmatprep.mubr.msk.f32.mxu1 %vm819_vm1, %v803_v54 }
  0x74   :  { %3508 = vmatmul.mubr.msk.f32.gmra.mxu0 %vm101_vm2, %v85_v55 }
  0x75   :  { %3510 = vmatprep.mubr.msk.f32.mxu0 %vm101_vm2, %v86_v56 }
  0x76   :  { %3612 = vmatmul.mubr.msk.f32.gmra.mxu1 %vm819_vm1, %v804_v57 }
  0x77   :  { %3614 = vmatprep.mubr.msk.f32.mxu1 %vm819_vm1, %v805_v58 }
  0x78   :  { %3511 = vmatmul.mubr.msk.f32.gmra.mxu0 %vm101_vm2, %v87_v59 }
  0x79   :  { %3513 = vmatprep.mubr.msk.f32.mxu0 %vm101_vm2, %v88_v60  ;;  %v1504_v60 = vld [vmem:[%s5287_s2 + $0x138] sm:$0xff] }
  0x7a   :  { %3615 = vmatmul.mubr.msk.f32.gmra.mxu1 %vm819_vm1, %v806_v61 }
  0x7b   :  { %3617 = vmatprep.mubr.msk.f32.mxu1 %vm819_vm1, %v807_v62 }
  0x7c   :  { %3514 = vmatmul.mubr.msk.f32.gmra.mxu0 %vm101_vm2, %v89_v63  ;;  %v1505_v63 = vld [vmem:[%s5287_s2 + $0x140] sm:$0xff] }
  0x7d   :  { %3516 = vmatprep.mubr.msk.f32.mxu0 %vm101_vm2, %v90_v0 }
  0x7e   :  { %3618 = vmatmul.mubr.msk.f32.gmra.mxu1 %vm819_vm1, %v808_v1 }
  0x7f   :  { %3620 = vmatprep.mubr.msk.f32.mxu1 %vm819_vm1, %v809_v2 }
  0x80   :  { %3517 = vmatmul.mubr.msk.f32.gmra.mxu0 %vm101_vm2, %v91_v3 }
  0x81   :  { %3519 = vmatprep.mubr.msk.f32.mxu0 %vm101_vm2, %v92_v4 }
  0x82   :  { %3621 = vmatmul.mubr.msk.f32.gmra.mxu1 %vm819_vm1, %v810_v5 }
  0x83   :  { %3625 = vmatprep.mubr.msk.f32.mxu1 %vm819_vm1, %v1465_v6 }
  0x84   :  { %3520 = vmatmul.mubr.msk.f32.gmra.mxu0 %vm101_vm2, %v93_v7 }
  0x85   :  { %3522 = vmatprep.mubr.msk.f32.mxu0 %vm101_vm2, %v94_v8  ;;  %v1506_v8 = vld [vmem:[%s5287_s2 + $0x148] sm:$0xff] }
  0x86   :  { %3626 = vmatmul.mubr.msk.f32.vlgmr.msra.gmra.mxu1 %vm819_vm1, %v1466_v9 }
  0x87   :  { %3820 = vmatpush3.msk.msra.mxu1 %vm294_vm0, %v4006_v34  ;;  %3628 = vmatprep.mubr.msk.f32.mxu1 %vm819_vm1, %v1467_v10  ;;  %v1470_v34 = vld [vmem:[%s5287_s2 + $0x28] sm:$0xff] }
  0x88   :  { %3523 = vmatmul.mubr.msk.f32.gmra.mxu0 %vm101_vm2, %v95_v11  ;;  %v1507_v11 = vld [vmem:[%s5287_s2 + $0x150] sm:$0xff] }
  0x8a   :  { %3629 = vmatmul.mubr.msk.f32.gmra.mxu1 %vm819_vm1, %v1468_v12 }
  0x8b   :  { %3631 = vmatprep.mubr.msk.f32.mxu1 %vm819_vm1, %v1469_v13 }
  0x8e   :  { %3632 = vmatmul.mubr.msk.f32.gmra.mxu1 %vm819_vm1, %v1470_v34 }
  0x8f   :  { %3634 = vmatprep.mubr.msk.f32.mxu1 %vm819_vm1, %v1471_v14 }
  0x92   :  { %3635 = vmatmul.mubr.msk.f32.gmra.mxu1 %vm819_vm1, %v1472_v15 }
  0x93   :  { %3637 = vmatprep.mubr.msk.f32.mxu1 %vm819_vm1, %v1473_v16 }
  0x96   :  { %3638 = vmatmul.mubr.msk.f32.gmra.mxu1 %vm819_vm1, %v1474_v17 }
  0x97   :  { %3640 = vmatprep.mubr.msk.f32.mxu1 %vm819_vm1, %v1475_v18 }
  0x9a   :  { %3641 = vmatmul.mubr.msk.f32.gmra.mxu1 %vm819_vm1, %v1476_v19  ;;  %v1508_v19 = vld [vmem:[%s5287_s2 + $0x158] sm:$0xff] }
  0x9b   :  { %3643 = vmatprep.mubr.msk.f32.mxu1 %vm819_vm1, %v1477_v20 }
  0x9e   :  { %3644 = vmatmul.mubr.msk.f32.gmra.mxu1 %vm819_vm1, %v1478_v21 }
  0x9f   :  { %3646 = vmatprep.mubr.msk.f32.mxu1 %vm819_vm1, %v1479_v22  ;;  %v1509_v22 = vld [vmem:[%s5287_s2 + $0x160] sm:$0xff] }
  0xa2   :  { %3647 = vmatmul.mubr.msk.f32.gmra.mxu1 %vm819_vm1, %v1480_v23 }
  0xa3   :  { %3649 = vmatprep.mubr.msk.f32.mxu1 %vm819_vm1, %v1481_v24 }
  0xa6   :  { %3650 = vmatmul.mubr.msk.f32.gmra.mxu1 %vm819_vm1, %v1482_v25 }
  0xa7   :  { %3652 = vmatprep.mubr.msk.f32.mxu1 %vm819_vm1, %v1483_v26 }
  0xaa   :  { %3653 = vmatmul.mubr.msk.f32.gmra.mxu1 %vm819_vm1, %v1484_v27 }
  0xab   :  { %3655 = vmatprep.mubr.msk.f32.mxu1 %vm819_vm1, %v1485_v28 }
  0xae   :  { %3656 = vmatmul.mubr.msk.f32.gmra.mxu1 %vm819_vm1, %v1486_v29 }
  0xaf   :  { %3658 = vmatprep.mubr.msk.f32.mxu1 %vm819_vm1, %v1487_v30 }
  0xb2   :  { %3659 = vmatmul.mubr.msk.f32.gmra.mxu1 %vm819_vm1, %v1488_v31  ;;  %v1510_v31 = vld [vmem:[%s5287_s2 + $0x168] sm:$0xff] }
  0xb3   :  { %3661 = vmatprep.mubr.msk.f32.mxu1 %vm819_vm1, %v1489_v32 }
  0xb6   :  { %3662 = vmatmul.mubr.msk.f32.gmra.mxu1 %vm819_vm1, %v1490_v33 }
  0xb7   :  { %3664 = vmatprep.mubr.msk.f32.mxu1 %vm819_vm1, %v1491_v35  ;;  %v1511_v35 = vld [vmem:[%s5287_s2 + $0x170] sm:$0xff] }
  0xba   :  { %3665 = vmatmul.mubr.msk.f32.gmra.mxu1 %vm819_vm1, %v1492_v36 }
  0xbb   :  { %3667 = vmatprep.mubr.msk.f32.mxu1 %vm819_vm1, %v1493_v37 }
  0xbe   :  { %3668 = vmatmul.mubr.msk.f32.gmra.mxu1 %vm819_vm1, %v1494_v38 }
  0xbf   :  { %3670 = vmatprep.mubr.msk.f32.mxu1 %vm819_vm1, %v1495_v39 }
  0xc2   :  { %3671 = vmatmul.mubr.msk.f32.gmra.mxu1 %vm819_vm1, %v1496_v40 }
  0xc3   :  { %3673 = vmatprep.mubr.msk.f32.mxu1 %vm819_vm1, %v1497_v41 }
  0xc6   :  { %v3529_v44 = vpop.f32.mrf.mxu1  ;;  %3674 = vmatmul.mubr.msk.f32.gmra.mxu1 %vm819_vm1, %v1498_v42 }
  0xc7   :  { %3676 = vmatprep.mubr.msk.f32.mxu1 %vm819_vm1, %v1499_v43  ;;  %v1087_v54 = vadd.f32 %v3529_v44, %v4573_v49  ;;  %v1512_v44 = vld [vmem:[%s5287_s2 + $0x178] sm:$0xff] }
  0xc8   :  { %v1081_v46 = vpop.f32.mrf.mxu1 }
  0xc9   :  { %v1082_v58 = vadd.f32 %v4573_v49, %v1081_v46 }
  0xca   :  { %v3532_v48 = vpop.f32.mrf.mxu1  ;;  %3677 = vmatmul.mubr.msk.f32.gmra.mxu1 %vm819_vm1, %v1500_v45 }
  0xcb   :  { %3679 = vmatprep.mubr.msk.f32.mxu1 %vm819_vm1, %v1501_v47  ;;  %v1097_v2 = vadd.f32 %v3532_v48, %v4573_v49  ;;  %v1513_v47 = vld [vmem:[%s5287_s2 + $0x180] sm:$0xff] }
  0xcc   :  { %v3431_v51 = vpop.f32.mrf.mxu0  ;;  %v1091_v52 = vpop.f32.mrf.mxu1 }
  0xcd   :  { %v684_v55 = vmax.f32 %v3431_v51, 0.0  ;;  %v1092_v6 = vadd.f32 %v4573_v49, %v1091_v52 }
  0xce   :  { %v364_v56 = vpop.f32.mrf.mxu0  ;;  %v3535_v57 = vpop.f32.mrf.mxu1  ;;  %3680 = vmatmul.mubr.msk.f32.gmra.mxu1 %vm819_vm1, %v1502_v50 }
  0xcf   :  { %v683_v59 = vmax.f32 %v364_v56, 0.0  ;;  %3682 = vmatprep.mubr.msk.f32.mxu1 %vm819_vm1, %v1503_v53  ;;  %v1401_v1 = vadd.f32 %v1087_v54, %v684_v55  ;;  %v1107_v34 = vadd.f32 %v3535_v57, %v4573_v49  ;;  %v1514_v57 = vld [vmem:[%s5287_s2 + $0x188] sm:$0xff] }
  0xd0   :  { %v3434_v61 = vpop.f32.mrf.mxu0  ;;  %v1101_v62 = vpop.f32.mrf.mxu1 }
  0xd1   :  { %v1400_v0 = vadd.f32 %v1082_v58, %v683_v59  ;;  %v686_v3 = vmax.f32 %v3434_v61, 0.0  ;;  %v1102_v17 = vadd.f32 %v4573_v49, %v1101_v62 }
  0xd2   :  { %v374_v4 = vpop.f32.mrf.mxu0  ;;  %v3538_v5 = vpop.f32.mrf.mxu1  ;;  %3683 = vmatmul.mubr.msk.f32.gmra.mxu1 %vm819_vm1, %v1504_v60  ;;  %v1515_v60 = vld [vmem:[%s5287_s2 + $0x190] sm:$0xff] }
  0xd3   :  { %v685_v7 = vmax.f32 %v374_v4, 0.0  ;;  %3723 = vmatprep.mubr.msk.f32.mxu0 %vm819_vm1, %v1400_v0  ;;  %3685 = vmatprep.mubr.msk.f32.mxu1 %vm819_vm1, %v1505_v63  ;;  %v1403_v13 = vadd.f32 %v1097_v2, %v686_v3  ;;  %v1117_v25 = vadd.f32 %v3538_v5, %v4573_v49  ;;  %v1516_v5 = vld [vmem:[%s5287_s2 + $0x198] sm:$0xff] }
  0xd4   :  { %v3437_v9 = vpop.f32.mrf.mxu0  ;;  %3724 = vmatmul.mubr.msk.f32.vlgmr.msra.gmra.mxu0 %vm819_vm1, %v1401_v1  ;;  %v1111_v10 = vpop.f32.mrf.mxu1 }
  0xd5   :  { %v1402_v12 = vadd.f32 %v1092_v6, %v685_v7  ;;  %v688_v14 = vmax.f32 %v3437_v9, 0.0  ;;  %v1112_v29 = vadd.f32 %v4573_v49, %v1111_v10 }
  0xd6   :  { %v384_v15 = vpop.f32.mrf.mxu0  ;;  %v3541_v16 = vpop.f32.mrf.mxu1  ;;  %3686 = vmatmul.mubr.msk.f32.gmra.mxu1 %vm819_vm1, %v1506_v8  ;;  %v1517_v8 = vld [vmem:[%s5287_s2 + $0x1a0] sm:$0xff] }
  0xd7   :  { %v687_v18 = vmax.f32 %v384_v15, 0.0  ;;  %3726 = vmatprep.mubr.msk.f32.mxu0 %vm819_vm1, %v1402_v12  ;;  %3688 = vmatprep.mubr.msk.f32.mxu1 %vm819_vm1, %v1507_v11  ;;  %v1405_v24 = vadd.f32 %v1107_v34, %v688_v14  ;;  %v1127_v38 = vadd.f32 %v3541_v16, %v4573_v49  ;;  %v1518_v16 = vld [vmem:[%s5287_s2 + $0x1a8] sm:$0xff] }
  0xd8   :  { %v3440_v20 = vpop.f32.mrf.mxu0  ;;  %3727 = vmatmul.mubr.msk.f32.gmra.mxu0 %vm819_vm1, %v1403_v13  ;;  %v1121_v21 = vpop.f32.mrf.mxu1 }
  0xd9   :  { %v1404_v23 = vadd.f32 %v1102_v17, %v687_v18  ;;  %v690_v26 = vmax.f32 %v3440_v20, 0.0  ;;  %v1122_v42 = vadd.f32 %v4573_v49, %v1121_v21 }
  0xda   :  { %v394_v27 = vpop.f32.mrf.mxu0  ;;  %v3544_v28 = vpop.f32.mrf.mxu1  ;;  %3689 = vmatmul.mubr.msk.f32.gmra.mxu1 %vm819_vm1, %v1508_v19  ;;  %v1519_v19 = vld [vmem:[%s5287_s2 + $0x1b0] sm:$0xff] }
  0xdb   :  { %v689_v30 = vmax.f32 %v394_v27, 0.0  ;;  %3729 = vmatprep.mubr.msk.f32.mxu0 %vm819_vm1, %v1404_v23  ;;  %3691 = vmatprep.mubr.msk.f32.mxu1 %vm819_vm1, %v1509_v22  ;;  %v1407_v37 = vadd.f32 %v1117_v25, %v690_v26  ;;  %v1137_v51 = vadd.f32 %v3544_v28, %v4573_v49  ;;  %v1520_v28 = vld [vmem:[%s5287_s2 + $0x1b8] sm:$0xff] }
  0xdc   :  { %v3443_v32 = vpop.f32.mrf.mxu0  ;;  %3730 = vmatmul.mubr.msk.f32.gmra.mxu0 %vm819_vm1, %v1405_v24  ;;  %v1131_v33 = vpop.f32.mrf.mxu1 }
  0xdd   :  { %v1406_v36 = vadd.f32 %v1112_v29, %v689_v30  ;;  %v692_v39 = vmax.f32 %v3443_v32, 0.0  ;;  %v1132_v55 = vadd.f32 %v4573_v49, %v1131_v33 }
  0xde   :  { %v404_v40 = vpop.f32.mrf.mxu0  ;;  %v3547_v41 = vpop.f32.mrf.mxu1  ;;  %3692 = vmatmul.mubr.msk.f32.gmra.mxu1 %vm819_vm1, %v1510_v31  ;;  %v1521_v31 = vld [vmem:[%s5287_s2 + $0x1c0] sm:$0xff] }
  0xdf   :  { %v691_v43 = vmax.f32 %v404_v40, 0.0  ;;  %3732 = vmatprep.mubr.msk.f32.mxu0 %vm819_vm1, %v1406_v36  ;;  %3694 = vmatprep.mubr.msk.f32.mxu1 %vm819_vm1, %v1511_v35  ;;  %v1409_v50 = vadd.f32 %v1127_v38, %v692_v39  ;;  %v1147_v63 = vadd.f32 %v3547_v41, %v4573_v49  ;;  %v1522_v41 = vld [vmem:[%s5287_s2 + $0x1c8] sm:$0xff] }
  0xe0   :  { %v3446_v45 = vpop.f32.mrf.mxu0  ;;  %3733 = vmatmul.mubr.msk.f32.gmra.mxu0 %vm819_vm1, %v1407_v37  ;;  %v1141_v46 = vpop.f32.mrf.mxu1 }
  0xe1   :  { %v1408_v48 = vadd.f32 %v1122_v42, %v691_v43  ;;  %v694_v52 = vmax.f32 %v3446_v45, 0.0  ;;  %v1142_v3 = vadd.f32 %v4573_v49, %v1141_v46 }
  0xe2   :  { %v414_v53 = vpop.f32.mrf.mxu0  ;;  %v3550_v54 = vpop.f32.mrf.mxu1  ;;  %3695 = vmatmul.mubr.msk.f32.gmra.mxu1 %vm819_vm1, %v1512_v44  ;;  %v1523_v44 = vld [vmem:[%s5287_s2 + $0x1d0] sm:$0xff] }
  0xe3   :  { %v693_v56 = vmax.f32 %v414_v53, 0.0  ;;  %3735 = vmatprep.mubr.msk.f32.mxu0 %vm819_vm1, %v1408_v48  ;;  %3697 = vmatprep.mubr.msk.f32.mxu1 %vm819_vm1, %v1513_v47  ;;  %v1411_v62 = vadd.f32 %v1137_v51, %v694_v52  ;;  %v1157_v11 = vadd.f32 %v3550_v54, %v4573_v49  ;;  %v1524_v54 = vld [vmem:[%s5287_s2 + $0x1d8] sm:$0xff] }
  0xe4   :  { %v3449_v58 = vpop.f32.mrf.mxu0  ;;  %3736 = vmatmul.mubr.msk.f32.gmra.mxu0 %vm819_vm1, %v1409_v50  ;;  %v1151_v59 = vpop.f32.mrf.mxu1 }
  0xe5   :  { %v1410_v61 = vadd.f32 %v1132_v55, %v693_v56  ;;  %v696_v0 = vmax.f32 %v3449_v58, 0.0  ;;  %v1152_v14 = vadd.f32 %v4573_v49, %v1151_v59 }
  0xe6   :  { %v424_v1 = vpop.f32.mrf.mxu0  ;;  %v3553_v2 = vpop.f32.mrf.mxu1  ;;  %3698 = vmatmul.mubr.msk.f32.gmra.mxu1 %vm819_vm1, %v1514_v57  ;;  %v1525_v57 = vld [vmem:[%s5287_s2 + $0x1e0] sm:$0xff] }
  0xe7   :  { %v695_v4 = vmax.f32 %v424_v1, 0.0  ;;  %3738 = vmatprep.mubr.msk.f32.mxu0 %vm819_vm1, %v1410_v61  ;;  %3700 = vmatprep.mubr.msk.f32.mxu1 %vm819_vm1, %v1515_v60  ;;  %v1413_v10 = vadd.f32 %v1147_v63, %v696_v0  ;;  %v1167_v22 = vadd.f32 %v3553_v2, %v4573_v49  ;;  %v1526_v2 = vld [vmem:[%s5287_s2 + $0x1e8] sm:$0xff] }
  0xe8   :  { %v3452_v6 = vpop.f32.mrf.mxu0  ;;  %3739 = vmatmul.mubr.msk.f32.gmra.mxu0 %vm819_vm1, %v1411_v62  ;;  %v1161_v7 = vpop.f32.mrf.mxu1 }
  0xe9   :  { %v1412_v9 = vadd.f32 %v1142_v3, %v695_v4  ;;  %v698_v12 = vmax.f32 %v3452_v6, 0.0  ;;  %v1162_v26 = vadd.f32 %v4573_v49, %v1161_v7 }
  0xea   :  { %v434_v13 = vpop.f32.mrf.mxu0  ;;  %v3556_v34 = vpop.f32.mrf.mxu1  ;;  %3701 = vmatmul.mubr.msk.f32.gmra.mxu1 %vm819_vm1, %v1516_v5  ;;  %v1527_v5 = vld [vmem:[%s5287_s2 + $0x1f0] sm:$0xff] }
  0xeb   :  { %v697_v15 = vmax.f32 %v434_v13, 0.0  ;;  %3741 = vmatprep.mubr.msk.f32.mxu0 %vm819_vm1, %v1412_v9  ;;  %3703 = vmatprep.mubr.msk.f32.mxu1 %vm819_vm1, %v1517_v8  ;;  %v1415_v21 = vadd.f32 %v1157_v11, %v698_v12  ;;  %v1177_v35 = vadd.f32 %v3556_v34, %v4573_v49  ;;  %v1528_v34 = vld [vmem:[%s5287_s2 + $0x1f8] sm:$0xff] }
  0xec   :  { %v3455_v17 = vpop.f32.mrf.mxu0  ;;  %3742 = vmatmul.mubr.msk.f32.gmra.mxu0 %vm819_vm1, %v1413_v10  ;;  %v1171_v18 = vpop.f32.mrf.mxu1 }
  0xed   :  { %v1414_v20 = vadd.f32 %v1152_v14, %v697_v15  ;;  %v700_v23 = vmax.f32 %v3455_v17, 0.0  ;;  %v1172_v39 = vadd.f32 %v4573_v49, %v1171_v18 }
  0xee   :  { %v444_v24 = vpop.f32.mrf.mxu0  ;;  %v3559_v25 = vpop.f32.mrf.mxu1  ;;  %3704 = vmatmul.mubr.msk.f32.gmra.mxu1 %vm819_vm1, %v1518_v16 }
  0xef   :  { %v699_v27 = vmax.f32 %v444_v24, 0.0  ;;  %3744 = vmatprep.mubr.msk.f32.mxu0 %vm819_vm1, %v1414_v20  ;;  %3706 = vmatprep.mubr.msk.f32.mxu1 %vm819_vm1, %v1519_v19  ;;  %v1417_v33 = vadd.f32 %v1167_v22, %v700_v23  ;;  %v1187_v47 = vadd.f32 %v3559_v25, %v4573_v49 }
  0xf0   :  { %v3458_v29 = vpop.f32.mrf.mxu0  ;;  %3745 = vmatmul.mubr.msk.f32.gmra.mxu0 %vm819_vm1, %v1415_v21  ;;  %v1181_v30 = vpop.f32.mrf.mxu1 }
  0xf1   :  { %v1416_v32 = vadd.f32 %v1162_v26, %v699_v27  ;;  %v702_v36 = vmax.f32 %v3458_v29, 0.0  ;;  %v1182_v52 = vadd.f32 %v4573_v49, %v1181_v30 }
  0xf2   :  { %v454_v37 = vpop.f32.mrf.mxu0  ;;  %v3562_v38 = vpop.f32.mrf.mxu1  ;;  %3707 = vmatmul.mubr.msk.f32.gmra.mxu1 %vm819_vm1, %v1520_v28 }
  0xf3   :  { %v701_v40 = vmax.f32 %v454_v37, 0.0  ;;  %3747 = vmatprep.mubr.msk.f32.mxu0 %vm819_vm1, %v1416_v32  ;;  %3709 = vmatprep.mubr.msk.f32.mxu1 %vm819_vm1, %v1521_v31  ;;  %v1419_v46 = vadd.f32 %v1177_v35, %v702_v36  ;;  %v1197_v60 = vadd.f32 %v3562_v38, %v4573_v49 }
  0xf4   :  { %v3461_v42 = vpop.f32.mrf.mxu0  ;;  %3748 = vmatmul.mubr.msk.f32.gmra.mxu0 %vm819_vm1, %v1417_v33  ;;  %v1191_v43 = vpop.f32.mrf.mxu1 }
  0xf5   :  { %v1418_v45 = vadd.f32 %v1172_v39, %v701_v40  ;;  %v704_v48 = vmax.f32 %v3461_v42, 0.0  ;;  %v1192_v0 = vadd.f32 %v4573_v49, %v1191_v43 }
  0xf6   :  { %v464_v50 = vpop.f32.mrf.mxu0  ;;  %v3565_v51 = vpop.f32.mrf.mxu1  ;;  %3710 = vmatmul.mubr.msk.f32.gmra.mxu1 %vm819_vm1, %v1522_v41 }
  0xf7   :  { %v703_v53 = vmax.f32 %v464_v50, 0.0  ;;  %3750 = vmatprep.mubr.msk.f32.mxu0 %vm819_vm1, %v1418_v45  ;;  %3712 = vmatprep.mubr.msk.f32.mxu1 %vm819_vm1, %v1523_v44  ;;  %v1421_v59 = vadd.f32 %v1187_v47, %v704_v48  ;;  %v1207_v8 = vadd.f32 %v3565_v51, %v4573_v49 }
  0xf8   :  { %v3464_v55 = vpop.f32.mrf.mxu0  ;;  %3751 = vmatmul.mubr.msk.f32.gmra.mxu0 %vm819_vm1, %v1419_v46  ;;  %v1201_v56 = vpop.f32.mrf.mxu1 }
  0xf9   :  { %v1420_v58 = vadd.f32 %v1182_v52, %v703_v53  ;;  %v706_v61 = vmax.f32 %v3464_v55, 0.0  ;;  %v1202_v12 = vadd.f32 %v4573_v49, %v1201_v56 }
  0xfa   :  { %v474_v62 = vpop.f32.mrf.mxu0  ;;  %v3568_v63 = vpop.f32.mrf.mxu1  ;;  %3713 = vmatmul.mubr.msk.f32.gmra.mxu1 %vm819_vm1, %v1524_v54 }
  0xfb   :  { %v705_v1 = vmax.f32 %v474_v62, 0.0  ;;  %3753 = vmatprep.mubr.msk.f32.mxu0 %vm819_vm1, %v1420_v58  ;;  %3715 = vmatprep.mubr.msk.f32.mxu1 %vm819_vm1, %v1525_v57  ;;  %v1423_v7 = vadd.f32 %v1197_v60, %v706_v61  ;;  %v1217_v18 = vadd.f32 %v3568_v63, %v4573_v49 }
  0xfc   :  { %v3467_v3 = vpop.f32.mrf.mxu0  ;;  %3754 = vmatmul.mubr.msk.f32.gmra.mxu0 %vm819_vm1, %v1421_v59  ;;  %v1211_v4 = vpop.f32.mrf.mxu1 }
  0xfd   :  { %v1422_v6 = vadd.f32 %v1192_v0, %v705_v1  ;;  %v708_v9 = vmax.f32 %v3467_v3, 0.0  ;;  %v1212_v22 = vadd.f32 %v4573_v49, %v1211_v4 }
  0xfe   :  { %v484_v10 = vpop.f32.mrf.mxu0  ;;  %v3571_v11 = vpop.f32.mrf.mxu1  ;;  %3716 = vmatmul.mubr.msk.f32.gmra.mxu1 %vm819_vm1, %v1526_v2 }
  0xff   :  { %v707_v13 = vmax.f32 %v484_v10, 0.0  ;;  %3756 = vmatprep.mubr.msk.f32.mxu0 %vm819_vm1, %v1422_v6  ;;  %3718 = vmatprep.mubr.msk.f32.mxu1 %vm819_vm1, %v1527_v5  ;;  %v1425_v17 = vadd.f32 %v1207_v8, %v708_v9  ;;  %v1227_v28 = vadd.f32 %v3571_v11, %v4573_v49 }
 0x100   :  { %v3470_v14 = vpop.f32.mrf.mxu0  ;;  %3757 = vmatmul.mubr.msk.f32.gmra.mxu0 %vm819_vm1, %v1423_v7  ;;  %v1221_v15 = vpop.f32.mrf.mxu1 }
 0x101   :  { %v1424_v16 = vadd.f32 %v1202_v12, %v707_v13  ;;  %v710_v19 = vmax.f32 %v3470_v14, 0.0  ;;  %v1222_v32 = vadd.f32 %v4573_v49, %v1221_v15 }
 0x102   :  { %v494_v20 = vpop.f32.mrf.mxu0  ;;  %v3574_v21 = vpop.f32.mrf.mxu1  ;;  %3719 = vmatmul.mubr.msk.f32.gmra.mxu1 %vm819_vm1, %v1528_v34 }
 0x103   :  { %v709_v23 = vmax.f32 %v494_v20, 0.0  ;;  %3759 = vmatprep.mubr.msk.f32.mxu0 %vm819_vm1, %v1424_v16  ;;  %v1427_v27 = vadd.f32 %v1217_v18, %v710_v19  ;;  %v1237_v39 = vadd.f32 %v3574_v21, %v4573_v49 }
 0x104   :  { %v3473_v24 = vpop.f32.mrf.mxu0  ;;  %3760 = vmatmul.mubr.msk.f32.gmra.mxu0 %vm819_vm1, %v1425_v17  ;;  %v1231_v25 = vpop.f32.mrf.mxu1 }
 0x105   :  { %v1426_v26 = vadd.f32 %v1212_v22, %v709_v23  ;;  %v712_v29 = vmax.f32 %v3473_v24, 0.0  ;;  %v1232_v43 = vadd.f32 %v4573_v49, %v1231_v25 }
 0x106   :  { %v504_v30 = vpop.f32.mrf.mxu0  ;;  %v3577_v31 = vpop.f32.mrf.mxu1 }
 0x107   :  { %v711_v33 = vmax.f32 %v504_v30, 0.0  ;;  %3762 = vmatprep.mubr.msk.f32.mxu0 %vm819_vm1, %v1426_v26  ;;  %v1429_v38 = vadd.f32 %v1227_v28, %v712_v29  ;;  %v1247_v50 = vadd.f32 %v3577_v31, %v4573_v49 }
 0x108   :  { %v3476_v35 = vpop.f32.mrf.mxu0  ;;  %3763 = vmatmul.mubr.msk.f32.gmra.mxu0 %vm819_vm1, %v1427_v27  ;;  %v1241_v36 = vpop.f32.mrf.mxu1 }
 0x109   :  { %v1428_v37 = vadd.f32 %v1222_v32, %v711_v33  ;;  %v714_v40 = vmax.f32 %v3476_v35, 0.0  ;;  %v1242_v54 = vadd.f32 %v4573_v49, %v1241_v36 }
 0x10a   :  { %v514_v41 = vpop.f32.mrf.mxu0  ;;  %v3580_v42 = vpop.f32.mrf.mxu1 }
 0x10b   :  { %v713_v44 = vmax.f32 %v514_v41, 0.0  ;;  %3765 = vmatprep.mubr.msk.f32.mxu0 %vm819_vm1, %v1428_v37  ;;  %v1431_v48 = vadd.f32 %v1237_v39, %v714_v40  ;;  %v1257_v60 = vadd.f32 %v3580_v42, %v4573_v49 }
 0x10c   :  { %v3479_v45 = vpop.f32.mrf.mxu0  ;;  %3766 = vmatmul.mubr.msk.f32.gmra.mxu0 %vm819_vm1, %v1429_v38  ;;  %v1251_v46 = vpop.f32.mrf.mxu1 }
 0x10d   :  { %v1430_v47 = vadd.f32 %v1232_v43, %v713_v44  ;;  %v716_v51 = vmax.f32 %v3479_v45, 0.0  ;;  %v1252_v0 = vadd.f32 %v4573_v49, %v1251_v46 }
 0x10e   :  { %v524_v52 = vpop.f32.mrf.mxu0  ;;  %v3583_v53 = vpop.f32.mrf.mxu1 }
 0x10f   :  { %v715_v55 = vmax.f32 %v524_v52, 0.0  ;;  %3768 = vmatprep.mubr.msk.f32.mxu0 %vm819_vm1, %v1430_v47  ;;  %v1433_v59 = vadd.f32 %v1247_v50, %v716_v51  ;;  %v1267_v6 = vadd.f32 %v3583_v53, %v4573_v49 }
 0x110   :  { %v3482_v56 = vpop.f32.mrf.mxu0  ;;  %3769 = vmatmul.mubr.msk.f32.gmra.mxu0 %vm819_vm1, %v1431_v48  ;;  %v1261_v57 = vpop.f32.mrf.mxu1 }
 0x111   :  { %v1432_v58 = vadd.f32 %v1242_v54, %v715_v55  ;;  %v718_v61 = vmax.f32 %v3482_v56, 0.0  ;;  %v1262_v10 = vadd.f32 %v4573_v49, %v1261_v57 }
 0x112   :  { %v534_v62 = vpop.f32.mrf.mxu0  ;;  %v3586_v63 = vpop.f32.mrf.mxu1 }
 0x113   :  { %v717_v1 = vmax.f32 %v534_v62, 0.0  ;;  %3771 = vmatprep.mubr.msk.f32.mxu0 %vm819_vm1, %v1432_v58  ;;  %v1435_v5 = vadd.f32 %v1257_v60, %v718_v61  ;;  %v1277_v15 = vadd.f32 %v3586_v63, %v4573_v49 }
 0x114   :  { %v3485_v2 = vpop.f32.mrf.mxu0  ;;  %3772 = vmatmul.mubr.msk.f32.gmra.mxu0 %vm819_vm1, %v1433_v59  ;;  %v1271_v3 = vpop.f32.mrf.mxu1 }
 0x115   :  { %v1434_v4 = vadd.f32 %v1252_v0, %v717_v1  ;;  %v720_v7 = vmax.f32 %v3485_v2, 0.0  ;;  %v1272_v19 = vadd.f32 %v4573_v49, %v1271_v3 }
 0x116   :  { %v544_v8 = vpop.f32.mrf.mxu0  ;;  %v3589_v9 = vpop.f32.mrf.mxu1 }
 0x117   :  { %v719_v11 = vmax.f32 %v544_v8, 0.0  ;;  %3774 = vmatprep.mubr.msk.f32.mxu0 %vm819_vm1, %v1434_v4  ;;  %v1437_v14 = vadd.f32 %v1267_v6, %v720_v7  ;;  %v1287_v25 = vadd.f32 %v3589_v9, %v4573_v49 }
 0x118   :  { %v3488_v12 = vpop.f32.mrf.mxu0  ;;  %3775 = vmatmul.mubr.msk.f32.gmra.mxu0 %vm819_vm1, %v1435_v5  ;;  %v1281_v13 = vpop.f32.mrf.mxu1 }
 0x119   :  { %v1436_v34 = vadd.f32 %v1262_v10, %v719_v11  ;;  %v722_v16 = vmax.f32 %v3488_v12, 0.0  ;;  %v1282_v29 = vadd.f32 %v4573_v49, %v1281_v13 }
 0x11a   :  { %v554_v17 = vpop.f32.mrf.mxu0  ;;  %v3592_v18 = vpop.f32.mrf.mxu1 }
 0x11b   :  { %v721_v20 = vmax.f32 %v554_v17, 0.0  ;;  %3777 = vmatprep.mubr.msk.f32.mxu0 %vm819_vm1, %v1436_v34  ;;  %v1439_v24 = vadd.f32 %v1277_v15, %v722_v16  ;;  %v1297_v36 = vadd.f32 %v3592_v18, %v4573_v49 }
 0x11c   :  { %v3491_v21 = vpop.f32.mrf.mxu0  ;;  %3778 = vmatmul.mubr.msk.f32.gmra.mxu0 %vm819_vm1, %v1437_v14  ;;  %v1291_v22 = vpop.f32.mrf.mxu1 }
 0x11d   :  { %v1438_v23 = vadd.f32 %v1272_v19, %v721_v20  ;;  %v724_v26 = vmax.f32 %v3491_v21, 0.0  ;;  %v1292_v40 = vadd.f32 %v4573_v49, %v1291_v22 }
 0x11e   :  { %v564_v27 = vpop.f32.mrf.mxu0  ;;  %v3595_v28 = vpop.f32.mrf.mxu1 }
 0x11f   :  { %v723_v30 = vmax.f32 %v564_v27, 0.0  ;;  %3780 = vmatprep.mubr.msk.f32.mxu0 %vm819_vm1, %v1438_v23  ;;  %v1441_v35 = vadd.f32 %v1287_v25, %v724_v26  ;;  %v1307_v46 = vadd.f32 %v3595_v28, %v4573_v49 }
 0x120   :  { %v3494_v31 = vpop.f32.mrf.mxu0  ;;  %3781 = vmatmul.mubr.msk.f32.gmra.mxu0 %vm819_vm1, %v1439_v24  ;;  %v1301_v32 = vpop.f32.mrf.mxu1 }
 0x121   :  { %v1440_v33 = vadd.f32 %v1282_v29, %v723_v30  ;;  %v726_v37 = vmax.f32 %v3494_v31, 0.0  ;;  %v1302_v51 = vadd.f32 %v4573_v49, %v1301_v32 }
 0x122   :  { %v574_v38 = vpop.f32.mrf.mxu0  ;;  %v3598_v39 = vpop.f32.mrf.mxu1 }
 0x123   :  { %v725_v41 = vmax.f32 %v574_v38, 0.0  ;;  %3783 = vmatprep.mubr.msk.f32.mxu0 %vm819_vm1, %v1440_v33  ;;  %v1443_v45 = vadd.f32 %v1297_v36, %v726_v37  ;;  %v1317_v57 = vadd.f32 %v3598_v39, %v4573_v49 }
 0x124   :  { %v3497_v42 = vpop.f32.mrf.mxu0  ;;  %3784 = vmatmul.mubr.msk.f32.gmra.mxu0 %vm819_vm1, %v1441_v35  ;;  %v1311_v43 = vpop.f32.mrf.mxu1 }
 0x125   :  { %v1442_v44 = vadd.f32 %v1292_v40, %v725_v41  ;;  %v728_v47 = vmax.f32 %v3497_v42, 0.0  ;;  %v1312_v61 = vadd.f32 %v4573_v49, %v1311_v43 }
 0x126   :  { %v584_v48 = vpop.f32.mrf.mxu0  ;;  %v3601_v50 = vpop.f32.mrf.mxu1 }
 0x127   :  { %v727_v52 = vmax.f32 %v584_v48, 0.0  ;;  %3786 = vmatprep.mubr.msk.f32.mxu0 %vm819_vm1, %v1442_v44  ;;  %v1445_v56 = vadd.f32 %v1307_v46, %v728_v47  ;;  %v1327_v3 = vadd.f32 %v3601_v50, %v4573_v49 }
 0x128   :  { %v3500_v53 = vpop.f32.mrf.mxu0  ;;  %3787 = vmatmul.mubr.msk.f32.gmra.mxu0 %vm819_vm1, %v1443_v45  ;;  %v1321_v54 = vpop.f32.mrf.mxu1 }
 0x129   :  { %v1444_v55 = vadd.f32 %v1302_v51, %v727_v52  ;;  %v730_v58 = vmax.f32 %v3500_v53, 0.0  ;;  %v1322_v7 = vadd.f32 %v4573_v49, %v1321_v54 }
 0x12a   :  { %v594_v59 = vpop.f32.mrf.mxu0  ;;  %v3604_v60 = vpop.f32.mrf.mxu1 }
 0x12b   :  { %v729_v62 = vmax.f32 %v594_v59, 0.0  ;;  %3789 = vmatprep.mubr.msk.f32.mxu0 %vm819_vm1, %v1444_v55  ;;  %v1447_v2 = vadd.f32 %v1317_v57, %v730_v58  ;;  %v1337_v13 = vadd.f32 %v3604_v60, %v4573_v49 }
 0x12c   :  { %v3503_v63 = vpop.f32.mrf.mxu0  ;;  %3790 = vmatmul.mubr.msk.f32.gmra.mxu0 %vm819_vm1, %v1445_v56  ;;  %v1331_v0 = vpop.f32.mrf.mxu1 }
 0x12d   :  { %v1446_v1 = vadd.f32 %v1312_v61, %v729_v62  ;;  %v732_v4 = vmax.f32 %v3503_v63, 0.0  ;;  %v1332_v16 = vadd.f32 %v4573_v49, %v1331_v0 }
 0x12e   :  { %v604_v5 = vpop.f32.mrf.mxu0  ;;  %v3607_v6 = vpop.f32.mrf.mxu1 }
 0x12f   :  { %v731_v8 = vmax.f32 %v604_v5, 0.0  ;;  %3792 = vmatprep.mubr.msk.f32.mxu0 %vm819_vm1, %v1446_v1  ;;  %v1449_v12 = vadd.f32 %v1327_v3, %v732_v4  ;;  %v1347_v22 = vadd.f32 %v3607_v6, %v4573_v49 }
 0x130   :  { %v3506_v9 = vpop.f32.mrf.mxu0  ;;  %3793 = vmatmul.mubr.msk.f32.gmra.mxu0 %vm819_vm1, %v1447_v2  ;;  %v1341_v10 = vpop.f32.mrf.mxu1 }
 0x131   :  { %v1448_v11 = vadd.f32 %v1322_v7, %v731_v8  ;;  %v734_v34 = vmax.f32 %v3506_v9, 0.0  ;;  %v1342_v26 = vadd.f32 %v4573_v49, %v1341_v10 }
 0x132   :  { %v614_v14 = vpop.f32.mrf.mxu0  ;;  %v3610_v15 = vpop.f32.mrf.mxu1 }
 0x133   :  { %v733_v17 = vmax.f32 %v614_v14, 0.0  ;;  %3795 = vmatprep.mubr.msk.f32.mxu0 %vm819_vm1, %v1448_v11  ;;  %v1451_v21 = vadd.f32 %v1337_v13, %v734_v34  ;;  %v1357_v32 = vadd.f32 %v3610_v15, %v4573_v49 }
 0x134   :  { %v3509_v18 = vpop.f32.mrf.mxu0  ;;  %3796 = vmatmul.mubr.msk.f32.gmra.mxu0 %vm819_vm1, %v1449_v12  ;;  %v1351_v19 = vpop.f32.mrf.mxu1 }
 0x135   :  { %v1450_v20 = vadd.f32 %v1332_v16, %v733_v17  ;;  %v736_v23 = vmax.f32 %v3509_v18, 0.0  ;;  %v1352_v37 = vadd.f32 %v4573_v49, %v1351_v19 }
 0x136   :  { %v624_v24 = vpop.f32.mrf.mxu0  ;;  %v3613_v25 = vpop.f32.mrf.mxu1 }
 0x137   :  { %v735_v27 = vmax.f32 %v624_v24, 0.0  ;;  %3798 = vmatprep.mubr.msk.f32.mxu0 %vm819_vm1, %v1450_v20  ;;  %v1453_v31 = vadd.f32 %v1347_v22, %v736_v23  ;;  %v1367_v43 = vadd.f32 %v3613_v25, %v4573_v49 }
 0x138   :  { %v3512_v28 = vpop.f32.mrf.mxu0  ;;  %3799 = vmatmul.mubr.msk.f32.gmra.mxu0 %vm819_vm1, %v1451_v21  ;;  %v1361_v29 = vpop.f32.mrf.mxu1 }
 0x139   :  { %v1452_v30 = vadd.f32 %v1342_v26, %v735_v27  ;;  %v738_v33 = vmax.f32 %v3512_v28, 0.0  ;;  %v1362_v47 = vadd.f32 %v4573_v49, %v1361_v29 }
 0x13a   :  { %v634_v35 = vpop.f32.mrf.mxu0  ;;  %v3616_v36 = vpop.f32.mrf.mxu1 }
 0x13b   :  { %v737_v38 = vmax.f32 %v634_v35, 0.0  ;;  %3801 = vmatprep.mubr.msk.f32.mxu0 %vm819_vm1, %v1452_v30  ;;  %v1455_v42 = vadd.f32 %v1357_v32, %v738_v33  ;;  %v1377_v54 = vadd.f32 %v3616_v36, %v4573_v49 }
 0x13c   :  { %v3515_v39 = vpop.f32.mrf.mxu0  ;;  %3802 = vmatmul.mubr.msk.f32.gmra.mxu0 %vm819_vm1, %v1453_v31  ;;  %v1371_v40 = vpop.f32.mrf.mxu1 }
 0x13d   :  { %v1454_v41 = vadd.f32 %v1352_v37, %v737_v38  ;;  %v740_v44 = vmax.f32 %v3515_v39, 0.0  ;;  %v1372_v58 = vadd.f32 %v4573_v49, %v1371_v40 }
 0x13e   :  { %v644_v45 = vpop.f32.mrf.mxu0  ;;  %v3619_v46 = vpop.f32.mrf.mxu1 }
 0x13f   :  { %v739_v48 = vmax.f32 %v644_v45, 0.0  ;;  %3804 = vmatprep.mubr.msk.f32.mxu0 %vm819_vm1, %v1454_v41  ;;  %v1457_v53 = vadd.f32 %v1367_v43, %v740_v44  ;;  %v1387_v0 = vadd.f32 %v3619_v46, %v4573_v49 }
 0x140   :  { %v3518_v50 = vpop.f32.mrf.mxu0  ;;  %3805 = vmatmul.mubr.msk.f32.gmra.mxu0 %vm819_vm1, %v1455_v42  ;;  %v1381_v51 = vpop.f32.mrf.mxu1 }
 0x141   :  { %v1456_v52 = vadd.f32 %v1362_v47, %v739_v48  ;;  %v742_v55 = vmax.f32 %v3518_v50, 0.0  ;;  %v1382_v4 = vadd.f32 %v4573_v49, %v1381_v51  ;;  %v4867_v48 = vld [vmem:[%s5289_s8] ss:$0 sm:$0xff] }
 0x142   :  { %v654_v56 = vpop.f32.mrf.mxu0  ;;  %v3622_v57 = vpop.f32.mrf.mxu1 }
 0x143   :  { %v741_v59 = vmax.f32 %v654_v56, 0.0  ;;  %3807 = vmatprep.mubr.msk.f32.mxu0 %vm819_vm1, %v1456_v52  ;;  %v1459_v63 = vadd.f32 %v1377_v54, %v742_v55  ;;  %v1397_v10 = vadd.f32 %v3622_v57, %v4573_v49 }
 0x144   :  { %v3521_v60 = vpop.f32.mrf.mxu0  ;;  %3808 = vmatmul.mubr.msk.f32.gmra.mxu0 %vm819_vm1, %v1457_v53  ;;  %v1391_v61 = vpop.f32.mrf.mxu1 }
 0x145   :  { %v1458_v62 = vadd.f32 %v1372_v58, %v741_v59  ;;  %v744_v1 = vmax.f32 %v3521_v60, 0.0  ;;  %v1392_v34 = vadd.f32 %v4573_v49, %v1391_v61 }
 0x146   :  { %v664_v2 = vpop.f32.mrf.mxu0  ;;  %v3627_v3 = vpop.f32.mrf.mxu1 }
 0x147   :  { %v743_v5 = vmax.f32 %v664_v2, 0.0  ;;  %3810 = vmatprep.mubr.msk.f32.mxu0 %vm819_vm1, %v1458_v62  ;;  %v1461_v9 = vadd.f32 %v1387_v0, %v744_v1 }
 0x148   :  { %v3524_v6 = vpop.f32.mrf.mxu0  ;;  %3811 = vmatmul.mubr.msk.f32.gmra.mxu0 %vm819_vm1, %v1459_v63  ;;  %v1791_v7 = vpop.f32.mrf.mxu1 }
 0x149   :  { %v1460_v8 = vadd.f32 %v1382_v4, %v743_v5  ;;  %v746_v11 = vmax.f32 %v3524_v6, 0.0 }
 0x14a   :  { %v674_v12 = vpop.f32.mrf.mxu0  ;;  %v3630_v13 = vpop.f32.mrf.mxu1 }
 0x14b   :  { %v745_v14 = vmax.f32 %v674_v12, 0.0  ;;  %3813 = vmatprep.mubr.msk.f32.mxu0 %vm819_vm1, %v1460_v8  ;;  %v1463_v17 = vadd.f32 %v1397_v10, %v746_v11 }
 0x14c   :  { %3814 = vmatmul.mubr.msk.f32.gmra.mxu0 %vm819_vm1, %v1461_v9  ;;  %v1801_v15 = vpop.f32.mrf.mxu1 }
 0x14d   :  { %v1462_v16 = vadd.f32 %v1392_v34, %v745_v14 }
 0x14e   :  { %v3633_v18 = vpop.f32.mrf.mxu1 }
 0x14f   :  { %3816 = vmatprep.mubr.msk.f32.mxu1 %vm819_vm1, %v1462_v16 }
 0x150   :  { %3817 = vmatmul.mubr.msk.f32.vlgmr.msra.gmra.mxu1 %vm819_vm1, %v1463_v17  ;;  %v1811_v19 = vpop.f32.mrf.mxu1 }
 0x152   :  { %v3636_v20 = vpop.f32.mrf.mxu1 }
 0x154   :  { %v4812_v21 = vpop.f32.mrf.mxu1 }
 0x156   :  { %v4814_v22 = vpop.f32.mrf.mxu1 }
 0x158   :  { %v4816_v49 = vpop.f32.mrf.mxu1 }
 0x15a   :  { %v4818_v23 = vpop.f32.mrf.mxu1 }
 0x15c   :  { %v4820_v24 = vpop.f32.mrf.mxu1 }
 0x15e   :  { %v4822_v25 = vpop.f32.mrf.mxu1 }
 0x160   :  { %v4824_v26 = vpop.f32.mrf.mxu1 }
 0x162   :  { %v4826_v27 = vpop.f32.mrf.mxu1 }
 0x164   :  { %v4828_v28 = vpop.f32.mrf.mxu1 }
 0x166   :  { %v4830_v29 = vpop.f32.mrf.mxu1 }
 0x168   :  { %v4832_v30 = vpop.f32.mrf.mxu1 }
 0x16a   :  { %v4834_v31 = vpop.f32.mrf.mxu1 }
 0x16c   :  { %v4836_v32 = vpop.f32.mrf.mxu1 }
 0x16e   :  { %v4838_v33 = vpop.f32.mrf.mxu1 }
 0x170   :  { %v4840_v35 = vpop.f32.mrf.mxu1 }
 0x172   :  { %v4842_v36 = vpop.f32.mrf.mxu1 }
 0x174   :  { %v4844_v37 = vpop.f32.mrf.mxu1 }
 0x176   :  { %v4846_v38 = vpop.f32.mrf.mxu1 }
 0x178   :  { %v4848_v39 = vpop.f32.mrf.mxu1 }
 0x17a   :  { %v4850_v40 = vpop.f32.mrf.mxu1 }
 0x17c   :  { %v4852_v41 = vpop.f32.mrf.mxu1 }
 0x17e   :  { %v4854_v42 = vpop.f32.mrf.mxu1 }
 0x180   :  { %v4856_v43 = vpop.f32.mrf.mxu1 }
 0x182   :  { %v4858_v44 = vpop.f32.mrf.mxu1 }
 0x184   :  { %v4860_v45 = vpop.f32.mrf.mxu1 }
 0x186   :  { %v4862_v46 = vpop.f32.mrf.mxu1 }
 0x188   :  { %v4869_v52 = vpop.f32.mrf.mxu1 }
 0x18a   :  { %v4873_v60 = vpop.f32.mrf.mxu1 }
 0x18c   :  { %v4885_v5 = vpop.f32.mrf.mxu1 }
 0x18e   :  { %v4897_v34 = vpop.f32.mrf.mxu1 }
 0x194   :  { %v3725_v47 = vpop.f32.mrf.mxu0 }
 0x195   :  { %v2377_v50 = vadd.f32 %v3725_v47, %v3627_v3 }
 0x196   :  { %v2371_v51 = vpop.f32.mrf.mxu0 }
 0x197   :  { %v2698_v53 = vadd.f32 %v4867_v48, %v2377_v50  ;;  %v2372_v54 = vadd.f32 %v2371_v51, %v1791_v7  ;;  %v4911_v50 = vpop.f32.mrf.mxu1 }
 0x198   :  { %v3728_v55 = vpop.f32.mrf.mxu0 }
 0x199   :  { %v2762_v56 = vmax.f32 %v2698_v53, 0.0  ;;  %v2697_v57 = vadd.f32 %v4867_v48, %v2372_v54  ;;  %v2387_v58 = vadd.f32 %v3728_v55, %v3630_v13 }
 0x19a   :  { %v2381_v59 = vpop.f32.mrf.mxu0 }
 0x19b   :  { %2826 = vst.msk [vmem:[%s5290_s9 + $0x8] sm:$0xff] %vm819_vm1, %v2762_v56  ;;  %v2761_v61 = vmax.f32 %v2697_v57, 0.0  ;;  %v2700_v62 = vadd.f32 %v4867_v48, %v2387_v58  ;;  %v2382_v63 = vadd.f32 %v2381_v59, %v1801_v15  ;;  %v4925_v58 = vpop.f32.mrf.mxu1 }
 0x19c   :  { %v3731_v0 = vpop.f32.mrf.mxu0 }
 0x19d   :  { %2825 = vst.msk [vmem:[%s5290_s9] sm:$0xff] %vm819_vm1, %v2761_v61  ;;  %v2764_v1 = vmax.f32 %v2700_v62, 0.0  ;;  %v2699_v2 = vadd.f32 %v4867_v48, %v2382_v63  ;;  %v2397_v3 = vadd.f32 %v3731_v0, %v3633_v18 }
 0x19e   :  { %v2391_v4 = vpop.f32.mrf.mxu0 }
 0x19f   :  { %2828 = vst.msk [vmem:[%s5290_s9 + $0x18] sm:$0xff] %vm819_vm1, %v2764_v1  ;;  %v2763_v6 = vmax.f32 %v2699_v2, 0.0  ;;  %v2702_v7 = vadd.f32 %v4867_v48, %v2397_v3  ;;  %v2392_v8 = vadd.f32 %v2391_v4, %v1811_v19  ;;  %v4939_v2 = vpop.f32.mrf.mxu1 }
 0x1a0   :  { %v3734_v9 = vpop.f32.mrf.mxu0 }
 0x1a1   :  { %2827 = vst.msk [vmem:[%s5290_s9 + $0x10] sm:$0xff] %vm819_vm1, %v2763_v6  ;;  %v2766_v10 = vmax.f32 %v2702_v7, 0.0  ;;  %v2701_v11 = vadd.f32 %v4867_v48, %v2392_v8  ;;  %v2407_v12 = vadd.f32 %v3734_v9, %v3636_v20 }
 0x1a2   :  { %v2401_v13 = vpop.f32.mrf.mxu0 }
 0x1a3   :  { %2830 = vst.msk [vmem:[%s5290_s9 + $0x28] sm:$0xff] %vm819_vm1, %v2766_v10  ;;  %v2765_v14 = vmax.f32 %v2701_v11, 0.0  ;;  %v2704_v15 = vadd.f32 %v4867_v48, %v2407_v12  ;;  %v2402_v16 = vadd.f32 %v2401_v13, %v4812_v21  ;;  %v4953_v10 = vpop.f32.mrf.mxu1 }
 0x1a4   :  { %v3737_v17 = vpop.f32.mrf.mxu0 }
 0x1a5   :  { %2829 = vst.msk [vmem:[%s5290_s9 + $0x20] sm:$0xff] %vm819_vm1, %v2765_v14  ;;  %v2768_v18 = vmax.f32 %v2704_v15, 0.0  ;;  %v2703_v19 = vadd.f32 %v4867_v48, %v2402_v16  ;;  %v2417_v20 = vadd.f32 %v3737_v17, %v4814_v22  ;;  %v4967_v17 = vpop.f32.mrf.mxu1 }
 0x1a6   :  { %v2411_v47 = vpop.f32.mrf.mxu0 }
 0x1a7   :  { %2832 = vst.msk [vmem:[%s5290_s9 + $0x38] sm:$0xff] %vm819_vm1, %v2768_v18  ;;  %v2767_v21 = vmax.f32 %v2703_v19, 0.0  ;;  %v2706_v51 = vadd.f32 %v4867_v48, %v2417_v20  ;;  %v2412_v53 = vadd.f32 %v2411_v47, %v4816_v49 }
 0x1a8   :  { %v3740_v54 = vpop.f32.mrf.mxu0 }
 0x1a9   :  { %2831 = vst.msk [vmem:[%s5290_s9 + $0x30] sm:$0xff] %vm819_vm1, %v2767_v21  ;;  %v2770_v22 = vmax.f32 %v2706_v51, 0.0  ;;  %v2705_v55 = vadd.f32 %v4867_v48, %v2412_v53  ;;  %v2427_v56 = vadd.f32 %v3740_v54, %v4818_v23  ;;  %v4981_v53 = vpop.f32.mrf.mxu1 }
 0x1aa   :  { %v2421_v57 = vpop.f32.mrf.mxu0 }
 0x1ab   :  { %2834 = vst.msk [vmem:[%s5290_s9 + $0x48] sm:$0xff] %vm819_vm1, %v2770_v22  ;;  %v2769_v49 = vmax.f32 %v2705_v55, 0.0  ;;  %v2708_v59 = vadd.f32 %v4867_v48, %v2427_v56  ;;  %v2422_v61 = vadd.f32 %v2421_v57, %v4820_v24 }
 0x1ac   :  { %v3743_v62 = vpop.f32.mrf.mxu0 }
 0x1ad   :  { %2833 = vst.msk [vmem:[%s5290_s9 + $0x40] sm:$0xff] %vm819_vm1, %v2769_v49  ;;  %v2772_v23 = vmax.f32 %v2708_v59, 0.0  ;;  %v2707_v63 = vadd.f32 %v4867_v48, %v2422_v61  ;;  %v2437_v0 = vadd.f32 %v3743_v62, %v4822_v25  ;;  %v4995_v59 = vpop.f32.mrf.mxu1 }
 0x1ae   :  { %v2431_v1 = vpop.f32.mrf.mxu0 }
 0x1af   :  { %2836 = vst.msk [vmem:[%s5290_s9 + $0x58] sm:$0xff] %vm819_vm1, %v2772_v23  ;;  %v2771_v24 = vmax.f32 %v2707_v63, 0.0  ;;  %v2710_v3 = vadd.f32 %v4867_v48, %v2437_v0  ;;  %v2432_v4 = vadd.f32 %v2431_v1, %v4824_v26 }
 0x1b0   :  { %v3746_v6 = vpop.f32.mrf.mxu0 }
 0x1b1   :  { %2835 = vst.msk [vmem:[%s5290_s9 + $0x50] sm:$0xff] %vm819_vm1, %v2771_v24  ;;  %v2774_v25 = vmax.f32 %v2710_v3, 0.0  ;;  %v2709_v7 = vadd.f32 %v4867_v48, %v2432_v4  ;;  %v2447_v8 = vadd.f32 %v3746_v6, %v4826_v27  ;;  %v5009_v24 = vpop.f32.mrf.mxu1 }
 0x1b2   :  { %v2441_v9 = vpop.f32.mrf.mxu0 }
 0x1b3   :  { %2838 = vst.msk [vmem:[%s5290_s9 + $0x68] sm:$0xff] %vm819_vm1, %v2774_v25  ;;  %v2773_v26 = vmax.f32 %v2709_v7, 0.0  ;;  %v2712_v11 = vadd.f32 %v4867_v48, %v2447_v8  ;;  %v2442_v12 = vadd.f32 %v2441_v9, %v4828_v28  ;;  %v5023_v9 = vpop.f32.mrf.mxu1 }
 0x1b4   :  { %v3749_v13 = vpop.f32.mrf.mxu0 }
 0x1b5   :  { %2837 = vst.msk [vmem:[%s5290_s9 + $0x60] sm:$0xff] %vm819_vm1, %v2773_v26  ;;  %v2776_v27 = vmax.f32 %v2712_v11, 0.0  ;;  %v2711_v14 = vadd.f32 %v4867_v48, %v2442_v12  ;;  %v2457_v15 = vadd.f32 %v3749_v13, %v4830_v29 }
 0x1b6   :  { %v2451_v16 = vpop.f32.mrf.mxu0 }
 0x1b7   :  { %2840 = vst.msk [vmem:[%s5290_s9 + $0x78] sm:$0xff] %vm819_vm1, %v2776_v27  ;;  %v2775_v28 = vmax.f32 %v2711_v14, 0.0  ;;  %v2714_v18 = vadd.f32 %v4867_v48, %v2457_v15  ;;  %v2452_v19 = vadd.f32 %v2451_v16, %v4832_v30  ;;  %v5037_v15 = vpop.f32.mrf.mxu1 }
 0x1b8   :  { %v3752_v20 = vpop.f32.mrf.mxu0 }
 0x1b9   :  { %2839 = vst.msk [vmem:[%s5290_s9 + $0x70] sm:$0xff] %vm819_vm1, %v2775_v28  ;;  %v2778_v29 = vmax.f32 %v2714_v18, 0.0  ;;  %v2713_v47 = vadd.f32 %v4867_v48, %v2452_v19  ;;  %v2467_v21 = vadd.f32 %v3752_v20, %v4834_v31 }
 0x1ba   :  { %v2461_v51 = vpop.f32.mrf.mxu0 }
 0x1bb   :  { %2842 = vst.msk [vmem:[%s5290_s9 + $0x88] sm:$0xff] %vm819_vm1, %v2778_v29  ;;  %v2777_v30 = vmax.f32 %v2713_v47, 0.0  ;;  %v2716_v54 = vadd.f32 %v4867_v48, %v2467_v21  ;;  %v2462_v22 = vadd.f32 %v2461_v51, %v4836_v32  ;;  %v5051_v47 = vpop.f32.mrf.mxu1 }
 0x1bc   :  { %v3755_v55 = vpop.f32.mrf.mxu0 }
 0x1bd   :  { %2841 = vst.msk [vmem:[%s5290_s9 + $0x80] sm:$0xff] %vm819_vm1, %v2777_v30  ;;  %v2780_v31 = vmax.f32 %v2716_v54, 0.0  ;;  %v2715_v56 = vadd.f32 %v4867_v48, %v2462_v22  ;;  %v2477_v57 = vadd.f32 %v3755_v55, %v4838_v33 }
 0x1be   :  { %v2471_v49 = vpop.f32.mrf.mxu0 }
 0x1bf   :  { %2844 = vst.msk [vmem:[%s5290_s9 + $0x98] sm:$0xff] %vm819_vm1, %v2780_v31  ;;  %v2779_v32 = vmax.f32 %v2715_v56, 0.0  ;;  %v2718_v61 = vadd.f32 %v4867_v48, %v2477_v57  ;;  %v2472_v62 = vadd.f32 %v2471_v49, %v4840_v35  ;;  %v5065_v31 = vpop.f32.mrf.mxu1 }
 0x1c0   :  { %v3758_v23 = vpop.f32.mrf.mxu0 }
 0x1c1   :  { %2843 = vst.msk [vmem:[%s5290_s9 + $0x90] sm:$0xff] %vm819_vm1, %v2779_v32  ;;  %v2782_v33 = vmax.f32 %v2718_v61, 0.0  ;;  %v2717_v63 = vadd.f32 %v4867_v48, %v2472_v62  ;;  %v2487_v0 = vadd.f32 %v3758_v23, %v4842_v36  ;;  %v5079_v23 = vpop.f32.mrf.mxu1 }
 0x1c2   :  { %v2481_v1 = vpop.f32.mrf.mxu0 }
 0x1c3   :  { %2846 = vst.msk [vmem:[%s5290_s9 + $0xa8] sm:$0xff] %vm819_vm1, %v2782_v33  ;;  %v2781_v35 = vmax.f32 %v2717_v63, 0.0  ;;  %v2720_v3 = vadd.f32 %v4867_v48, %v2487_v0  ;;  %v2482_v4 = vadd.f32 %v2481_v1, %v4844_v37 }
 0x1c4   :  { %v3761_v6 = vpop.f32.mrf.mxu0 }
 0x1c5   :  { %2845 = vst.msk [vmem:[%s5290_s9 + $0xa0] sm:$0xff] %vm819_vm1, %v2781_v35  ;;  %v2784_v36 = vmax.f32 %v2720_v3, 0.0  ;;  %v2719_v25 = vadd.f32 %v4867_v48, %v2482_v4  ;;  %v2497_v7 = vadd.f32 %v3761_v6, %v4846_v38  ;;  %v5093_v4 = vpop.f32.mrf.mxu1 }
 0x1c6   :  { %v2491_v8 = vpop.f32.mrf.mxu0 }
 0x1c7   :  { %2848 = vst.msk [vmem:[%s5290_s9 + $0xb8] sm:$0xff] %vm819_vm1, %v2784_v36  ;;  %v2783_v37 = vmax.f32 %v2719_v25, 0.0  ;;  %v2722_v26 = vadd.f32 %v4867_v48, %v2497_v7  ;;  %v2492_v11 = vadd.f32 %v2491_v8, %v4848_v39 }
 0x1c8   :  { %v3764_v12 = vpop.f32.mrf.mxu0 }
 0x1c9   :  { %2847 = vst.msk [vmem:[%s5290_s9 + $0xb0] sm:$0xff] %vm819_vm1, %v2783_v37  ;;  %v2786_v38 = vmax.f32 %v2722_v26, 0.0  ;;  %v2721_v13 = vadd.f32 %v4867_v48, %v2492_v11  ;;  %v2507_v27 = vadd.f32 %v3764_v12, %v4850_v40  ;;  %v5107_v26 = vpop.f32.mrf.mxu1 }
 0x1ca   :  { %v2501_v14 = vpop.f32.mrf.mxu0 }
 0x1cb   :  { %2850 = vst.msk [vmem:[%s5290_s9 + $0xc8] sm:$0xff] %vm819_vm1, %v2786_v38  ;;  %v2785_v39 = vmax.f32 %v2721_v13, 0.0  ;;  %v2724_v16 = vadd.f32 %v4867_v48, %v2507_v27  ;;  %v2502_v28 = vadd.f32 %v2501_v14, %v4852_v41 }
 0x1cc   :  { %v3767_v18 = vpop.f32.mrf.mxu0 }
 0x1cd   :  { %2849 = vst.msk [vmem:[%s5290_s9 + $0xc0] sm:$0xff] %vm819_vm1, %v2785_v39  ;;  %v2788_v40 = vmax.f32 %v2724_v16, 0.0  ;;  %v2723_v19 = vadd.f32 %v4867_v48, %v2502_v28  ;;  %v2517_v20 = vadd.f32 %v3767_v18, %v4854_v42  ;;  %v5121_v39 = vpop.f32.mrf.mxu1 }
 0x1ce   :  { %v2511_v29 = vpop.f32.mrf.mxu0 }
 0x1cf   :  { %2852 = vst.msk [vmem:[%s5290_s9 + $0xd8] sm:$0xff] %vm819_vm1, %v2788_v40  ;;  %v2787_v41 = vmax.f32 %v2723_v19, 0.0  ;;  %v2726_v21 = vadd.f32 %v4867_v48, %v2517_v20  ;;  %v2512_v51 = vadd.f32 %v2511_v29, %v4856_v43  ;;  %v5135_v29 = vpop.f32.mrf.mxu1 }
 0x1d0   :  { %v3770_v30 = vpop.f32.mrf.mxu0 }
 0x1d1   :  { %2851 = vst.msk [vmem:[%s5290_s9 + $0xd0] sm:$0xff] %vm819_vm1, %v2787_v41  ;;  %v2790_v42 = vmax.f32 %v2726_v21, 0.0  ;;  %v2725_v54 = vadd.f32 %v4867_v48, %v2512_v51  ;;  %v2527_v22 = vadd.f32 %v3770_v30, %v4858_v44 }
 0x1d2   :  { %v2521_v55 = vpop.f32.mrf.mxu0 }
 0x1d3   :  { %2854 = vst.msk [vmem:[%s5290_s9 + $0xe8] sm:$0xff] %vm819_vm1, %v2790_v42  ;;  %v2789_v43 = vmax.f32 %v2725_v54, 0.0  ;;  %v2728_v56 = vadd.f32 %v4867_v48, %v2527_v22  ;;  %v2522_v57 = vadd.f32 %v2521_v55, %v4860_v45  ;;  %v5149_v22 = vpop.f32.mrf.mxu1 }
 0x1d4   :  { %v3773_v49 = vpop.f32.mrf.mxu0 }
 0x1d5   :  { %2853 = vst.msk [vmem:[%s5290_s9 + $0xe0] sm:$0xff] %vm819_vm1, %v2789_v43  ;;  %v2792_v44 = vmax.f32 %v2728_v56, 0.0  ;;  %v2727_v32 = vadd.f32 %v4867_v48, %v2522_v57  ;;  %v2537_v61 = vadd.f32 %v3773_v49, %v4862_v46 }
 0x1d6   :  { %v2531_v62 = vpop.f32.mrf.mxu0 }
 0x1d7   :  { %2856 = vst.msk [vmem:[%s5290_s9 + $0xf8] sm:$0xff] %vm819_vm1, %v2792_v44  ;;  %v2791_v45 = vmax.f32 %v2727_v32, 0.0  ;;  %v2730_v33 = vadd.f32 %v4867_v48, %v2537_v61  ;;  %v2532_v63 = vadd.f32 %v2531_v62, %v4869_v52  ;;  %v2061_v32 = vpop.f32.mrf.mxu1 }
 0x1d8   :  { %v3776_v0 = vpop.f32.mrf.mxu0 }
 0x1d9   :  { %2855 = vst.msk [vmem:[%s5290_s9 + $0xf0] sm:$0xff] %vm819_vm1, %v2791_v45  ;;  %v2794_v46 = vmax.f32 %v2730_v33, 0.0  ;;  %v2729_v1 = vadd.f32 %v4867_v48, %v2532_v63  ;;  %v2547_v35 = vadd.f32 %v3776_v0, %v4873_v60 }
 0x1da   :  { %v2541_v3 = vpop.f32.mrf.mxu0 }
 0x1db   :  { %2858 = vst.msk [vmem:[%s5290_s9 + $0x108] sm:$0xff] %vm819_vm1, %v2794_v46  ;;  %v2793_v52 = vmax.f32 %v2729_v1, 0.0  ;;  %v2732_v6 = vadd.f32 %v4867_v48, %v2547_v35  ;;  %v2542_v36 = vadd.f32 %v2541_v3, %v4885_v5  ;;  %v3711_v46 = vpop.f32.mrf.mxu1 }
 0x1dc   :  { %v3779_v25 = vpop.f32.mrf.mxu0 }
 0x1dd   :  { %2857 = vst.msk [vmem:[%s5290_s9 + $0x100] sm:$0xff] %vm819_vm1, %v2793_v52  ;;  %v2796_v60 = vmax.f32 %v2732_v6, 0.0  ;;  %v2731_v7 = vadd.f32 %v4867_v48, %v2542_v36  ;;  %v2557_v8 = vadd.f32 %v3779_v25, %v4897_v34  ;;  %v2071_v25 = vpop.f32.mrf.mxu1 }
 0x1de   :  { %v2551_v37 = vpop.f32.mrf.mxu0 }
 0x1df   :  { %2860 = vst.msk [vmem:[%s5290_s9 + $0x118] sm:$0xff] %vm819_vm1, %v2796_v60  ;;  %v2795_v5 = vmax.f32 %v2731_v7, 0.0  ;;  %v2734_v11 = vadd.f32 %v4867_v48, %v2557_v8  ;;  %v2552_v12 = vadd.f32 %v2551_v37, %v4911_v50 }
 0x1e0   :  { %v3782_v38 = vpop.f32.mrf.mxu0 }
 0x1e1   :  { %2859 = vst.msk [vmem:[%s5290_s9 + $0x110] sm:$0xff] %vm819_vm1, %v2795_v5  ;;  %v2798_v34 = vmax.f32 %v2734_v11, 0.0  ;;  %v2733_v13 = vadd.f32 %v4867_v48, %v2552_v12  ;;  %v2567_v27 = vadd.f32 %v3782_v38, %v4925_v58  ;;  %v3714_v12 = vpop.f32.mrf.mxu1 }
 0x1e2   :  { %v2561_v14 = vpop.f32.mrf.mxu0 }
 0x1e3   :  { %2862 = vst.msk [vmem:[%s5290_s9 + $0x128] sm:$0xff] %vm819_vm1, %v2798_v34  ;;  %v2797_v50 = vmax.f32 %v2733_v13, 0.0  ;;  %v2736_v16 = vadd.f32 %v4867_v48, %v2567_v27  ;;  %v2562_v28 = vadd.f32 %v2561_v14, %v4939_v2 }
 0x1e4   :  { %v3785_v18 = vpop.f32.mrf.mxu0 }
 0x1e5   :  { %2861 = vst.msk [vmem:[%s5290_s9 + $0x120] sm:$0xff] %vm819_vm1, %v2797_v50  ;;  %v2800_v58 = vmax.f32 %v2736_v16, 0.0  ;;  %v2735_v40 = vadd.f32 %v4867_v48, %v2562_v28  ;;  %v2577_v19 = vadd.f32 %v3785_v18, %v4953_v10  ;;  %v2081_v16 = vpop.f32.mrf.mxu1 }
 0x1e6   :  { %v2571_v20 = vpop.f32.mrf.mxu0 }
 0x1e7   :  { %2864 = vst.msk [vmem:[%s5290_s9 + $0x138] sm:$0xff] %vm819_vm1, %v2800_v58  ;;  %v2799_v2 = vmax.f32 %v2735_v40, 0.0  ;;  %v2738_v41 = vadd.f32 %v4867_v48, %v2577_v19  ;;  %v2572_v21 = vadd.f32 %v2571_v20, %v4967_v17 }
 0x1e8   :  { %v3788_v51 = vpop.f32.mrf.mxu0 }
 0x1e9   :  { %2863 = vst.msk [vmem:[%s5290_s9 + $0x130] sm:$0xff] %vm819_vm1, %v2799_v2  ;;  %v2802_v10 = vmax.f32 %v2738_v41, 0.0  ;;  %v2737_v30 = vadd.f32 %v4867_v48, %v2572_v21  ;;  %v2587_v42 = vadd.f32 %v3788_v51, %v4981_v53  ;;  %v3717_v2 = vpop.f32.mrf.mxu1 }
 0x1ea   :  { %v2581_v54 = vpop.f32.mrf.mxu0 }
 0x1eb   :  { %2866 = vst.msk [vmem:[%s5290_s9 + $0x148] sm:$0xff] %vm819_vm1, %v2802_v10  ;;  %v2801_v17 = vmax.f32 %v2737_v30, 0.0  ;;  %v2740_v55 = vadd.f32 %v4867_v48, %v2587_v42  ;;  %v2582_v43 = vadd.f32 %v2581_v54, %v4995_v59 }
 0x1ec   :  { %v3791_v56 = vpop.f32.mrf.mxu0 }
 0x1ed   :  { %2865 = vst.msk [vmem:[%s5290_s9 + $0x140] sm:$0xff] %vm819_vm1, %v2801_v17  ;;  %v2804_v53 = vmax.f32 %v2740_v55, 0.0  ;;  %v2739_v57 = vadd.f32 %v4867_v48, %v2582_v43  ;;  %v2597_v49 = vadd.f32 %v3791_v56, %v5009_v24 }
 0x1ee   :  { %v2591_v44 = vpop.f32.mrf.mxu0 }
 0x1ef   :  { %2868 = vst.msk [vmem:[%s5290_s9 + $0x158] sm:$0xff] %vm819_vm1, %v2804_v53  ;;  %v2803_v61 = vmax.f32 %v2739_v57, 0.0  ;;  %v2742_v59 = vadd.f32 %v4867_v48, %v2597_v49  ;;  %v2592_v62 = vadd.f32 %v2591_v44, %v5023_v9 }
 0x1f0   :  { %v3794_v45 = vpop.f32.mrf.mxu0 }
 0x1f1   :  { %2867 = vst.msk [vmem:[%s5290_s9 + $0x150] sm:$0xff] %vm819_vm1, %v2803_v61  ;;  %v2806_v33 = vmax.f32 %v2742_v59, 0.0  ;;  %v2741_v24 = vadd.f32 %v4867_v48, %v2592_v62  ;;  %v2607_v63 = vadd.f32 %v3794_v45, %v5037_v15 }
 0x1f2   :  { %v2601_v0 = vpop.f32.mrf.mxu0 }
 0x1f3   :  { %2870 = vst.msk [vmem:[%s5290_s9 + $0x168] sm:$0xff] %vm819_vm1, %v2806_v33  ;;  %v2805_v1 = vmax.f32 %v2741_v24, 0.0  ;;  %v2744_v9 = vadd.f32 %v4867_v48, %v2607_v63  ;;  %v2602_v35 = vadd.f32 %v2601_v0, %v5051_v47 }
 0x1f4   :  { %v3797_v3 = vpop.f32.mrf.mxu0 }
 0x1f5   :  { %2869 = vst.msk [vmem:[%s5290_s9 + $0x160] sm:$0xff] %vm819_vm1, %v2805_v1  ;;  %v2808_v52 = vmax.f32 %v2744_v9, 0.0  ;;  %v2743_v15 = vadd.f32 %v4867_v48, %v2602_v35  ;;  %v2617_v6 = vadd.f32 %v3797_v3, %v5065_v31 }
 0x1f6   :  { %v2611_v36 = vpop.f32.mrf.mxu0 }
 0x1f7   :  { %2872 = vst.msk [vmem:[%s5290_s9 + $0x178] sm:$0xff] %vm819_vm1, %v2808_v52  ;;  %v2807_v60 = vmax.f32 %v2743_v15, 0.0  ;;  %v2746_v47 = vadd.f32 %v4867_v48, %v2617_v6  ;;  %v2612_v7 = vadd.f32 %v2611_v36, %v5079_v23 }
 0x1f8   :  { %v3800_v8 = vpop.f32.mrf.mxu0 }
 0x1f9   :  { %2871 = vst.msk [vmem:[%s5290_s9 + $0x170] sm:$0xff] %vm819_vm1, %v2807_v60  ;;  %v2810_v37 = vmax.f32 %v2746_v47, 0.0  ;;  %v2745_v31 = vadd.f32 %v4867_v48, %v2612_v7  ;;  %v2627_v5 = vadd.f32 %v3800_v8, %v5093_v4 }
 0x1fa   :  { %v2621_v11 = vpop.f32.mrf.mxu0 }
 0x1fb   :  { %2874 = vst.msk [vmem:[%s5290_s9 + $0x188] sm:$0xff] %vm819_vm1, %v2810_v37  ;;  %v2809_v38 = vmax.f32 %v2745_v31, 0.0  ;;  %v2748_v23 = vadd.f32 %v4867_v48, %v2627_v5  ;;  %v2622_v34 = vadd.f32 %v2621_v11, %v5107_v26 }
 0x1fc   :  { %v3803_v13 = vpop.f32.mrf.mxu0 }
 0x1fd   :  { %2873 = vst.msk [vmem:[%s5290_s9 + $0x180] sm:$0xff] %vm819_vm1, %v2809_v38  ;;  %v2812_v27 = vmax.f32 %v2748_v23, 0.0  ;;  %v2747_v4 = vadd.f32 %v4867_v48, %v2622_v34  ;;  %v2637_v14 = vadd.f32 %v3803_v13, %v5121_v39 }
 0x1fe   :  { %v2631_v50 = vpop.f32.mrf.mxu0 }
 0x1ff   :  { %2876 = vst.msk [vmem:[%s5290_s9 + $0x198] sm:$0xff] %vm819_vm1, %v2812_v27  ;;  %v2811_v28 = vmax.f32 %v2747_v4, 0.0  ;;  %v2750_v26 = vadd.f32 %v4867_v48, %v2637_v14  ;;  %v2632_v18 = vadd.f32 %v2631_v50, %v5135_v29 }
 0x200   :  { %v3806_v58 = vpop.f32.mrf.mxu0 }
 0x201   :  { %2875 = vst.msk [vmem:[%s5290_s9 + $0x190] sm:$0xff] %vm819_vm1, %v2811_v28  ;;  %v2814_v40 = vmax.f32 %v2750_v26, 0.0  ;;  %v2749_v39 = vadd.f32 %v4867_v48, %v2632_v18  ;;  %v2647_v19 = vadd.f32 %v3806_v58, %v5149_v22  ;;  %v2091_v22 = vpop.f32.mrf.mxu1 }
 0x202   :  { %v2641_v20 = vpop.f32.mrf.mxu0 }
 0x203   :  { %2878 = vst.msk [vmem:[%s5290_s9 + $0x1a8] sm:$0xff] %vm819_vm1, %v2814_v40  ;;  %v2813_v41 = vmax.f32 %v2749_v39, 0.0  ;;  %v2752_v29 = vadd.f32 %v4867_v48, %v2647_v19  ;;  %v2642_v21 = vadd.f32 %v2641_v20, %v2061_v32  ;;  %v3720_v44 = vpop.f32.mrf.mxu1 }
 0x204   :  { %v3809_v51 = vpop.f32.mrf.mxu0 }
 0x205   :  { %2877 = vst.msk [vmem:[%s5290_s9 + $0x1a0] sm:$0xff] %vm819_vm1, %v2813_v41  ;;  %v2816_v10 = vmax.f32 %v2752_v29, 0.0  ;;  %v2751_v30 = vadd.f32 %v4867_v48, %v2642_v21  ;;  %v2657_v42 = vadd.f32 %v3809_v51, %v3711_v46  ;;  %v2101_v0 = vpop.f32.mrf.mxu1 }
 0x206   :  { %v2651_v54 = vpop.f32.mrf.mxu0 }
 0x207   :  { %2880 = vst.msk [vmem:[%s5290_s9 + $0x1b8] sm:$0xff] %vm819_vm1, %v2816_v10  ;;  %v2815_v17 = vmax.f32 %v2751_v30, 0.0  ;;  %v2754_v55 = vadd.f32 %v4867_v48, %v2657_v42  ;;  %v2652_v43 = vadd.f32 %v2651_v54, %v2071_v25 }
 0x208   :  { %v3812_v56 = vpop.f32.mrf.mxu0 }
 0x209   :  { %2879 = vst.msk [vmem:[%s5290_s9 + $0x1b0] sm:$0xff] %vm819_vm1, %v2815_v17  ;;  %v2818_v53 = vmax.f32 %v2754_v55, 0.0  ;;  %v2753_v57 = vadd.f32 %v4867_v48, %v2652_v43  ;;  %v2667_v49 = vadd.f32 %v3812_v56, %v3714_v12 }
 0x20a   :  { %v2661_v32 = vpop.f32.mrf.mxu0 }
 0x20b   :  { %2882 = vst.msk [vmem:[%s5290_s9 + $0x1c8] sm:$0xff] %vm819_vm1, %v2818_v53  ;;  %v2817_v61 = vmax.f32 %v2753_v57, 0.0  ;;  %v2756_v59 = vadd.f32 %v4867_v48, %v2667_v49  ;;  %v2662_v62 = vadd.f32 %v2661_v32, %v2081_v16 }
 0x20c   :  { %v3815_v45 = vpop.f32.mrf.mxu0 }
 0x20d   :  { %2881 = vst.msk [vmem:[%s5290_s9 + $0x1c0] sm:$0xff] %vm819_vm1, %v2817_v61  ;;  %v2820_v33 = vmax.f32 %v2756_v59, 0.0  ;;  %v2755_v24 = vadd.f32 %v4867_v48, %v2662_v62  ;;  %v2677_v63 = vadd.f32 %v3815_v45, %v3717_v2 }
 0x20e   :  { %v2671_v46 = vpop.f32.mrf.mxu0 }
 0x20f   :  { %2884 = vst.msk [vmem:[%s5290_s9 + $0x1d8] sm:$0xff] %vm819_vm1, %v2820_v33  ;;  %v2819_v1 = vmax.f32 %v2755_v24, 0.0  ;;  %v2758_v9 = vadd.f32 %v4867_v48, %v2677_v63  ;;  %v2672_v35 = vadd.f32 %v2671_v46, %v2091_v22 }
 0x210   :  { %v3818_v3 = vpop.f32.mrf.mxu1 }
 0x211   :  { %2883 = vst.msk [vmem:[%s5290_s9 + $0x1d0] sm:$0xff] %vm819_vm1, %v2819_v1  ;;  %v2822_v52 = vmax.f32 %v2758_v9, 0.0  ;;  %v2757_v15 = vadd.f32 %v4867_v48, %v2672_v35  ;;  %v2687_v6 = vadd.f32 %v3818_v3, %v3720_v44 }
 0x212   :  { %v2681_v36 = vpop.f32.mrf.mxu1 }
 0x213   :  { %2886 = vst.msk [vmem:[%s5290_s9 + $0x1e8] sm:$0xff] %vm819_vm1, %v2822_v52  ;;  %v2821_v25 = vmax.f32 %v2757_v15, 0.0  ;;  %v2760_v60 = vadd.f32 %v4867_v48, %v2687_v6  ;;  %v2682_v47 = vadd.f32 %v2681_v36, %v2101_v0 }
 0x215   :  { %2885 = vst.msk [vmem:[%s5290_s9 + $0x1e0] sm:$0xff] %vm819_vm1, %v2821_v25  ;;  %v2824_v7 = vmax.f32 %v2760_v60, 0.0  ;;  %v2759_v8 = vadd.f32 %v4867_v48, %v2682_v47 }
 0x217   :  { %2888 = vst.msk [vmem:[%s5290_s9 + $0x1f8] sm:$0xff] %vm819_vm1, %v2824_v7  ;;  %v2823_v37 = vmax.f32 %v2759_v8, 0.0 }
 0x219   :  { %2887 = vst.msk [vmem:[%s5290_s9 + $0x1f0] sm:$0xff] %vm819_vm1, %v2823_v37 }

</bundles_post_ra>
